<compile_context>
chip_gen: v5e
topology: v5e:2x2
jax: 0.10.0
libtpu: 0.0.40
codegen_flags: <defaults>
</compile_context>

<pallas_src>
import math
from functools import partial

import jax
import jax.numpy as jnp
import numpy as np
from jax.experimental import pallas as pl
from jax.experimental.pallas import tpu as pltpu

# ---------------- config (DNAEncoderConfig equivalent) ----------------
VOCAB_SIZE = 8      # DNA tokens + specials
BLOCK_SIZE = 16
N_LAYER = 2
N_HEAD = 4
N_EMBD = 32
HEAD_DIM = N_EMBD // N_HEAD
LN_EPS = 1e-5
MAX_SEQ_BLOCK = 64  # max sequences fused per grid step


def _layernorm(x, w, b):
    mu = jnp.mean(x, axis=-1, keepdims=True)
    xc = x - mu
    var = jnp.mean(xc * xc, axis=-1, keepdims=True)
    return xc * jax.lax.rsqrt(var + LN_EPS) * w + b


# ---------------- fully fused forward kernel (seq_block sequences per grid step) ----------
# Packed parameter layouts (all constant index maps, resident in VMEM for every step):
#   vecs_ref  : (V + BLOCK_SIZE + 2 + 5L, C)  rows: wte | wpe | lnf_w | lnf_b |
#                                              per layer [ln1_w, ln1_b, ln2_w, ln2_b, b_proj]
#   attnw_ref : (L*3*H, C+1, HD)  per-layer/per-{q,k,v}/per-head weight, last row = bias
#   wproj_ref : (L*H, HD, C)      per-layer/per-head slice of attention c_proj weight
#   wfc_ref   : (L, C+1, 4C)      c_fc weight, last row = bias
#   wfp_ref   : (L, 4C+1, C)      mlp c_proj weight, last row = bias
def fused_encoder_kernel(ids_ref, mask_ref, vecs_ref, attnw_ref, wproj_ref,
                         wfc_ref, wfp_ref, o_ref):
    C, H, HD, V = N_EMBD, N_HEAD, HEAD_DIM, VOCAB_SIZE
    BS, T = ids_ref.shape[0], ids_ref.shape[1]      # sequences per step, sequence length
    N = BS * T
    scale = 1.0 / math.sqrt(HD)

    vecs = vecs_ref[...]                             # (rows, C) all row-vector parameters
    maskrow = mask_ref[...]                          # (BS, 1, T) {0,1} attention mask
    kbias = (1.0 - maskrow) * (-1e9)                 # (BS, 1, T) additive key-padding bias

    # --- embedding: gather(wte, ids) == one-hot @ wte (MXU); one-hot built in-kernel ---
    onehot = (ids_ref[...] ==
              jax.lax.broadcasted_iota(jnp.int32, (BS, T, V), 2)).astype(jnp.float32)
    x = jnp.dot(onehot.reshape(N, V), vecs[0:V, :], preferred_element_type=jnp.float32)
    x = (x.reshape(BS, T, C) + vecs[V:V + T, :][None, :, :]).reshape(N, C)

    vbase = V + BLOCK_SIZE + 2
    for l in range(N_LAYER):                         # static unroll over layers
        r = vbase + 5 * l
        ln1w, ln1b = vecs[r:r + 1, :], vecs[r + 1:r + 2, :]
        ln2w, ln2b = vecs[r + 2:r + 3, :], vecs[r + 3:r + 4, :]
        b_proj = vecs[r + 4:r + 5, :]

        # ---- attention: x = x + c_proj( softmax(q k^T / sqrt(d) + mask) v ) ----
        xn = _layernorm(x, ln1w, ln1b)               # (N, C)
        proj = jnp.zeros((N, C), jnp.float32)
        for h in range(H):                           # static unroll; weights pre-split per
            # head at pack time -> no in-kernel lane slicing / jnp.stack of activations.
            wq = attnw_ref[(l * 3 + 0) * H + h]      # (C+1, HD)
            wk = attnw_ref[(l * 3 + 1) * H + h]
            wv = attnw_ref[(l * 3 + 2) * H + h]
            q = (jnp.dot(xn, wq[0:C, :], preferred_element_type=jnp.float32)
                 + wq[C:C + 1, :]).reshape(BS, T, HD)
            k = (jnp.dot(xn, wk[0:C, :], preferred_element_type=jnp.float32)
                 + wk[C:C + 1, :]).reshape(BS, T, HD)
            v = (jnp.dot(xn, wv[0:C, :], preferred_element_type=jnp.float32)
                 + wv[C:C + 1, :]).reshape(BS, T, HD)
            s = jnp.einsum("btd,bsd->bts", q, k,
                           preferred_element_type=jnp.float32) * scale + kbias
            s = s - jnp.max(s, axis=-1, keepdims=True)
            p = jnp.exp(s)
            p = p / jnp.sum(p, axis=-1, keepdims=True)              # exact softmax
            oh = jnp.einsum("bts,bsd->btd", p, v,
                            preferred_element_type=jnp.float32)      # (BS, T, HD)
            # concat-over-heads @ W_proj == sum_h oh_h @ W_proj[h*HD:(h+1)*HD, :]
            proj = proj + jnp.dot(oh.reshape(N, HD), wproj_ref[l * H + h],
                                  preferred_element_type=jnp.float32)
        x = x + proj + b_proj

        # ---- MLP: x = x + c_proj( gelu( c_fc( ln_2(x) ) ) ) ----
        wfc = wfc_ref[l]                             # (C+1, 4C)
        wfp = wfp_ref[l]                             # (4C+1, C)
        xn2 = _layernorm(x, ln2w, ln2b)
        hmid = (jnp.dot(xn2, wfc[0:C, :], preferred_element_type=jnp.float32)
                + wfc[C:C + 1, :])
        # TODO(synk): PyTorch nn.GELU() default is exact-erf; tanh approximation used here.
        hmid = jax.nn.gelu(hmid, approximate=True)
        x = (x + jnp.dot(hmid, wfp[0:4 * C, :], preferred_element_type=jnp.float32)
             + wfp[4 * C:4 * C + 1, :])

    # ---- final LayerNorm + masked mean-pool (masked sum as a batched (1,T)@(T,C) dot) ----
    lbase = V + BLOCK_SIZE
    xf = _layernorm(x, vecs[lbase:lbase + 1, :], vecs[lbase + 1:lbase + 2, :])
    xf3 = xf.reshape(BS, T, C)
    summed = jnp.einsum("bqt,btc->bqc", maskrow, xf3,
                        preferred_element_type=jnp.float32)          # (BS, 1, C)
    cnt = jnp.maximum(jnp.sum(maskrow, axis=-1, keepdims=True), 1e-9)  # (BS, 1, 1)
    o_ref[...] = summed * pl.reciprocal(cnt, approx=True)


def dna_encoder_pallas(packed, ids3, maskrow, seq_block):
    B_pad, T, _ = ids3.shape
    n_steps = B_pad // seq_block
    return pl.pallas_call(
        fused_encoder_kernel,
        out_shape=jax.ShapeDtypeStruct((B_pad, 1, N_EMBD), jnp.float32),
        grid=(n_steps,),
        in_specs=[
            pl.BlockSpec((seq_block, T, 1), lambda b: (b, 0, 0)),        # token ids (int32)
            pl.BlockSpec((seq_block, 1, T), lambda b: (b, 0, 0)),        # attention mask
            pl.BlockSpec(packed["vecs"].shape, lambda b: (0, 0)),        # row-vector params
            pl.BlockSpec(packed["attn_w"].shape, lambda b: (0, 0, 0)),   # per-head qkv w+b
            pl.BlockSpec(packed["wproj"].shape, lambda b: (0, 0, 0)),    # per-head out-proj
            pl.BlockSpec(packed["w_fc"].shape, lambda b: (0, 0, 0)),     # mlp fc w+b
            pl.BlockSpec(packed["w_fproj"].shape, lambda b: (0, 0, 0)),  # mlp proj w+b
        ],
        out_specs=pl.BlockSpec((seq_block, 1, N_EMBD), lambda b: (b, 0, 0)),
        compiler_params=pltpu.CompilerParams(dimension_semantics=("parallel",)),
    )(ids3, maskrow, packed["vecs"], packed["attn_w"], packed["wproj"],
      packed["w_fc"], packed["w_fproj"])


@partial(jax.jit, static_argnames=("seq_block",))
def dna_encoder_forward(packed, input_ids, attention_mask, seq_block=None):
    B, T = input_ids.shape
    assert T <= BLOCK_SIZE
    if seq_block is None:
        # Amortize the per-grid-step fixed cost by fusing many sequences per step, while
        # keeping >= 2 grid steps when possible so both v7x TensorCores get work.
        seq_block = min(MAX_SEQ_BLOCK, max(1, pl.cdiv(B, 2)))
        if seq_block >= 8:
            seq_block = (seq_block // 8) * 8          # keep block row counts sublane-aligned
    n_steps = pl.cdiv(B, seq_block)
    pad = n_steps * seq_block - B                     # padded rows: mask=0 -> ignored
    ids = jnp.pad(input_ids.astype(jnp.int32), ((0, pad), (0, 0)))
    mask = jnp.pad(attention_mask.astype(jnp.float32), ((0, pad), (0, 0)))
    out = dna_encoder_pallas(packed, ids[..., None], mask[:, None, :], seq_block)
    return out[:B, 0, :]


# ---------------- parameters ----------------
def init_params(key):
    ks = iter(jax.random.split(key, 32))
    std = 0.02
    proj_std = 0.02 / math.sqrt(2 * N_LAYER)          # c_proj.weight special init

    def rnd(shape, s=std):
        return s * jax.random.normal(next(ks), shape, jnp.float32)

    # NOTE: PyTorch _init_weights zeroes Linear biases and LayerNorm starts at (1, 0);
    # small random values are used here instead so the test exercises every bias/LN path.
    p = {
        "wte": rnd((VOCAB_SIZE, N_EMBD)),
        "wpe": rnd((BLOCK_SIZE, N_EMBD)),
        "lnf_w": 1.0 + rnd((1, N_EMBD)),
        "lnf_b": rnd((1, N_EMBD)),
        "blocks": [],
    }
    for _ in range(N_LAYER):
        p["blocks"].append({
            "ln1_w": 1.0 + rnd((1, N_EMBD)), "ln1_b": rnd((1, N_EMBD)),
            "w_qkv": rnd((N_EMBD, 3 * N_EMBD)), "b_qkv": rnd((1, 3 * N_EMBD)),
            "w_proj": rnd((N_EMBD, N_EMBD), proj_std), "b_proj": rnd((1, N_EMBD)),
            "ln2_w": 1.0 + rnd((1, N_EMBD)), "ln2_b": rnd((1, N_EMBD)),
            "w_fc": rnd((N_EMBD, 4 * N_EMBD)), "b_fc": rnd((1, 4 * N_EMBD)),
            "w_fproj": rnd((4 * N_EMBD, N_EMBD), proj_std), "b_fproj": rnd((1, N_EMBD)),
        })
    return p


def pack_params(p):
    """Pack parameters into a few stacked slabs.  The per-head split of the attention
    weights/biases happens HERE (free wrapper-side layout plumbing), so the kernel never
    slices 8-wide lane chunks or stacks per-head tensors."""
    C, H, HD = N_EMBD, N_HEAD, HEAD_DIM
    vec_rows = [p["wte"], p["wpe"], p["lnf_w"], p["lnf_b"]]
    attn_w, wproj, w_fc, w_fproj = [], [], [], []
    for bp in p["blocks"]:
        vec_rows += [bp["ln1_w"], bp["ln1_b"], bp["ln2_w"], bp["ln2_b"], bp["b_proj"]]
        for i in range(3):                            # q, k, v
            for h in range(H):
                w = bp["w_qkv"][:, i * C + h * HD: i * C + (h + 1) * HD]    # (C, HD)
                b = bp["b_qkv"][:, i * C + h * HD: i * C + (h + 1) * HD]    # (1, HD)
                attn_w.append(jnp.concatenate([w, b], axis=0))              # (C+1, HD)
        for h in range(H):
            wproj.append(bp["w_proj"][h * HD:(h + 1) * HD, :])              # (HD, C)
        w_fc.append(jnp.concatenate([bp["w_fc"], bp["b_fc"]], axis=0))      # (C+1, 4C)
        w_fproj.append(jnp.concatenate([bp["w_fproj"], bp["b_fproj"]], axis=0))  # (4C+1, C)
    return {
        "vecs": jnp.concatenate(vec_rows, axis=0),    # (V + BLOCK_SIZE + 2 + 5L, C)
        "attn_w": jnp.stack(attn_w, axis=0),          # (L*3*H, C+1, HD)
        "wproj": jnp.stack(wproj, axis=0),            # (L*H, HD, C)
        "w_fc": jnp.stack(w_fc, axis=0),              # (L, C+1, 4C)
        "w_fproj": jnp.stack(w_fproj, axis=0),        # (L, 4C+1, C)
    }


# ---------------- pure-JAX reference (same math, no Pallas) ----------------
def reference_forward(params, input_ids, attention_mask):
    B, T = input_ids.shape
    x = jnp.take(params["wte"], input_ids, axis=0) + params["wpe"][:T][None]
    mask_f = attention_mask.astype(jnp.float32)
    kbias = ((1.0 - mask_f) * -1e9)[:, None, :]                  # (B, 1, T)
    scale = 1.0 / math.sqrt(HEAD_DIM)
    for lp in params["blocks"]:
        xn = _layernorm(x, lp["ln1_w"][0], lp["ln1_b"][0])
        qkv = xn @ lp["w_qkv"] + lp["b_qkv"][0]
        attn_out = jnp.zeros_like(x)
        for h in range(N_HEAD):
            sl = slice(h * HEAD_DIM, (h + 1) * HEAD_DIM)
            qh = qkv[..., 0 * N_EMBD:1 * N_EMBD][..., sl]
            kh = qkv[..., 1 * N_EMBD:2 * N_EMBD][..., sl]
            vh = qkv[..., 2 * N_EMBD:3 * N_EMBD][..., sl]
            s = jnp.einsum("btd,bsd->bts", qh, kh) * scale + kbias
            pr = jax.nn.softmax(s, axis=-1)
            oh = jnp.einsum("bts,bsd->btd", pr, vh)
            attn_out = attn_out + oh @ lp["w_proj"][sl, :]
        x = x + attn_out + lp["b_proj"][0]
        xn2 = _layernorm(x, lp["ln2_w"][0], lp["ln2_b"][0])
        hmid = jax.nn.gelu(xn2 @ lp["w_fc"] + lp["b_fc"][0], approximate=True)
        x = x + hmid @ lp["w_fproj"] + lp["b_fproj"][0]
    x = _layernorm(x, params["lnf_w"][0], params["lnf_b"][0])
    m = mask_f[:, :, None]
    return jnp.sum(x * m, axis=1) / jnp.maximum(jnp.sum(m, axis=1), 1e-9)


if __name__ == "__main__":
    key = jax.random.PRNGKey(0)
    pkey, ikey = jax.random.split(key)
    params = init_params(pkey)
    packed = pack_params(params)

    # --- small test at the module's intended scale: B=2, T=8 ---
    B, T = 2, 8
    input_ids = jax.random.randint(ikey, (B, T), 0, VOCAB_SIZE, dtype=jnp.int32)
    attention_mask = jnp.array([[1, 1, 1, 1, 1, 1, 1, 1],
                                [1, 1, 1, 1, 1, 0, 0, 0]], dtype=jnp.int32)
    out = jax.block_until_ready(dna_encoder_forward(packed, input_ids, attention_mask))
    ref = reference_forward(params, input_ids, attention_mask)
    assert out.shape == (B, N_EMBD)
    np.testing.assert_allclose(np.asarray(out), np.asarray(ref), rtol=2e-3, atol=5e-4)

    # --- larger batch: exercises the batched (8 sequences/step) grid + batch-padding path ---
    B2 = 20
    k1, k2 = jax.random.split(jax.random.PRNGKey(1))
    ids2 = jax.random.randint(k1, (B2, T), 0, VOCAB_SIZE, dtype=jnp.int32)
    lens2 = jax.random.randint(k2, (B2,), 1, T + 1)
    mask2 = (jnp.arange(T)[None, :] < lens2[:, None]).astype(jnp.int32)
    out2 = jax.block_until_ready(dna_encoder_forward(packed, ids2, mask2))
    ref2 = reference_forward(params, ids2, mask2)
    np.testing.assert_allclose(np.asarray(out2), np.asarray(ref2), rtol=2e-3, atol=5e-4)

    print("KERNEL_OK")
</pallas_src>

<mosaic_0001>
module attributes {stable_mosaic.version = 11 : i64} {
  func.func @fused_encoder_kernel(%arg0: i32, %arg1: memref<1x8x1xi32, #tpu.memory_space<vmem>>, %arg2: memref<1x1x8xf32, #tpu.memory_space<vmem>>, %arg3: memref<36x32xf32, #tpu.memory_space<vmem>>, %arg4: memref<24x33x8xf32, #tpu.memory_space<vmem>>, %arg5: memref<8x8x32xf32, #tpu.memory_space<vmem>>, %arg6: memref<2x33x128xf32, #tpu.memory_space<vmem>>, %arg7: memref<2x129x32xf32, #tpu.memory_space<vmem>>, %arg8: memref<1x1x32xf32, #tpu.memory_space<vmem>>) attributes {dimension_semantics = [#tpu.dimension_semantics<parallel>], iteration_bounds = array<i64: 2>, scalar_prefetch = 0 : i64, scratch_operands = 0 : i64, tpu.core_type = #tpu.core_type<tc>, window_params = [{transform_indices = @transform_0, window_bounds = array<i64: 1, 8, 1>}, {transform_indices = @transform_1, window_bounds = array<i64: 1, 1, 8>}, {pipeline_mode = #tpu.pipeline_mode<synchronous>, transform_indices = @transform_2, window_bounds = array<i64: 36, 32>}, {pipeline_mode = #tpu.pipeline_mode<synchronous>, transform_indices = @transform_3, window_bounds = array<i64: 24, 33, 8>}, {pipeline_mode = #tpu.pipeline_mode<synchronous>, transform_indices = @transform_4, window_bounds = array<i64: 8, 8, 32>}, {pipeline_mode = #tpu.pipeline_mode<synchronous>, transform_indices = @transform_5, window_bounds = array<i64: 2, 33, 128>}, {pipeline_mode = #tpu.pipeline_mode<synchronous>, transform_indices = @transform_6, window_bounds = array<i64: 2, 129, 32>}, {transform_indices = @transform_7, window_bounds = array<i64: 1, 1, 32>}]} {
    %c0 = arith.constant 0 : index
    %c0_0 = arith.constant 0 : index
    %0 = vector.load %arg3[%c0, %c0_0] : memref<36x32xf32, #tpu.memory_space<vmem>>, vector<36x32xf32>
    %c0_1 = arith.constant 0 : index
    %c0_2 = arith.constant 0 : index
    %c0_3 = arith.constant 0 : index
    %1 = vector.load %arg2[%c0_1, %c0_2, %c0_3] : memref<1x1x8xf32, #tpu.memory_space<vmem>>, vector<1x1x8xf32>
    %cst = arith.constant 1.000000e+00 : f32
    %2 = vector.broadcast %cst : f32 to vector<1x1x8xf32>
    %3 = arith.subf %2, %1 : vector<1x1x8xf32>
    %cst_4 = arith.constant -1.000000e+09 : f32
    %4 = vector.broadcast %cst_4 : f32 to vector<1x1x8xf32>
    %5 = arith.mulf %3, %4 : vector<1x1x8xf32>
    %c0_5 = arith.constant 0 : index
    %c0_6 = arith.constant 0 : index
    %c0_7 = arith.constant 0 : index
    %6 = vector.load %arg1[%c0_5, %c0_6, %c0_7] : memref<1x8x1xi32, #tpu.memory_space<vmem>>, vector<1x8x1xi32>
    %7 = tpu.iota {dimensions = array<i32: 2>} : vector<1x8x8xi32>
    %8 = vector.broadcast %6 : vector<1x8x1xi32> to vector<1x8x8xi32>
    %9 = arith.cmpi eq, %8, %7 : vector<1x8x8xi32>
    %10 = arith.extui %9 : vector<1x8x8xi1> to vector<1x8x8xi32>
    %11 = arith.sitofp %10 : vector<1x8x8xi32> to vector<1x8x8xf32>
    %12 = vector.shape_cast %11 : vector<1x8x8xf32> to vector<8x8xf32>
    %13 = vector.extract_strided_slice %0 {offsets = [0, 0], sizes = [8, 32], strides = [1, 1]} : vector<36x32xf32> to vector<8x32xf32>
    %cst_8 = arith.constant dense<0.000000e+00> : vector<8x32xf32>
    %14 = tpu.matmul %12, %13, %cst_8 {dimension_numbers = #tpu.dot_dimension_numbers<[1], [0], [0], [1], [0, 0, 1, 1], [], []>} : vector<8x8xf32>, vector<8x32xf32>, vector<8x32xf32> -> vector<8x32xf32>
    %15 = vector.shape_cast %14 : vector<8x32xf32> to vector<1x8x32xf32>
    %16 = vector.extract_strided_slice %0 {offsets = [8, 0], sizes = [8, 32], strides = [1, 1]} : vector<36x32xf32> to vector<8x32xf32>
    %17 = vector.shape_cast %16 : vector<8x32xf32> to vector<1x8x32xf32>
    %18 = arith.addf %15, %17 : vector<1x8x32xf32>
    %19 = vector.shape_cast %18 : vector<1x8x32xf32> to vector<8x32xf32>
    %20 = vector.extract_strided_slice %0 {offsets = [26, 0], sizes = [1, 32], strides = [1, 1]} : vector<36x32xf32> to vector<1x32xf32>
    %21 = vector.extract_strided_slice %0 {offsets = [27, 0], sizes = [1, 32], strides = [1, 1]} : vector<36x32xf32> to vector<1x32xf32>
    %22 = vector.extract_strided_slice %0 {offsets = [28, 0], sizes = [1, 32], strides = [1, 1]} : vector<36x32xf32> to vector<1x32xf32>
    %23 = vector.extract_strided_slice %0 {offsets = [29, 0], sizes = [1, 32], strides = [1, 1]} : vector<36x32xf32> to vector<1x32xf32>
    %24 = vector.extract_strided_slice %0 {offsets = [30, 0], sizes = [1, 32], strides = [1, 1]} : vector<36x32xf32> to vector<1x32xf32>
    %cst_9 = arith.constant dense<0.000000e+00> : vector<8xf32>
    %25 = vector.multi_reduction <add>, %19, %cst_9 [1] : vector<8x32xf32> to vector<8xf32>
    %26 = vector.shape_cast %25 : vector<8xf32> to vector<8x1xf32>
    %cst_10 = arith.constant 3.200000e+01 : f32
    %27 = vector.broadcast %cst_10 : f32 to vector<8x1xf32>
    %28 = arith.divf %26, %27 : vector<8x1xf32>
    %29 = vector.broadcast %28 : vector<8x1xf32> to vector<8x32xf32>
    %30 = arith.subf %19, %29 : vector<8x32xf32>
    %31 = arith.mulf %30, %30 : vector<8x32xf32>
    %cst_11 = arith.constant dense<0.000000e+00> : vector<8xf32>
    %32 = vector.multi_reduction <add>, %31, %cst_11 [1] : vector<8x32xf32> to vector<8xf32>
    %33 = vector.shape_cast %32 : vector<8xf32> to vector<8x1xf32>
    %cst_12 = arith.constant 3.200000e+01 : f32
    %34 = vector.broadcast %cst_12 : f32 to vector<8x1xf32>
    %35 = arith.divf %33, %34 : vector<8x1xf32>
    %cst_13 = arith.constant 9.99999974E-6 : f32
    %36 = vector.broadcast %cst_13 : f32 to vector<8x1xf32>
    %37 = arith.addf %35, %36 : vector<8x1xf32>
    %38 = math.rsqrt %37 : vector<8x1xf32>
    %39 = vector.broadcast %38 : vector<8x1xf32> to vector<8x32xf32>
    %40 = arith.mulf %30, %39 : vector<8x32xf32>
    %41 = vector.broadcast %20 : vector<1x32xf32> to vector<8x32xf32>
    %42 = arith.mulf %40, %41 : vector<8x32xf32>
    %43 = vector.broadcast %21 : vector<1x32xf32> to vector<8x32xf32>
    %44 = arith.addf %42, %43 : vector<8x32xf32>
    %cst_14 = arith.constant 0.000000e+00 : f32
    %45 = vector.broadcast %cst_14 : f32 to vector<8x32xf32>
    %c0_15 = arith.constant 0 : index
    %c0_16 = arith.constant 0 : index
    %c0_17 = arith.constant 0 : index
    %46 = vector.load %arg4[%c0_15, %c0_16, %c0_17] : memref<24x33x8xf32, #tpu.memory_space<vmem>>, vector<1x33x8xf32>
    %47 = vector.shape_cast %46 : vector<1x33x8xf32> to vector<33x8xf32>
    %c4 = arith.constant 4 : index
    %c0_18 = arith.constant 0 : index
    %c0_19 = arith.constant 0 : index
    %48 = vector.load %arg4[%c4, %c0_18, %c0_19] : memref<24x33x8xf32, #tpu.memory_space<vmem>>, vector<1x33x8xf32>
    %49 = vector.shape_cast %48 : vector<1x33x8xf32> to vector<33x8xf32>
    %c8 = arith.constant 8 : index
    %c0_20 = arith.constant 0 : index
    %c0_21 = arith.constant 0 : index
    %50 = vector.load %arg4[%c8, %c0_20, %c0_21] : memref<24x33x8xf32, #tpu.memory_space<vmem>>, vector<1x33x8xf32>
    %51 = vector.shape_cast %50 : vector<1x33x8xf32> to vector<33x8xf32>
    %52 = vector.extract_strided_slice %47 {offsets = [0, 0], sizes = [32, 8], strides = [1, 1]} : vector<33x8xf32> to vector<32x8xf32>
    %cst_22 = arith.constant dense<0.000000e+00> : vector<8x8xf32>
    %53 = tpu.matmul %44, %52, %cst_22 {dimension_numbers = #tpu.dot_dimension_numbers<[1], [0], [0], [1], [0, 0, 1, 1], [], []>} : vector<8x32xf32>, vector<32x8xf32>, vector<8x8xf32> -> vector<8x8xf32>
    %54 = vector.extract_strided_slice %47 {offsets = [32, 0], sizes = [1, 8], strides = [1, 1]} : vector<33x8xf32> to vector<1x8xf32>
    %55 = vector.broadcast %54 : vector<1x8xf32> to vector<8x8xf32>
    %56 = arith.addf %53, %55 : vector<8x8xf32>
    %57 = vector.shape_cast %56 : vector<8x8xf32> to vector<1x8x8xf32>
    %58 = vector.extract_strided_slice %49 {offsets = [0, 0], sizes = [32, 8], strides = [1, 1]} : vector<33x8xf32> to vector<32x8xf32>
    %cst_23 = arith.constant dense<0.000000e+00> : vector<8x8xf32>
    %59 = tpu.matmul %44, %58, %cst_23 {dimension_numbers = #tpu.dot_dimension_numbers<[1], [0], [0], [1], [0, 0, 1, 1], [], []>} : vector<8x32xf32>, vector<32x8xf32>, vector<8x8xf32> -> vector<8x8xf32>
    %60 = vector.extract_strided_slice %49 {offsets = [32, 0], sizes = [1, 8], strides = [1, 1]} : vector<33x8xf32> to vector<1x8xf32>
    %61 = vector.broadcast %60 : vector<1x8xf32> to vector<8x8xf32>
    %62 = arith.addf %59, %61 : vector<8x8xf32>
    %63 = vector.shape_cast %62 : vector<8x8xf32> to vector<1x8x8xf32>
    %64 = vector.extract_strided_slice %51 {offsets = [0, 0], sizes = [32, 8], strides = [1, 1]} : vector<33x8xf32> to vector<32x8xf32>
    %cst_24 = arith.constant dense<0.000000e+00> : vector<8x8xf32>
    %65 = tpu.matmul %44, %64, %cst_24 {dimension_numbers = #tpu.dot_dimension_numbers<[1], [0], [0], [1], [0, 0, 1, 1], [], []>} : vector<8x32xf32>, vector<32x8xf32>, vector<8x8xf32> -> vector<8x8xf32>
    %66 = vector.extract_strided_slice %51 {offsets = [32, 0], sizes = [1, 8], strides = [1, 1]} : vector<33x8xf32> to vector<1x8xf32>
    %67 = vector.broadcast %66 : vector<1x8xf32> to vector<8x8xf32>
    %68 = arith.addf %65, %67 : vector<8x8xf32>
    %69 = vector.shape_cast %68 : vector<8x8xf32> to vector<1x8x8xf32>
    "tpu.trace_start"() <{level = 10 : i32, message = "btd,bsd->bts"}> : () -> ()
    %cst_25 = arith.constant dense<0.000000e+00> : vector<1x8x8xf32>
    %70 = tpu.matmul %57, %63, %cst_25 {dimension_numbers = #tpu.dot_dimension_numbers<[2], [2], [1], [1], [0, 0, 0, 1, 1, 1], [0], [0]>} : vector<1x8x8xf32>, vector<1x8x8xf32>, vector<1x8x8xf32> -> vector<1x8x8xf32>
    "tpu.trace_stop"() : () -> ()
    %cst_26 = arith.constant 0.353553385 : f32
    %71 = vector.broadcast %cst_26 : f32 to vector<1x8x8xf32>
    %72 = arith.mulf %70, %71 : vector<1x8x8xf32>
    %73 = vector.broadcast %5 : vector<1x1x8xf32> to vector<1x8x8xf32>
    %74 = arith.addf %72, %73 : vector<1x8x8xf32>
    %cst_27 = arith.constant dense<0xFF800000> : vector<1x8xf32>
    %75 = vector.multi_reduction <maximumf>, %74, %cst_27 [2] : vector<1x8x8xf32> to vector<1x8xf32>
    %76 = vector.shape_cast %75 : vector<1x8xf32> to vector<1x8x1xf32>
    %77 = vector.broadcast %76 : vector<1x8x1xf32> to vector<1x8x8xf32>
    %78 = arith.subf %74, %77 : vector<1x8x8xf32>
    %79 = math.exp %78 : vector<1x8x8xf32>
    %cst_28 = arith.constant dense<0.000000e+00> : vector<1x8xf32>
    %80 = vector.multi_reduction <add>, %79, %cst_28 [2] : vector<1x8x8xf32> to vector<1x8xf32>
    %81 = vector.shape_cast %80 : vector<1x8xf32> to vector<1x8x1xf32>
    %82 = vector.broadcast %81 : vector<1x8x1xf32> to vector<1x8x8xf32>
    %83 = arith.divf %79, %82 : vector<1x8x8xf32>
    "tpu.trace_start"() <{level = 10 : i32, message = "bts,bsd->btd"}> : () -> ()
    %cst_29 = arith.constant dense<0.000000e+00> : vector<1x8x8xf32>
    %84 = tpu.matmul %83, %69, %cst_29 {dimension_numbers = #tpu.dot_dimension_numbers<[2], [1], [1], [2], [0, 0, 0, 1, 1, 2], [0], [0]>} : vector<1x8x8xf32>, vector<1x8x8xf32>, vector<1x8x8xf32> -> vector<1x8x8xf32>
    "tpu.trace_stop"() : () -> ()
    %85 = vector.shape_cast %84 : vector<1x8x8xf32> to vector<8x8xf32>
    %c0_30 = arith.constant 0 : index
    %c0_31 = arith.constant 0 : index
    %c0_32 = arith.constant 0 : index
    %86 = vector.load %arg5[%c0_30, %c0_31, %c0_32] : memref<8x8x32xf32, #tpu.memory_space<vmem>>, vector<1x8x32xf32>
    %87 = vector.shape_cast %86 : vector<1x8x32xf32> to vector<8x32xf32>
    %cst_33 = arith.constant dense<0.000000e+00> : vector<8x32xf32>
    %88 = tpu.matmul %85, %87, %cst_33 {dimension_numbers = #tpu.dot_dimension_numbers<[1], [0], [0], [1], [0, 0, 1, 1], [], []>} : vector<8x8xf32>, vector<8x32xf32>, vector<8x32xf32> -> vector<8x32xf32>
    %89 = arith.addf %45, %88 : vector<8x32xf32>
    %c1 = arith.constant 1 : index
    %c0_34 = arith.constant 0 : index
    %c0_35 = arith.constant 0 : index
    %90 = vector.load %arg4[%c1, %c0_34, %c0_35] : memref<24x33x8xf32, #tpu.memory_space<vmem>>, vector<1x33x8xf32>
    %91 = vector.shape_cast %90 : vector<1x33x8xf32> to vector<33x8xf32>
    %c5 = arith.constant 5 : index
    %c0_36 = arith.constant 0 : index
    %c0_37 = arith.constant 0 : index
    %92 = vector.load %arg4[%c5, %c0_36, %c0_37] : memref<24x33x8xf32, #tpu.memory_space<vmem>>, vector<1x33x8xf32>
    %93 = vector.shape_cast %92 : vector<1x33x8xf32> to vector<33x8xf32>
    %c9 = arith.constant 9 : index
    %c0_38 = arith.constant 0 : index
    %c0_39 = arith.constant 0 : index
    %94 = vector.load %arg4[%c9, %c0_38, %c0_39] : memref<24x33x8xf32, #tpu.memory_space<vmem>>, vector<1x33x8xf32>
    %95 = vector.shape_cast %94 : vector<1x33x8xf32> to vector<33x8xf32>
    %96 = vector.extract_strided_slice %91 {offsets = [0, 0], sizes = [32, 8], strides = [1, 1]} : vector<33x8xf32> to vector<32x8xf32>
    %cst_40 = arith.constant dense<0.000000e+00> : vector<8x8xf32>
    %97 = tpu.matmul %44, %96, %cst_40 {dimension_numbers = #tpu.dot_dimension_numbers<[1], [0], [0], [1], [0, 0, 1, 1], [], []>} : vector<8x32xf32>, vector<32x8xf32>, vector<8x8xf32> -> vector<8x8xf32>
    %98 = vector.extract_strided_slice %91 {offsets = [32, 0], sizes = [1, 8], strides = [1, 1]} : vector<33x8xf32> to vector<1x8xf32>
    %99 = vector.broadcast %98 : vector<1x8xf32> to vector<8x8xf32>
    %100 = arith.addf %97, %99 : vector<8x8xf32>
    %101 = vector.shape_cast %100 : vector<8x8xf32> to vector<1x8x8xf32>
    %102 = vector.extract_strided_slice %93 {offsets = [0, 0], sizes = [32, 8], strides = [1, 1]} : vector<33x8xf32> to vector<32x8xf32>
    %cst_41 = arith.constant dense<0.000000e+00> : vector<8x8xf32>
    %103 = tpu.matmul %44, %102, %cst_41 {dimension_numbers = #tpu.dot_dimension_numbers<[1], [0], [0], [1], [0, 0, 1, 1], [], []>} : vector<8x32xf32>, vector<32x8xf32>, vector<8x8xf32> -> vector<8x8xf32>
    %104 = vector.extract_strided_slice %93 {offsets = [32, 0], sizes = [1, 8], strides = [1, 1]} : vector<33x8xf32> to vector<1x8xf32>
    %105 = vector.broadcast %104 : vector<1x8xf32> to vector<8x8xf32>
    %106 = arith.addf %103, %105 : vector<8x8xf32>
    %107 = vector.shape_cast %106 : vector<8x8xf32> to vector<1x8x8xf32>
    %108 = vector.extract_strided_slice %95 {offsets = [0, 0], sizes = [32, 8], strides = [1, 1]} : vector<33x8xf32> to vector<32x8xf32>
    %cst_42 = arith.constant dense<0.000000e+00> : vector<8x8xf32>
    %109 = tpu.matmul %44, %108, %cst_42 {dimension_numbers = #tpu.dot_dimension_numbers<[1], [0], [0], [1], [0, 0, 1, 1], [], []>} : vector<8x32xf32>, vector<32x8xf32>, vector<8x8xf32> -> vector<8x8xf32>
    %110 = vector.extract_strided_slice %95 {offsets = [32, 0], sizes = [1, 8], strides = [1, 1]} : vector<33x8xf32> to vector<1x8xf32>
    %111 = vector.broadcast %110 : vector<1x8xf32> to vector<8x8xf32>
    %112 = arith.addf %109, %111 : vector<8x8xf32>
    %113 = vector.shape_cast %112 : vector<8x8xf32> to vector<1x8x8xf32>
    "tpu.trace_start"() <{level = 10 : i32, message = "btd,bsd->bts"}> : () -> ()
    %cst_43 = arith.constant dense<0.000000e+00> : vector<1x8x8xf32>
    %114 = tpu.matmul %101, %107, %cst_43 {dimension_numbers = #tpu.dot_dimension_numbers<[2], [2], [1], [1], [0, 0, 0, 1, 1, 1], [0], [0]>} : vector<1x8x8xf32>, vector<1x8x8xf32>, vector<1x8x8xf32> -> vector<1x8x8xf32>
    "tpu.trace_stop"() : () -> ()
    %cst_44 = arith.constant 0.353553385 : f32
    %115 = vector.broadcast %cst_44 : f32 to vector<1x8x8xf32>
    %116 = arith.mulf %114, %115 : vector<1x8x8xf32>
    %117 = vector.broadcast %5 : vector<1x1x8xf32> to vector<1x8x8xf32>
    %118 = arith.addf %116, %117 : vector<1x8x8xf32>
    %cst_45 = arith.constant dense<0xFF800000> : vector<1x8xf32>
    %119 = vector.multi_reduction <maximumf>, %118, %cst_45 [2] : vector<1x8x8xf32> to vector<1x8xf32>
    %120 = vector.shape_cast %119 : vector<1x8xf32> to vector<1x8x1xf32>
    %121 = vector.broadcast %120 : vector<1x8x1xf32> to vector<1x8x8xf32>
    %122 = arith.subf %118, %121 : vector<1x8x8xf32>
    %123 = math.exp %122 : vector<1x8x8xf32>
    %cst_46 = arith.constant dense<0.000000e+00> : vector<1x8xf32>
    %124 = vector.multi_reduction <add>, %123, %cst_46 [2] : vector<1x8x8xf32> to vector<1x8xf32>
    %125 = vector.shape_cast %124 : vector<1x8xf32> to vector<1x8x1xf32>
    %126 = vector.broadcast %125 : vector<1x8x1xf32> to vector<1x8x8xf32>
    %127 = arith.divf %123, %126 : vector<1x8x8xf32>
    "tpu.trace_start"() <{level = 10 : i32, message = "bts,bsd->btd"}> : () -> ()
    %cst_47 = arith.constant dense<0.000000e+00> : vector<1x8x8xf32>
    %128 = tpu.matmul %127, %113, %cst_47 {dimension_numbers = #tpu.dot_dimension_numbers<[2], [1], [1], [2], [0, 0, 0, 1, 1, 2], [0], [0]>} : vector<1x8x8xf32>, vector<1x8x8xf32>, vector<1x8x8xf32> -> vector<1x8x8xf32>
    "tpu.trace_stop"() : () -> ()
    %129 = vector.shape_cast %128 : vector<1x8x8xf32> to vector<8x8xf32>
    %c1_48 = arith.constant 1 : index
    %c0_49 = arith.constant 0 : index
    %c0_50 = arith.constant 0 : index
    %130 = vector.load %arg5[%c1_48, %c0_49, %c0_50] : memref<8x8x32xf32, #tpu.memory_space<vmem>>, vector<1x8x32xf32>
    %131 = vector.shape_cast %130 : vector<1x8x32xf32> to vector<8x32xf32>
    %cst_51 = arith.constant dense<0.000000e+00> : vector<8x32xf32>
    %132 = tpu.matmul %129, %131, %cst_51 {dimension_numbers = #tpu.dot_dimension_numbers<[1], [0], [0], [1], [0, 0, 1, 1], [], []>} : vector<8x8xf32>, vector<8x32xf32>, vector<8x32xf32> -> vector<8x32xf32>
    %133 = arith.addf %89, %132 : vector<8x32xf32>
    %c2 = arith.constant 2 : index
    %c0_52 = arith.constant 0 : index
    %c0_53 = arith.constant 0 : index
    %134 = vector.load %arg4[%c2, %c0_52, %c0_53] : memref<24x33x8xf32, #tpu.memory_space<vmem>>, vector<1x33x8xf32>
    %135 = vector.shape_cast %134 : vector<1x33x8xf32> to vector<33x8xf32>
    %c6 = arith.constant 6 : index
    %c0_54 = arith.constant 0 : index
    %c0_55 = arith.constant 0 : index
    %136 = vector.load %arg4[%c6, %c0_54, %c0_55] : memref<24x33x8xf32, #tpu.memory_space<vmem>>, vector<1x33x8xf32>
    %137 = vector.shape_cast %136 : vector<1x33x8xf32> to vector<33x8xf32>
    %c10 = arith.constant 10 : index
    %c0_56 = arith.constant 0 : index
    %c0_57 = arith.constant 0 : index
    %138 = vector.load %arg4[%c10, %c0_56, %c0_57] : memref<24x33x8xf32, #tpu.memory_space<vmem>>, vector<1x33x8xf32>
    %139 = vector.shape_cast %138 : vector<1x33x8xf32> to vector<33x8xf32>
    %140 = vector.extract_strided_slice %135 {offsets = [0, 0], sizes = [32, 8], strides = [1, 1]} : vector<33x8xf32> to vector<32x8xf32>
    %cst_58 = arith.constant dense<0.000000e+00> : vector<8x8xf32>
    %141 = tpu.matmul %44, %140, %cst_58 {dimension_numbers = #tpu.dot_dimension_numbers<[1], [0], [0], [1], [0, 0, 1, 1], [], []>} : vector<8x32xf32>, vector<32x8xf32>, vector<8x8xf32> -> vector<8x8xf32>
    %142 = vector.extract_strided_slice %135 {offsets = [32, 0], sizes = [1, 8], strides = [1, 1]} : vector<33x8xf32> to vector<1x8xf32>
    %143 = vector.broadcast %142 : vector<1x8xf32> to vector<8x8xf32>
    %144 = arith.addf %141, %143 : vector<8x8xf32>
    %145 = vector.shape_cast %144 : vector<8x8xf32> to vector<1x8x8xf32>
    %146 = vector.extract_strided_slice %137 {offsets = [0, 0], sizes = [32, 8], strides = [1, 1]} : vector<33x8xf32> to vector<32x8xf32>
    %cst_59 = arith.constant dense<0.000000e+00> : vector<8x8xf32>
    %147 = tpu.matmul %44, %146, %cst_59 {dimension_numbers = #tpu.dot_dimension_numbers<[1], [0], [0], [1], [0, 0, 1, 1], [], []>} : vector<8x32xf32>, vector<32x8xf32>, vector<8x8xf32> -> vector<8x8xf32>
    %148 = vector.extract_strided_slice %137 {offsets = [32, 0], sizes = [1, 8], strides = [1, 1]} : vector<33x8xf32> to vector<1x8xf32>
    %149 = vector.broadcast %148 : vector<1x8xf32> to vector<8x8xf32>
    %150 = arith.addf %147, %149 : vector<8x8xf32>
    %151 = vector.shape_cast %150 : vector<8x8xf32> to vector<1x8x8xf32>
    %152 = vector.extract_strided_slice %139 {offsets = [0, 0], sizes = [32, 8], strides = [1, 1]} : vector<33x8xf32> to vector<32x8xf32>
    %cst_60 = arith.constant dense<0.000000e+00> : vector<8x8xf32>
    %153 = tpu.matmul %44, %152, %cst_60 {dimension_numbers = #tpu.dot_dimension_numbers<[1], [0], [0], [1], [0, 0, 1, 1], [], []>} : vector<8x32xf32>, vector<32x8xf32>, vector<8x8xf32> -> vector<8x8xf32>
    %154 = vector.extract_strided_slice %139 {offsets = [32, 0], sizes = [1, 8], strides = [1, 1]} : vector<33x8xf32> to vector<1x8xf32>
    %155 = vector.broadcast %154 : vector<1x8xf32> to vector<8x8xf32>
    %156 = arith.addf %153, %155 : vector<8x8xf32>
    %157 = vector.shape_cast %156 : vector<8x8xf32> to vector<1x8x8xf32>
    "tpu.trace_start"() <{level = 10 : i32, message = "btd,bsd->bts"}> : () -> ()
    %cst_61 = arith.constant dense<0.000000e+00> : vector<1x8x8xf32>
    %158 = tpu.matmul %145, %151, %cst_61 {dimension_numbers = #tpu.dot_dimension_numbers<[2], [2], [1], [1], [0, 0, 0, 1, 1, 1], [0], [0]>} : vector<1x8x8xf32>, vector<1x8x8xf32>, vector<1x8x8xf32> -> vector<1x8x8xf32>
    "tpu.trace_stop"() : () -> ()
    %cst_62 = arith.constant 0.353553385 : f32
    %159 = vector.broadcast %cst_62 : f32 to vector<1x8x8xf32>
    %160 = arith.mulf %158, %159 : vector<1x8x8xf32>
    %161 = vector.broadcast %5 : vector<1x1x8xf32> to vector<1x8x8xf32>
    %162 = arith.addf %160, %161 : vector<1x8x8xf32>
    %cst_63 = arith.constant dense<0xFF800000> : vector<1x8xf32>
    %163 = vector.multi_reduction <maximumf>, %162, %cst_63 [2] : vector<1x8x8xf32> to vector<1x8xf32>
    %164 = vector.shape_cast %163 : vector<1x8xf32> to vector<1x8x1xf32>
    %165 = vector.broadcast %164 : vector<1x8x1xf32> to vector<1x8x8xf32>
    %166 = arith.subf %162, %165 : vector<1x8x8xf32>
    %167 = math.exp %166 : vector<1x8x8xf32>
    %cst_64 = arith.constant dense<0.000000e+00> : vector<1x8xf32>
    %168 = vector.multi_reduction <add>, %167, %cst_64 [2] : vector<1x8x8xf32> to vector<1x8xf32>
    %169 = vector.shape_cast %168 : vector<1x8xf32> to vector<1x8x1xf32>
    %170 = vector.broadcast %169 : vector<1x8x1xf32> to vector<1x8x8xf32>
    %171 = arith.divf %167, %170 : vector<1x8x8xf32>
    "tpu.trace_start"() <{level = 10 : i32, message = "bts,bsd->btd"}> : () -> ()
    %cst_65 = arith.constant dense<0.000000e+00> : vector<1x8x8xf32>
    %172 = tpu.matmul %171, %157, %cst_65 {dimension_numbers = #tpu.dot_dimension_numbers<[2], [1], [1], [2], [0, 0, 0, 1, 1, 2], [0], [0]>} : vector<1x8x8xf32>, vector<1x8x8xf32>, vector<1x8x8xf32> -> vector<1x8x8xf32>
    "tpu.trace_stop"() : () -> ()
    %173 = vector.shape_cast %172 : vector<1x8x8xf32> to vector<8x8xf32>
    %c2_66 = arith.constant 2 : index
    %c0_67 = arith.constant 0 : index
    %c0_68 = arith.constant 0 : index
    %174 = vector.load %arg5[%c2_66, %c0_67, %c0_68] : memref<8x8x32xf32, #tpu.memory_space<vmem>>, vector<1x8x32xf32>
    %175 = vector.shape_cast %174 : vector<1x8x32xf32> to vector<8x32xf32>
    %cst_69 = arith.constant dense<0.000000e+00> : vector<8x32xf32>
    %176 = tpu.matmul %173, %175, %cst_69 {dimension_numbers = #tpu.dot_dimension_numbers<[1], [0], [0], [1], [0, 0, 1, 1], [], []>} : vector<8x8xf32>, vector<8x32xf32>, vector<8x32xf32> -> vector<8x32xf32>
    %177 = arith.addf %133, %176 : vector<8x32xf32>
    %c3 = arith.constant 3 : index
    %c0_70 = arith.constant 0 : index
    %c0_71 = arith.constant 0 : index
    %178 = vector.load %arg4[%c3, %c0_70, %c0_71] : memref<24x33x8xf32, #tpu.memory_space<vmem>>, vector<1x33x8xf32>
    %179 = vector.shape_cast %178 : vector<1x33x8xf32> to vector<33x8xf32>
    %c7 = arith.constant 7 : index
    %c0_72 = arith.constant 0 : index
    %c0_73 = arith.constant 0 : index
    %180 = vector.load %arg4[%c7, %c0_72, %c0_73] : memref<24x33x8xf32, #tpu.memory_space<vmem>>, vector<1x33x8xf32>
    %181 = vector.shape_cast %180 : vector<1x33x8xf32> to vector<33x8xf32>
    %c11 = arith.constant 11 : index
    %c0_74 = arith.constant 0 : index
    %c0_75 = arith.constant 0 : index
    %182 = vector.load %arg4[%c11, %c0_74, %c0_75] : memref<24x33x8xf32, #tpu.memory_space<vmem>>, vector<1x33x8xf32>
    %183 = vector.shape_cast %182 : vector<1x33x8xf32> to vector<33x8xf32>
    %184 = vector.extract_strided_slice %179 {offsets = [0, 0], sizes = [32, 8], strides = [1, 1]} : vector<33x8xf32> to vector<32x8xf32>
    %cst_76 = arith.constant dense<0.000000e+00> : vector<8x8xf32>
    %185 = tpu.matmul %44, %184, %cst_76 {dimension_numbers = #tpu.dot_dimension_numbers<[1], [0], [0], [1], [0, 0, 1, 1], [], []>} : vector<8x32xf32>, vector<32x8xf32>, vector<8x8xf32> -> vector<8x8xf32>
    %186 = vector.extract_strided_slice %179 {offsets = [32, 0], sizes = [1, 8], strides = [1, 1]} : vector<33x8xf32> to vector<1x8xf32>
    %187 = vector.broadcast %186 : vector<1x8xf32> to vector<8x8xf32>
    %188 = arith.addf %185, %187 : vector<8x8xf32>
    %189 = vector.shape_cast %188 : vector<8x8xf32> to vector<1x8x8xf32>
    %190 = vector.extract_strided_slice %181 {offsets = [0, 0], sizes = [32, 8], strides = [1, 1]} : vector<33x8xf32> to vector<32x8xf32>
    %cst_77 = arith.constant dense<0.000000e+00> : vector<8x8xf32>
    %191 = tpu.matmul %44, %190, %cst_77 {dimension_numbers = #tpu.dot_dimension_numbers<[1], [0], [0], [1], [0, 0, 1, 1], [], []>} : vector<8x32xf32>, vector<32x8xf32>, vector<8x8xf32> -> vector<8x8xf32>
    %192 = vector.extract_strided_slice %181 {offsets = [32, 0], sizes = [1, 8], strides = [1, 1]} : vector<33x8xf32> to vector<1x8xf32>
    %193 = vector.broadcast %192 : vector<1x8xf32> to vector<8x8xf32>
    %194 = arith.addf %191, %193 : vector<8x8xf32>
    %195 = vector.shape_cast %194 : vector<8x8xf32> to vector<1x8x8xf32>
    %196 = vector.extract_strided_slice %183 {offsets = [0, 0], sizes = [32, 8], strides = [1, 1]} : vector<33x8xf32> to vector<32x8xf32>
    %cst_78 = arith.constant dense<0.000000e+00> : vector<8x8xf32>
    %197 = tpu.matmul %44, %196, %cst_78 {dimension_numbers = #tpu.dot_dimension_numbers<[1], [0], [0], [1], [0, 0, 1, 1], [], []>} : vector<8x32xf32>, vector<32x8xf32>, vector<8x8xf32> -> vector<8x8xf32>
    %198 = vector.extract_strided_slice %183 {offsets = [32, 0], sizes = [1, 8], strides = [1, 1]} : vector<33x8xf32> to vector<1x8xf32>
    %199 = vector.broadcast %198 : vector<1x8xf32> to vector<8x8xf32>
    %200 = arith.addf %197, %199 : vector<8x8xf32>
    %201 = vector.shape_cast %200 : vector<8x8xf32> to vector<1x8x8xf32>
    "tpu.trace_start"() <{level = 10 : i32, message = "btd,bsd->bts"}> : () -> ()
    %cst_79 = arith.constant dense<0.000000e+00> : vector<1x8x8xf32>
    %202 = tpu.matmul %189, %195, %cst_79 {dimension_numbers = #tpu.dot_dimension_numbers<[2], [2], [1], [1], [0, 0, 0, 1, 1, 1], [0], [0]>} : vector<1x8x8xf32>, vector<1x8x8xf32>, vector<1x8x8xf32> -> vector<1x8x8xf32>
    "tpu.trace_stop"() : () -> ()
    %cst_80 = arith.constant 0.353553385 : f32
    %203 = vector.broadcast %cst_80 : f32 to vector<1x8x8xf32>
    %204 = arith.mulf %202, %203 : vector<1x8x8xf32>
    %205 = vector.broadcast %5 : vector<1x1x8xf32> to vector<1x8x8xf32>
    %206 = arith.addf %204, %205 : vector<1x8x8xf32>
    %cst_81 = arith.constant dense<0xFF800000> : vector<1x8xf32>
    %207 = vector.multi_reduction <maximumf>, %206, %cst_81 [2] : vector<1x8x8xf32> to vector<1x8xf32>
    %208 = vector.shape_cast %207 : vector<1x8xf32> to vector<1x8x1xf32>
    %209 = vector.broadcast %208 : vector<1x8x1xf32> to vector<1x8x8xf32>
    %210 = arith.subf %206, %209 : vector<1x8x8xf32>
    %211 = math.exp %210 : vector<1x8x8xf32>
    %cst_82 = arith.constant dense<0.000000e+00> : vector<1x8xf32>
    %212 = vector.multi_reduction <add>, %211, %cst_82 [2] : vector<1x8x8xf32> to vector<1x8xf32>
    %213 = vector.shape_cast %212 : vector<1x8xf32> to vector<1x8x1xf32>
    %214 = vector.broadcast %213 : vector<1x8x1xf32> to vector<1x8x8xf32>
    %215 = arith.divf %211, %214 : vector<1x8x8xf32>
    "tpu.trace_start"() <{level = 10 : i32, message = "bts,bsd->btd"}> : () -> ()
    %cst_83 = arith.constant dense<0.000000e+00> : vector<1x8x8xf32>
    %216 = tpu.matmul %215, %201, %cst_83 {dimension_numbers = #tpu.dot_dimension_numbers<[2], [1], [1], [2], [0, 0, 0, 1, 1, 2], [0], [0]>} : vector<1x8x8xf32>, vector<1x8x8xf32>, vector<1x8x8xf32> -> vector<1x8x8xf32>
    "tpu.trace_stop"() : () -> ()
    %217 = vector.shape_cast %216 : vector<1x8x8xf32> to vector<8x8xf32>
    %c3_84 = arith.constant 3 : index
    %c0_85 = arith.constant 0 : index
    %c0_86 = arith.constant 0 : index
    %218 = vector.load %arg5[%c3_84, %c0_85, %c0_86] : memref<8x8x32xf32, #tpu.memory_space<vmem>>, vector<1x8x32xf32>
    %219 = vector.shape_cast %218 : vector<1x8x32xf32> to vector<8x32xf32>
    %cst_87 = arith.constant dense<0.000000e+00> : vector<8x32xf32>
    %220 = tpu.matmul %217, %219, %cst_87 {dimension_numbers = #tpu.dot_dimension_numbers<[1], [0], [0], [1], [0, 0, 1, 1], [], []>} : vector<8x8xf32>, vector<8x32xf32>, vector<8x32xf32> -> vector<8x32xf32>
    %221 = arith.addf %177, %220 : vector<8x32xf32>
    %222 = arith.addf %19, %221 : vector<8x32xf32>
    %223 = vector.broadcast %24 : vector<1x32xf32> to vector<8x32xf32>
    %224 = arith.addf %222, %223 : vector<8x32xf32>
    %c0_88 = arith.constant 0 : index
    %c0_89 = arith.constant 0 : index
    %c0_90 = arith.constant 0 : index
    %225 = vector.load %arg6[%c0_88, %c0_89, %c0_90] : memref<2x33x128xf32, #tpu.memory_space<vmem>>, vector<1x33x128xf32>
    %226 = vector.shape_cast %225 : vector<1x33x128xf32> to vector<33x128xf32>
    %c0_91 = arith.constant 0 : index
    %c0_92 = arith.constant 0 : index
    %c0_93 = arith.constant 0 : index
    %227 = vector.load %arg7[%c0_91, %c0_92, %c0_93] : memref<2x129x32xf32, #tpu.memory_space<vmem>>, vector<1x129x32xf32>
    %228 = vector.shape_cast %227 : vector<1x129x32xf32> to vector<129x32xf32>
    %cst_94 = arith.constant dense<0.000000e+00> : vector<8xf32>
    %229 = vector.multi_reduction <add>, %224, %cst_94 [1] : vector<8x32xf32> to vector<8xf32>
    %230 = vector.shape_cast %229 : vector<8xf32> to vector<8x1xf32>
    %cst_95 = arith.constant 3.200000e+01 : f32
    %231 = vector.broadcast %cst_95 : f32 to vector<8x1xf32>
    %232 = arith.divf %230, %231 : vector<8x1xf32>
    %233 = vector.broadcast %232 : vector<8x1xf32> to vector<8x32xf32>
    %234 = arith.subf %224, %233 : vector<8x32xf32>
    %235 = arith.mulf %234, %234 : vector<8x32xf32>
    %cst_96 = arith.constant dense<0.000000e+00> : vector<8xf32>
    %236 = vector.multi_reduction <add>, %235, %cst_96 [1] : vector<8x32xf32> to vector<8xf32>
    %237 = vector.shape_cast %236 : vector<8xf32> to vector<8x1xf32>
    %cst_97 = arith.constant 3.200000e+01 : f32
    %238 = vector.broadcast %cst_97 : f32 to vector<8x1xf32>
    %239 = arith.divf %237, %238 : vector<8x1xf32>
    %cst_98 = arith.constant 9.99999974E-6 : f32
    %240 = vector.broadcast %cst_98 : f32 to vector<8x1xf32>
    %241 = arith.addf %239, %240 : vector<8x1xf32>
    %242 = math.rsqrt %241 : vector<8x1xf32>
    %243 = vector.broadcast %242 : vector<8x1xf32> to vector<8x32xf32>
    %244 = arith.mulf %234, %243 : vector<8x32xf32>
    %245 = vector.broadcast %22 : vector<1x32xf32> to vector<8x32xf32>
    %246 = arith.mulf %244, %245 : vector<8x32xf32>
    %247 = vector.broadcast %23 : vector<1x32xf32> to vector<8x32xf32>
    %248 = arith.addf %246, %247 : vector<8x32xf32>
    %249 = vector.extract_strided_slice %226 {offsets = [0, 0], sizes = [32, 128], strides = [1, 1]} : vector<33x128xf32> to vector<32x128xf32>
    %cst_99 = arith.constant dense<0.000000e+00> : vector<8x128xf32>
    %250 = tpu.matmul %248, %249, %cst_99 {dimension_numbers = #tpu.dot_dimension_numbers<[1], [0], [0], [1], [0, 0, 1, 1], [], []>} : vector<8x32xf32>, vector<32x128xf32>, vector<8x128xf32> -> vector<8x128xf32>
    %251 = vector.extract_strided_slice %226 {offsets = [32, 0], sizes = [1, 128], strides = [1, 1]} : vector<33x128xf32> to vector<1x128xf32>
    %252 = vector.broadcast %251 : vector<1x128xf32> to vector<8x128xf32>
    %253 = arith.addf %250, %252 : vector<8x128xf32>
    %254 = arith.mulf %253, %253 : vector<8x128xf32>
    %255 = arith.mulf %253, %254 : vector<8x128xf32>
    %cst_100 = arith.constant 4.471500e-02 : f32
    %256 = vector.broadcast %cst_100 : f32 to vector<8x128xf32>
    %257 = arith.mulf %256, %255 : vector<8x128xf32>
    %258 = arith.addf %253, %257 : vector<8x128xf32>
    %cst_101 = arith.constant 0.797884583 : f32
    %259 = vector.broadcast %cst_101 : f32 to vector<8x128xf32>
    %260 = arith.mulf %259, %258 : vector<8x128xf32>
    %261 = math.tanh %260 : vector<8x128xf32>
    %cst_102 = arith.constant 1.000000e+00 : f32
    %262 = vector.broadcast %cst_102 : f32 to vector<8x128xf32>
    %263 = arith.addf %262, %261 : vector<8x128xf32>
    %cst_103 = arith.constant 5.000000e-01 : f32
    %264 = vector.broadcast %cst_103 : f32 to vector<8x128xf32>
    %265 = arith.mulf %264, %263 : vector<8x128xf32>
    %266 = arith.mulf %253, %265 : vector<8x128xf32>
    %267 = vector.extract_strided_slice %228 {offsets = [0, 0], sizes = [128, 32], strides = [1, 1]} : vector<129x32xf32> to vector<128x32xf32>
    %cst_104 = arith.constant dense<0.000000e+00> : vector<8x32xf32>
    %268 = tpu.matmul %266, %267, %cst_104 {dimension_numbers = #tpu.dot_dimension_numbers<[1], [0], [0], [1], [0, 0, 1, 1], [], []>} : vector<8x128xf32>, vector<128x32xf32>, vector<8x32xf32> -> vector<8x32xf32>
    %269 = arith.addf %224, %268 : vector<8x32xf32>
    %270 = vector.extract_strided_slice %228 {offsets = [128, 0], sizes = [1, 32], strides = [1, 1]} : vector<129x32xf32> to vector<1x32xf32>
    %271 = vector.broadcast %270 : vector<1x32xf32> to vector<8x32xf32>
    %272 = arith.addf %269, %271 : vector<8x32xf32>
    %273 = vector.extract_strided_slice %0 {offsets = [31, 0], sizes = [1, 32], strides = [1, 1]} : vector<36x32xf32> to vector<1x32xf32>
    %274 = vector.extract_strided_slice %0 {offsets = [32, 0], sizes = [1, 32], strides = [1, 1]} : vector<36x32xf32> to vector<1x32xf32>
    %275 = vector.extract_strided_slice %0 {offsets = [33, 0], sizes = [1, 32], strides = [1, 1]} : vector<36x32xf32> to vector<1x32xf32>
    %276 = vector.extract_strided_slice %0 {offsets = [34, 0], sizes = [1, 32], strides = [1, 1]} : vector<36x32xf32> to vector<1x32xf32>
    %277 = vector.extract_strided_slice %0 {offsets = [35, 0], sizes = [1, 32], strides = [1, 1]} : vector<36x32xf32> to vector<1x32xf32>
    %cst_105 = arith.constant dense<0.000000e+00> : vector<8xf32>
    %278 = vector.multi_reduction <add>, %272, %cst_105 [1] : vector<8x32xf32> to vector<8xf32>
    %279 = vector.shape_cast %278 : vector<8xf32> to vector<8x1xf32>
    %cst_106 = arith.constant 3.200000e+01 : f32
    %280 = vector.broadcast %cst_106 : f32 to vector<8x1xf32>
    %281 = arith.divf %279, %280 : vector<8x1xf32>
    %282 = vector.broadcast %281 : vector<8x1xf32> to vector<8x32xf32>
    %283 = arith.subf %272, %282 : vector<8x32xf32>
    %284 = arith.mulf %283, %283 : vector<8x32xf32>
    %cst_107 = arith.constant dense<0.000000e+00> : vector<8xf32>
    %285 = vector.multi_reduction <add>, %284, %cst_107 [1] : vector<8x32xf32> to vector<8xf32>
    %286 = vector.shape_cast %285 : vector<8xf32> to vector<8x1xf32>
    %cst_108 = arith.constant 3.200000e+01 : f32
    %287 = vector.broadcast %cst_108 : f32 to vector<8x1xf32>
    %288 = arith.divf %286, %287 : vector<8x1xf32>
    %cst_109 = arith.constant 9.99999974E-6 : f32
    %289 = vector.broadcast %cst_109 : f32 to vector<8x1xf32>
    %290 = arith.addf %288, %289 : vector<8x1xf32>
    %291 = math.rsqrt %290 : vector<8x1xf32>
    %292 = vector.broadcast %291 : vector<8x1xf32> to vector<8x32xf32>
    %293 = arith.mulf %283, %292 : vector<8x32xf32>
    %294 = vector.broadcast %273 : vector<1x32xf32> to vector<8x32xf32>
    %295 = arith.mulf %293, %294 : vector<8x32xf32>
    %296 = vector.broadcast %274 : vector<1x32xf32> to vector<8x32xf32>
    %297 = arith.addf %295, %296 : vector<8x32xf32>
    %cst_110 = arith.constant 0.000000e+00 : f32
    %298 = vector.broadcast %cst_110 : f32 to vector<8x32xf32>
    %c12 = arith.constant 12 : index
    %c0_111 = arith.constant 0 : index
    %c0_112 = arith.constant 0 : index
    %299 = vector.load %arg4[%c12, %c0_111, %c0_112] : memref<24x33x8xf32, #tpu.memory_space<vmem>>, vector<1x33x8xf32>
    %300 = vector.shape_cast %299 : vector<1x33x8xf32> to vector<33x8xf32>
    %c16 = arith.constant 16 : index
    %c0_113 = arith.constant 0 : index
    %c0_114 = arith.constant 0 : index
    %301 = vector.load %arg4[%c16, %c0_113, %c0_114] : memref<24x33x8xf32, #tpu.memory_space<vmem>>, vector<1x33x8xf32>
    %302 = vector.shape_cast %301 : vector<1x33x8xf32> to vector<33x8xf32>
    %c20 = arith.constant 20 : index
    %c0_115 = arith.constant 0 : index
    %c0_116 = arith.constant 0 : index
    %303 = vector.load %arg4[%c20, %c0_115, %c0_116] : memref<24x33x8xf32, #tpu.memory_space<vmem>>, vector<1x33x8xf32>
    %304 = vector.shape_cast %303 : vector<1x33x8xf32> to vector<33x8xf32>
    %305 = vector.extract_strided_slice %300 {offsets = [0, 0], sizes = [32, 8], strides = [1, 1]} : vector<33x8xf32> to vector<32x8xf32>
    %cst_117 = arith.constant dense<0.000000e+00> : vector<8x8xf32>
    %306 = tpu.matmul %297, %305, %cst_117 {dimension_numbers = #tpu.dot_dimension_numbers<[1], [0], [0], [1], [0, 0, 1, 1], [], []>} : vector<8x32xf32>, vector<32x8xf32>, vector<8x8xf32> -> vector<8x8xf32>
    %307 = vector.extract_strided_slice %300 {offsets = [32, 0], sizes = [1, 8], strides = [1, 1]} : vector<33x8xf32> to vector<1x8xf32>
    %308 = vector.broadcast %307 : vector<1x8xf32> to vector<8x8xf32>
    %309 = arith.addf %306, %308 : vector<8x8xf32>
    %310 = vector.shape_cast %309 : vector<8x8xf32> to vector<1x8x8xf32>
    %311 = vector.extract_strided_slice %302 {offsets = [0, 0], sizes = [32, 8], strides = [1, 1]} : vector<33x8xf32> to vector<32x8xf32>
    %cst_118 = arith.constant dense<0.000000e+00> : vector<8x8xf32>
    %312 = tpu.matmul %297, %311, %cst_118 {dimension_numbers = #tpu.dot_dimension_numbers<[1], [0], [0], [1], [0, 0, 1, 1], [], []>} : vector<8x32xf32>, vector<32x8xf32>, vector<8x8xf32> -> vector<8x8xf32>
    %313 = vector.extract_strided_slice %302 {offsets = [32, 0], sizes = [1, 8], strides = [1, 1]} : vector<33x8xf32> to vector<1x8xf32>
    %314 = vector.broadcast %313 : vector<1x8xf32> to vector<8x8xf32>
    %315 = arith.addf %312, %314 : vector<8x8xf32>
    %316 = vector.shape_cast %315 : vector<8x8xf32> to vector<1x8x8xf32>
    %317 = vector.extract_strided_slice %304 {offsets = [0, 0], sizes = [32, 8], strides = [1, 1]} : vector<33x8xf32> to vector<32x8xf32>
    %cst_119 = arith.constant dense<0.000000e+00> : vector<8x8xf32>
    %318 = tpu.matmul %297, %317, %cst_119 {dimension_numbers = #tpu.dot_dimension_numbers<[1], [0], [0], [1], [0, 0, 1, 1], [], []>} : vector<8x32xf32>, vector<32x8xf32>, vector<8x8xf32> -> vector<8x8xf32>
    %319 = vector.extract_strided_slice %304 {offsets = [32, 0], sizes = [1, 8], strides = [1, 1]} : vector<33x8xf32> to vector<1x8xf32>
    %320 = vector.broadcast %319 : vector<1x8xf32> to vector<8x8xf32>
    %321 = arith.addf %318, %320 : vector<8x8xf32>
    %322 = vector.shape_cast %321 : vector<8x8xf32> to vector<1x8x8xf32>
    "tpu.trace_start"() <{level = 10 : i32, message = "btd,bsd->bts"}> : () -> ()
    %cst_120 = arith.constant dense<0.000000e+00> : vector<1x8x8xf32>
    %323 = tpu.matmul %310, %316, %cst_120 {dimension_numbers = #tpu.dot_dimension_numbers<[2], [2], [1], [1], [0, 0, 0, 1, 1, 1], [0], [0]>} : vector<1x8x8xf32>, vector<1x8x8xf32>, vector<1x8x8xf32> -> vector<1x8x8xf32>
    "tpu.trace_stop"() : () -> ()
    %cst_121 = arith.constant 0.353553385 : f32
    %324 = vector.broadcast %cst_121 : f32 to vector<1x8x8xf32>
    %325 = arith.mulf %323, %324 : vector<1x8x8xf32>
    %326 = vector.broadcast %5 : vector<1x1x8xf32> to vector<1x8x8xf32>
    %327 = arith.addf %325, %326 : vector<1x8x8xf32>
    %cst_122 = arith.constant dense<0xFF800000> : vector<1x8xf32>
    %328 = vector.multi_reduction <maximumf>, %327, %cst_122 [2] : vector<1x8x8xf32> to vector<1x8xf32>
    %329 = vector.shape_cast %328 : vector<1x8xf32> to vector<1x8x1xf32>
    %330 = vector.broadcast %329 : vector<1x8x1xf32> to vector<1x8x8xf32>
    %331 = arith.subf %327, %330 : vector<1x8x8xf32>
    %332 = math.exp %331 : vector<1x8x8xf32>
    %cst_123 = arith.constant dense<0.000000e+00> : vector<1x8xf32>
    %333 = vector.multi_reduction <add>, %332, %cst_123 [2] : vector<1x8x8xf32> to vector<1x8xf32>
    %334 = vector.shape_cast %333 : vector<1x8xf32> to vector<1x8x1xf32>
    %335 = vector.broadcast %334 : vector<1x8x1xf32> to vector<1x8x8xf32>
    %336 = arith.divf %332, %335 : vector<1x8x8xf32>
    "tpu.trace_start"() <{level = 10 : i32, message = "bts,bsd->btd"}> : () -> ()
    %cst_124 = arith.constant dense<0.000000e+00> : vector<1x8x8xf32>
    %337 = tpu.matmul %336, %322, %cst_124 {dimension_numbers = #tpu.dot_dimension_numbers<[2], [1], [1], [2], [0, 0, 0, 1, 1, 2], [0], [0]>} : vector<1x8x8xf32>, vector<1x8x8xf32>, vector<1x8x8xf32> -> vector<1x8x8xf32>
    "tpu.trace_stop"() : () -> ()
    %338 = vector.shape_cast %337 : vector<1x8x8xf32> to vector<8x8xf32>
    %c4_125 = arith.constant 4 : index
    %c0_126 = arith.constant 0 : index
    %c0_127 = arith.constant 0 : index
    %339 = vector.load %arg5[%c4_125, %c0_126, %c0_127] : memref<8x8x32xf32, #tpu.memory_space<vmem>>, vector<1x8x32xf32>
    %340 = vector.shape_cast %339 : vector<1x8x32xf32> to vector<8x32xf32>
    %cst_128 = arith.constant dense<0.000000e+00> : vector<8x32xf32>
    %341 = tpu.matmul %338, %340, %cst_128 {dimension_numbers = #tpu.dot_dimension_numbers<[1], [0], [0], [1], [0, 0, 1, 1], [], []>} : vector<8x8xf32>, vector<8x32xf32>, vector<8x32xf32> -> vector<8x32xf32>
    %342 = arith.addf %298, %341 : vector<8x32xf32>
    %c13 = arith.constant 13 : index
    %c0_129 = arith.constant 0 : index
    %c0_130 = arith.constant 0 : index
    %343 = vector.load %arg4[%c13, %c0_129, %c0_130] : memref<24x33x8xf32, #tpu.memory_space<vmem>>, vector<1x33x8xf32>
    %344 = vector.shape_cast %343 : vector<1x33x8xf32> to vector<33x8xf32>
    %c17 = arith.constant 17 : index
    %c0_131 = arith.constant 0 : index
    %c0_132 = arith.constant 0 : index
    %345 = vector.load %arg4[%c17, %c0_131, %c0_132] : memref<24x33x8xf32, #tpu.memory_space<vmem>>, vector<1x33x8xf32>
    %346 = vector.shape_cast %345 : vector<1x33x8xf32> to vector<33x8xf32>
    %c21 = arith.constant 21 : index
    %c0_133 = arith.constant 0 : index
    %c0_134 = arith.constant 0 : index
    %347 = vector.load %arg4[%c21, %c0_133, %c0_134] : memref<24x33x8xf32, #tpu.memory_space<vmem>>, vector<1x33x8xf32>
    %348 = vector.shape_cast %347 : vector<1x33x8xf32> to vector<33x8xf32>
    %349 = vector.extract_strided_slice %344 {offsets = [0, 0], sizes = [32, 8], strides = [1, 1]} : vector<33x8xf32> to vector<32x8xf32>
    %cst_135 = arith.constant dense<0.000000e+00> : vector<8x8xf32>
    %350 = tpu.matmul %297, %349, %cst_135 {dimension_numbers = #tpu.dot_dimension_numbers<[1], [0], [0], [1], [0, 0, 1, 1], [], []>} : vector<8x32xf32>, vector<32x8xf32>, vector<8x8xf32> -> vector<8x8xf32>
    %351 = vector.extract_strided_slice %344 {offsets = [32, 0], sizes = [1, 8], strides = [1, 1]} : vector<33x8xf32> to vector<1x8xf32>
    %352 = vector.broadcast %351 : vector<1x8xf32> to vector<8x8xf32>
    %353 = arith.addf %350, %352 : vector<8x8xf32>
    %354 = vector.shape_cast %353 : vector<8x8xf32> to vector<1x8x8xf32>
    %355 = vector.extract_strided_slice %346 {offsets = [0, 0], sizes = [32, 8], strides = [1, 1]} : vector<33x8xf32> to vector<32x8xf32>
    %cst_136 = arith.constant dense<0.000000e+00> : vector<8x8xf32>
    %356 = tpu.matmul %297, %355, %cst_136 {dimension_numbers = #tpu.dot_dimension_numbers<[1], [0], [0], [1], [0, 0, 1, 1], [], []>} : vector<8x32xf32>, vector<32x8xf32>, vector<8x8xf32> -> vector<8x8xf32>
    %357 = vector.extract_strided_slice %346 {offsets = [32, 0], sizes = [1, 8], strides = [1, 1]} : vector<33x8xf32> to vector<1x8xf32>
    %358 = vector.broadcast %357 : vector<1x8xf32> to vector<8x8xf32>
    %359 = arith.addf %356, %358 : vector<8x8xf32>
    %360 = vector.shape_cast %359 : vector<8x8xf32> to vector<1x8x8xf32>
    %361 = vector.extract_strided_slice %348 {offsets = [0, 0], sizes = [32, 8], strides = [1, 1]} : vector<33x8xf32> to vector<32x8xf32>
    %cst_137 = arith.constant dense<0.000000e+00> : vector<8x8xf32>
    %362 = tpu.matmul %297, %361, %cst_137 {dimension_numbers = #tpu.dot_dimension_numbers<[1], [0], [0], [1], [0, 0, 1, 1], [], []>} : vector<8x32xf32>, vector<32x8xf32>, vector<8x8xf32> -> vector<8x8xf32>
    %363 = vector.extract_strided_slice %348 {offsets = [32, 0], sizes = [1, 8], strides = [1, 1]} : vector<33x8xf32> to vector<1x8xf32>
    %364 = vector.broadcast %363 : vector<1x8xf32> to vector<8x8xf32>
    %365 = arith.addf %362, %364 : vector<8x8xf32>
    %366 = vector.shape_cast %365 : vector<8x8xf32> to vector<1x8x8xf32>
    "tpu.trace_start"() <{level = 10 : i32, message = "btd,bsd->bts"}> : () -> ()
    %cst_138 = arith.constant dense<0.000000e+00> : vector<1x8x8xf32>
    %367 = tpu.matmul %354, %360, %cst_138 {dimension_numbers = #tpu.dot_dimension_numbers<[2], [2], [1], [1], [0, 0, 0, 1, 1, 1], [0], [0]>} : vector<1x8x8xf32>, vector<1x8x8xf32>, vector<1x8x8xf32> -> vector<1x8x8xf32>
    "tpu.trace_stop"() : () -> ()
    %cst_139 = arith.constant 0.353553385 : f32
    %368 = vector.broadcast %cst_139 : f32 to vector<1x8x8xf32>
    %369 = arith.mulf %367, %368 : vector<1x8x8xf32>
    %370 = vector.broadcast %5 : vector<1x1x8xf32> to vector<1x8x8xf32>
    %371 = arith.addf %369, %370 : vector<1x8x8xf32>
    %cst_140 = arith.constant dense<0xFF800000> : vector<1x8xf32>
    %372 = vector.multi_reduction <maximumf>, %371, %cst_140 [2] : vector<1x8x8xf32> to vector<1x8xf32>
    %373 = vector.shape_cast %372 : vector<1x8xf32> to vector<1x8x1xf32>
    %374 = vector.broadcast %373 : vector<1x8x1xf32> to vector<1x8x8xf32>
    %375 = arith.subf %371, %374 : vector<1x8x8xf32>
    %376 = math.exp %375 : vector<1x8x8xf32>
    %cst_141 = arith.constant dense<0.000000e+00> : vector<1x8xf32>
    %377 = vector.multi_reduction <add>, %376, %cst_141 [2] : vector<1x8x8xf32> to vector<1x8xf32>
    %378 = vector.shape_cast %377 : vector<1x8xf32> to vector<1x8x1xf32>
    %379 = vector.broadcast %378 : vector<1x8x1xf32> to vector<1x8x8xf32>
    %380 = arith.divf %376, %379 : vector<1x8x8xf32>
    "tpu.trace_start"() <{level = 10 : i32, message = "bts,bsd->btd"}> : () -> ()
    %cst_142 = arith.constant dense<0.000000e+00> : vector<1x8x8xf32>
    %381 = tpu.matmul %380, %366, %cst_142 {dimension_numbers = #tpu.dot_dimension_numbers<[2], [1], [1], [2], [0, 0, 0, 1, 1, 2], [0], [0]>} : vector<1x8x8xf32>, vector<1x8x8xf32>, vector<1x8x8xf32> -> vector<1x8x8xf32>
    "tpu.trace_stop"() : () -> ()
    %382 = vector.shape_cast %381 : vector<1x8x8xf32> to vector<8x8xf32>
    %c5_143 = arith.constant 5 : index
    %c0_144 = arith.constant 0 : index
    %c0_145 = arith.constant 0 : index
    %383 = vector.load %arg5[%c5_143, %c0_144, %c0_145] : memref<8x8x32xf32, #tpu.memory_space<vmem>>, vector<1x8x32xf32>
    %384 = vector.shape_cast %383 : vector<1x8x32xf32> to vector<8x32xf32>
    %cst_146 = arith.constant dense<0.000000e+00> : vector<8x32xf32>
    %385 = tpu.matmul %382, %384, %cst_146 {dimension_numbers = #tpu.dot_dimension_numbers<[1], [0], [0], [1], [0, 0, 1, 1], [], []>} : vector<8x8xf32>, vector<8x32xf32>, vector<8x32xf32> -> vector<8x32xf32>
    %386 = arith.addf %342, %385 : vector<8x32xf32>
    %c14 = arith.constant 14 : index
    %c0_147 = arith.constant 0 : index
    %c0_148 = arith.constant 0 : index
    %387 = vector.load %arg4[%c14, %c0_147, %c0_148] : memref<24x33x8xf32, #tpu.memory_space<vmem>>, vector<1x33x8xf32>
    %388 = vector.shape_cast %387 : vector<1x33x8xf32> to vector<33x8xf32>
    %c18 = arith.constant 18 : index
    %c0_149 = arith.constant 0 : index
    %c0_150 = arith.constant 0 : index
    %389 = vector.load %arg4[%c18, %c0_149, %c0_150] : memref<24x33x8xf32, #tpu.memory_space<vmem>>, vector<1x33x8xf32>
    %390 = vector.shape_cast %389 : vector<1x33x8xf32> to vector<33x8xf32>
    %c22 = arith.constant 22 : index
    %c0_151 = arith.constant 0 : index
    %c0_152 = arith.constant 0 : index
    %391 = vector.load %arg4[%c22, %c0_151, %c0_152] : memref<24x33x8xf32, #tpu.memory_space<vmem>>, vector<1x33x8xf32>
    %392 = vector.shape_cast %391 : vector<1x33x8xf32> to vector<33x8xf32>
    %393 = vector.extract_strided_slice %388 {offsets = [0, 0], sizes = [32, 8], strides = [1, 1]} : vector<33x8xf32> to vector<32x8xf32>
    %cst_153 = arith.constant dense<0.000000e+00> : vector<8x8xf32>
    %394 = tpu.matmul %297, %393, %cst_153 {dimension_numbers = #tpu.dot_dimension_numbers<[1], [0], [0], [1], [0, 0, 1, 1], [], []>} : vector<8x32xf32>, vector<32x8xf32>, vector<8x8xf32> -> vector<8x8xf32>
    %395 = vector.extract_strided_slice %388 {offsets = [32, 0], sizes = [1, 8], strides = [1, 1]} : vector<33x8xf32> to vector<1x8xf32>
    %396 = vector.broadcast %395 : vector<1x8xf32> to vector<8x8xf32>
    %397 = arith.addf %394, %396 : vector<8x8xf32>
    %398 = vector.shape_cast %397 : vector<8x8xf32> to vector<1x8x8xf32>
    %399 = vector.extract_strided_slice %390 {offsets = [0, 0], sizes = [32, 8], strides = [1, 1]} : vector<33x8xf32> to vector<32x8xf32>
    %cst_154 = arith.constant dense<0.000000e+00> : vector<8x8xf32>
    %400 = tpu.matmul %297, %399, %cst_154 {dimension_numbers = #tpu.dot_dimension_numbers<[1], [0], [0], [1], [0, 0, 1, 1], [], []>} : vector<8x32xf32>, vector<32x8xf32>, vector<8x8xf32> -> vector<8x8xf32>
    %401 = vector.extract_strided_slice %390 {offsets = [32, 0], sizes = [1, 8], strides = [1, 1]} : vector<33x8xf32> to vector<1x8xf32>
    %402 = vector.broadcast %401 : vector<1x8xf32> to vector<8x8xf32>
    %403 = arith.addf %400, %402 : vector<8x8xf32>
    %404 = vector.shape_cast %403 : vector<8x8xf32> to vector<1x8x8xf32>
    %405 = vector.extract_strided_slice %392 {offsets = [0, 0], sizes = [32, 8], strides = [1, 1]} : vector<33x8xf32> to vector<32x8xf32>
    %cst_155 = arith.constant dense<0.000000e+00> : vector<8x8xf32>
    %406 = tpu.matmul %297, %405, %cst_155 {dimension_numbers = #tpu.dot_dimension_numbers<[1], [0], [0], [1], [0, 0, 1, 1], [], []>} : vector<8x32xf32>, vector<32x8xf32>, vector<8x8xf32> -> vector<8x8xf32>
    %407 = vector.extract_strided_slice %392 {offsets = [32, 0], sizes = [1, 8], strides = [1, 1]} : vector<33x8xf32> to vector<1x8xf32>
    %408 = vector.broadcast %407 : vector<1x8xf32> to vector<8x8xf32>
    %409 = arith.addf %406, %408 : vector<8x8xf32>
    %410 = vector.shape_cast %409 : vector<8x8xf32> to vector<1x8x8xf32>
    "tpu.trace_start"() <{level = 10 : i32, message = "btd,bsd->bts"}> : () -> ()
    %cst_156 = arith.constant dense<0.000000e+00> : vector<1x8x8xf32>
    %411 = tpu.matmul %398, %404, %cst_156 {dimension_numbers = #tpu.dot_dimension_numbers<[2], [2], [1], [1], [0, 0, 0, 1, 1, 1], [0], [0]>} : vector<1x8x8xf32>, vector<1x8x8xf32>, vector<1x8x8xf32> -> vector<1x8x8xf32>
    "tpu.trace_stop"() : () -> ()
    %cst_157 = arith.constant 0.353553385 : f32
    %412 = vector.broadcast %cst_157 : f32 to vector<1x8x8xf32>
    %413 = arith.mulf %411, %412 : vector<1x8x8xf32>
    %414 = vector.broadcast %5 : vector<1x1x8xf32> to vector<1x8x8xf32>
    %415 = arith.addf %413, %414 : vector<1x8x8xf32>
    %cst_158 = arith.constant dense<0xFF800000> : vector<1x8xf32>
    %416 = vector.multi_reduction <maximumf>, %415, %cst_158 [2] : vector<1x8x8xf32> to vector<1x8xf32>
    %417 = vector.shape_cast %416 : vector<1x8xf32> to vector<1x8x1xf32>
    %418 = vector.broadcast %417 : vector<1x8x1xf32> to vector<1x8x8xf32>
    %419 = arith.subf %415, %418 : vector<1x8x8xf32>
    %420 = math.exp %419 : vector<1x8x8xf32>
    %cst_159 = arith.constant dense<0.000000e+00> : vector<1x8xf32>
    %421 = vector.multi_reduction <add>, %420, %cst_159 [2] : vector<1x8x8xf32> to vector<1x8xf32>
    %422 = vector.shape_cast %421 : vector<1x8xf32> to vector<1x8x1xf32>
    %423 = vector.broadcast %422 : vector<1x8x1xf32> to vector<1x8x8xf32>
    %424 = arith.divf %420, %423 : vector<1x8x8xf32>
    "tpu.trace_start"() <{level = 10 : i32, message = "bts,bsd->btd"}> : () -> ()
    %cst_160 = arith.constant dense<0.000000e+00> : vector<1x8x8xf32>
    %425 = tpu.matmul %424, %410, %cst_160 {dimension_numbers = #tpu.dot_dimension_numbers<[2], [1], [1], [2], [0, 0, 0, 1, 1, 2], [0], [0]>} : vector<1x8x8xf32>, vector<1x8x8xf32>, vector<1x8x8xf32> -> vector<1x8x8xf32>
    "tpu.trace_stop"() : () -> ()
    %426 = vector.shape_cast %425 : vector<1x8x8xf32> to vector<8x8xf32>
    %c6_161 = arith.constant 6 : index
    %c0_162 = arith.constant 0 : index
    %c0_163 = arith.constant 0 : index
    %427 = vector.load %arg5[%c6_161, %c0_162, %c0_163] : memref<8x8x32xf32, #tpu.memory_space<vmem>>, vector<1x8x32xf32>
    %428 = vector.shape_cast %427 : vector<1x8x32xf32> to vector<8x32xf32>
    %cst_164 = arith.constant dense<0.000000e+00> : vector<8x32xf32>
    %429 = tpu.matmul %426, %428, %cst_164 {dimension_numbers = #tpu.dot_dimension_numbers<[1], [0], [0], [1], [0, 0, 1, 1], [], []>} : vector<8x8xf32>, vector<8x32xf32>, vector<8x32xf32> -> vector<8x32xf32>
    %430 = arith.addf %386, %429 : vector<8x32xf32>
    %c15 = arith.constant 15 : index
    %c0_165 = arith.constant 0 : index
    %c0_166 = arith.constant 0 : index
    %431 = vector.load %arg4[%c15, %c0_165, %c0_166] : memref<24x33x8xf32, #tpu.memory_space<vmem>>, vector<1x33x8xf32>
    %432 = vector.shape_cast %431 : vector<1x33x8xf32> to vector<33x8xf32>
    %c19 = arith.constant 19 : index
    %c0_167 = arith.constant 0 : index
    %c0_168 = arith.constant 0 : index
    %433 = vector.load %arg4[%c19, %c0_167, %c0_168] : memref<24x33x8xf32, #tpu.memory_space<vmem>>, vector<1x33x8xf32>
    %434 = vector.shape_cast %433 : vector<1x33x8xf32> to vector<33x8xf32>
    %c23 = arith.constant 23 : index
    %c0_169 = arith.constant 0 : index
    %c0_170 = arith.constant 0 : index
    %435 = vector.load %arg4[%c23, %c0_169, %c0_170] : memref<24x33x8xf32, #tpu.memory_space<vmem>>, vector<1x33x8xf32>
    %436 = vector.shape_cast %435 : vector<1x33x8xf32> to vector<33x8xf32>
    %437 = vector.extract_strided_slice %432 {offsets = [0, 0], sizes = [32, 8], strides = [1, 1]} : vector<33x8xf32> to vector<32x8xf32>
    %cst_171 = arith.constant dense<0.000000e+00> : vector<8x8xf32>
    %438 = tpu.matmul %297, %437, %cst_171 {dimension_numbers = #tpu.dot_dimension_numbers<[1], [0], [0], [1], [0, 0, 1, 1], [], []>} : vector<8x32xf32>, vector<32x8xf32>, vector<8x8xf32> -> vector<8x8xf32>
    %439 = vector.extract_strided_slice %432 {offsets = [32, 0], sizes = [1, 8], strides = [1, 1]} : vector<33x8xf32> to vector<1x8xf32>
    %440 = vector.broadcast %439 : vector<1x8xf32> to vector<8x8xf32>
    %441 = arith.addf %438, %440 : vector<8x8xf32>
    %442 = vector.shape_cast %441 : vector<8x8xf32> to vector<1x8x8xf32>
    %443 = vector.extract_strided_slice %434 {offsets = [0, 0], sizes = [32, 8], strides = [1, 1]} : vector<33x8xf32> to vector<32x8xf32>
    %cst_172 = arith.constant dense<0.000000e+00> : vector<8x8xf32>
    %444 = tpu.matmul %297, %443, %cst_172 {dimension_numbers = #tpu.dot_dimension_numbers<[1], [0], [0], [1], [0, 0, 1, 1], [], []>} : vector<8x32xf32>, vector<32x8xf32>, vector<8x8xf32> -> vector<8x8xf32>
    %445 = vector.extract_strided_slice %434 {offsets = [32, 0], sizes = [1, 8], strides = [1, 1]} : vector<33x8xf32> to vector<1x8xf32>
    %446 = vector.broadcast %445 : vector<1x8xf32> to vector<8x8xf32>
    %447 = arith.addf %444, %446 : vector<8x8xf32>
    %448 = vector.shape_cast %447 : vector<8x8xf32> to vector<1x8x8xf32>
    %449 = vector.extract_strided_slice %436 {offsets = [0, 0], sizes = [32, 8], strides = [1, 1]} : vector<33x8xf32> to vector<32x8xf32>
    %cst_173 = arith.constant dense<0.000000e+00> : vector<8x8xf32>
    %450 = tpu.matmul %297, %449, %cst_173 {dimension_numbers = #tpu.dot_dimension_numbers<[1], [0], [0], [1], [0, 0, 1, 1], [], []>} : vector<8x32xf32>, vector<32x8xf32>, vector<8x8xf32> -> vector<8x8xf32>
    %451 = vector.extract_strided_slice %436 {offsets = [32, 0], sizes = [1, 8], strides = [1, 1]} : vector<33x8xf32> to vector<1x8xf32>
    %452 = vector.broadcast %451 : vector<1x8xf32> to vector<8x8xf32>
    %453 = arith.addf %450, %452 : vector<8x8xf32>
    %454 = vector.shape_cast %453 : vector<8x8xf32> to vector<1x8x8xf32>
    "tpu.trace_start"() <{level = 10 : i32, message = "btd,bsd->bts"}> : () -> ()
    %cst_174 = arith.constant dense<0.000000e+00> : vector<1x8x8xf32>
    %455 = tpu.matmul %442, %448, %cst_174 {dimension_numbers = #tpu.dot_dimension_numbers<[2], [2], [1], [1], [0, 0, 0, 1, 1, 1], [0], [0]>} : vector<1x8x8xf32>, vector<1x8x8xf32>, vector<1x8x8xf32> -> vector<1x8x8xf32>
    "tpu.trace_stop"() : () -> ()
    %cst_175 = arith.constant 0.353553385 : f32
    %456 = vector.broadcast %cst_175 : f32 to vector<1x8x8xf32>
    %457 = arith.mulf %455, %456 : vector<1x8x8xf32>
    %458 = vector.broadcast %5 : vector<1x1x8xf32> to vector<1x8x8xf32>
    %459 = arith.addf %457, %458 : vector<1x8x8xf32>
    %cst_176 = arith.constant dense<0xFF800000> : vector<1x8xf32>
    %460 = vector.multi_reduction <maximumf>, %459, %cst_176 [2] : vector<1x8x8xf32> to vector<1x8xf32>
    %461 = vector.shape_cast %460 : vector<1x8xf32> to vector<1x8x1xf32>
    %462 = vector.broadcast %461 : vector<1x8x1xf32> to vector<1x8x8xf32>
    %463 = arith.subf %459, %462 : vector<1x8x8xf32>
    %464 = math.exp %463 : vector<1x8x8xf32>
    %cst_177 = arith.constant dense<0.000000e+00> : vector<1x8xf32>
    %465 = vector.multi_reduction <add>, %464, %cst_177 [2] : vector<1x8x8xf32> to vector<1x8xf32>
    %466 = vector.shape_cast %465 : vector<1x8xf32> to vector<1x8x1xf32>
    %467 = vector.broadcast %466 : vector<1x8x1xf32> to vector<1x8x8xf32>
    %468 = arith.divf %464, %467 : vector<1x8x8xf32>
    "tpu.trace_start"() <{level = 10 : i32, message = "bts,bsd->btd"}> : () -> ()
    %cst_178 = arith.constant dense<0.000000e+00> : vector<1x8x8xf32>
    %469 = tpu.matmul %468, %454, %cst_178 {dimension_numbers = #tpu.dot_dimension_numbers<[2], [1], [1], [2], [0, 0, 0, 1, 1, 2], [0], [0]>} : vector<1x8x8xf32>, vector<1x8x8xf32>, vector<1x8x8xf32> -> vector<1x8x8xf32>
    "tpu.trace_stop"() : () -> ()
    %470 = vector.shape_cast %469 : vector<1x8x8xf32> to vector<8x8xf32>
    %c7_179 = arith.constant 7 : index
    %c0_180 = arith.constant 0 : index
    %c0_181 = arith.constant 0 : index
    %471 = vector.load %arg5[%c7_179, %c0_180, %c0_181] : memref<8x8x32xf32, #tpu.memory_space<vmem>>, vector<1x8x32xf32>
    %472 = vector.shape_cast %471 : vector<1x8x32xf32> to vector<8x32xf32>
    %cst_182 = arith.constant dense<0.000000e+00> : vector<8x32xf32>
    %473 = tpu.matmul %470, %472, %cst_182 {dimension_numbers = #tpu.dot_dimension_numbers<[1], [0], [0], [1], [0, 0, 1, 1], [], []>} : vector<8x8xf32>, vector<8x32xf32>, vector<8x32xf32> -> vector<8x32xf32>
    %474 = arith.addf %430, %473 : vector<8x32xf32>
    %475 = arith.addf %272, %474 : vector<8x32xf32>
    %476 = vector.broadcast %277 : vector<1x32xf32> to vector<8x32xf32>
    %477 = arith.addf %475, %476 : vector<8x32xf32>
    %c1_183 = arith.constant 1 : index
    %c0_184 = arith.constant 0 : index
    %c0_185 = arith.constant 0 : index
    %478 = vector.load %arg6[%c1_183, %c0_184, %c0_185] : memref<2x33x128xf32, #tpu.memory_space<vmem>>, vector<1x33x128xf32>
    %479 = vector.shape_cast %478 : vector<1x33x128xf32> to vector<33x128xf32>
    %c1_186 = arith.constant 1 : index
    %c0_187 = arith.constant 0 : index
    %c0_188 = arith.constant 0 : index
    %480 = vector.load %arg7[%c1_186, %c0_187, %c0_188] : memref<2x129x32xf32, #tpu.memory_space<vmem>>, vector<1x129x32xf32>
    %481 = vector.shape_cast %480 : vector<1x129x32xf32> to vector<129x32xf32>
    %cst_189 = arith.constant dense<0.000000e+00> : vector<8xf32>
    %482 = vector.multi_reduction <add>, %477, %cst_189 [1] : vector<8x32xf32> to vector<8xf32>
    %483 = vector.shape_cast %482 : vector<8xf32> to vector<8x1xf32>
    %cst_190 = arith.constant 3.200000e+01 : f32
    %484 = vector.broadcast %cst_190 : f32 to vector<8x1xf32>
    %485 = arith.divf %483, %484 : vector<8x1xf32>
    %486 = vector.broadcast %485 : vector<8x1xf32> to vector<8x32xf32>
    %487 = arith.subf %477, %486 : vector<8x32xf32>
    %488 = arith.mulf %487, %487 : vector<8x32xf32>
    %cst_191 = arith.constant dense<0.000000e+00> : vector<8xf32>
    %489 = vector.multi_reduction <add>, %488, %cst_191 [1] : vector<8x32xf32> to vector<8xf32>
    %490 = vector.shape_cast %489 : vector<8xf32> to vector<8x1xf32>
    %cst_192 = arith.constant 3.200000e+01 : f32
    %491 = vector.broadcast %cst_192 : f32 to vector<8x1xf32>
    %492 = arith.divf %490, %491 : vector<8x1xf32>
    %cst_193 = arith.constant 9.99999974E-6 : f32
    %493 = vector.broadcast %cst_193 : f32 to vector<8x1xf32>
    %494 = arith.addf %492, %493 : vector<8x1xf32>
    %495 = math.rsqrt %494 : vector<8x1xf32>
    %496 = vector.broadcast %495 : vector<8x1xf32> to vector<8x32xf32>
    %497 = arith.mulf %487, %496 : vector<8x32xf32>
    %498 = vector.broadcast %275 : vector<1x32xf32> to vector<8x32xf32>
    %499 = arith.mulf %497, %498 : vector<8x32xf32>
    %500 = vector.broadcast %276 : vector<1x32xf32> to vector<8x32xf32>
    %501 = arith.addf %499, %500 : vector<8x32xf32>
    %502 = vector.extract_strided_slice %479 {offsets = [0, 0], sizes = [32, 128], strides = [1, 1]} : vector<33x128xf32> to vector<32x128xf32>
    %cst_194 = arith.constant dense<0.000000e+00> : vector<8x128xf32>
    %503 = tpu.matmul %501, %502, %cst_194 {dimension_numbers = #tpu.dot_dimension_numbers<[1], [0], [0], [1], [0, 0, 1, 1], [], []>} : vector<8x32xf32>, vector<32x128xf32>, vector<8x128xf32> -> vector<8x128xf32>
    %504 = vector.extract_strided_slice %479 {offsets = [32, 0], sizes = [1, 128], strides = [1, 1]} : vector<33x128xf32> to vector<1x128xf32>
    %505 = vector.broadcast %504 : vector<1x128xf32> to vector<8x128xf32>
    %506 = arith.addf %503, %505 : vector<8x128xf32>
    %507 = arith.mulf %506, %506 : vector<8x128xf32>
    %508 = arith.mulf %506, %507 : vector<8x128xf32>
    %cst_195 = arith.constant 4.471500e-02 : f32
    %509 = vector.broadcast %cst_195 : f32 to vector<8x128xf32>
    %510 = arith.mulf %509, %508 : vector<8x128xf32>
    %511 = arith.addf %506, %510 : vector<8x128xf32>
    %cst_196 = arith.constant 0.797884583 : f32
    %512 = vector.broadcast %cst_196 : f32 to vector<8x128xf32>
    %513 = arith.mulf %512, %511 : vector<8x128xf32>
    %514 = math.tanh %513 : vector<8x128xf32>
    %cst_197 = arith.constant 1.000000e+00 : f32
    %515 = vector.broadcast %cst_197 : f32 to vector<8x128xf32>
    %516 = arith.addf %515, %514 : vector<8x128xf32>
    %cst_198 = arith.constant 5.000000e-01 : f32
    %517 = vector.broadcast %cst_198 : f32 to vector<8x128xf32>
    %518 = arith.mulf %517, %516 : vector<8x128xf32>
    %519 = arith.mulf %506, %518 : vector<8x128xf32>
    %520 = vector.extract_strided_slice %481 {offsets = [0, 0], sizes = [128, 32], strides = [1, 1]} : vector<129x32xf32> to vector<128x32xf32>
    %cst_199 = arith.constant dense<0.000000e+00> : vector<8x32xf32>
    %521 = tpu.matmul %519, %520, %cst_199 {dimension_numbers = #tpu.dot_dimension_numbers<[1], [0], [0], [1], [0, 0, 1, 1], [], []>} : vector<8x128xf32>, vector<128x32xf32>, vector<8x32xf32> -> vector<8x32xf32>
    %522 = arith.addf %477, %521 : vector<8x32xf32>
    %523 = vector.extract_strided_slice %481 {offsets = [128, 0], sizes = [1, 32], strides = [1, 1]} : vector<129x32xf32> to vector<1x32xf32>
    %524 = vector.broadcast %523 : vector<1x32xf32> to vector<8x32xf32>
    %525 = arith.addf %522, %524 : vector<8x32xf32>
    %526 = vector.extract_strided_slice %0 {offsets = [24, 0], sizes = [1, 32], strides = [1, 1]} : vector<36x32xf32> to vector<1x32xf32>
    %527 = vector.extract_strided_slice %0 {offsets = [25, 0], sizes = [1, 32], strides = [1, 1]} : vector<36x32xf32> to vector<1x32xf32>
    %cst_200 = arith.constant dense<0.000000e+00> : vector<8xf32>
    %528 = vector.multi_reduction <add>, %525, %cst_200 [1] : vector<8x32xf32> to vector<8xf32>
    %529 = vector.shape_cast %528 : vector<8xf32> to vector<8x1xf32>
    %cst_201 = arith.constant 3.200000e+01 : f32
    %530 = vector.broadcast %cst_201 : f32 to vector<8x1xf32>
    %531 = arith.divf %529, %530 : vector<8x1xf32>
    %532 = vector.broadcast %531 : vector<8x1xf32> to vector<8x32xf32>
    %533 = arith.subf %525, %532 : vector<8x32xf32>
    %534 = arith.mulf %533, %533 : vector<8x32xf32>
    %cst_202 = arith.constant dense<0.000000e+00> : vector<8xf32>
    %535 = vector.multi_reduction <add>, %534, %cst_202 [1] : vector<8x32xf32> to vector<8xf32>
    %536 = vector.shape_cast %535 : vector<8xf32> to vector<8x1xf32>
    %cst_203 = arith.constant 3.200000e+01 : f32
    %537 = vector.broadcast %cst_203 : f32 to vector<8x1xf32>
    %538 = arith.divf %536, %537 : vector<8x1xf32>
    %cst_204 = arith.constant 9.99999974E-6 : f32
    %539 = vector.broadcast %cst_204 : f32 to vector<8x1xf32>
    %540 = arith.addf %538, %539 : vector<8x1xf32>
    %541 = math.rsqrt %540 : vector<8x1xf32>
    %542 = vector.broadcast %541 : vector<8x1xf32> to vector<8x32xf32>
    %543 = arith.mulf %533, %542 : vector<8x32xf32>
    %544 = vector.broadcast %526 : vector<1x32xf32> to vector<8x32xf32>
    %545 = arith.mulf %543, %544 : vector<8x32xf32>
    %546 = vector.broadcast %527 : vector<1x32xf32> to vector<8x32xf32>
    %547 = arith.addf %545, %546 : vector<8x32xf32>
    %548 = vector.shape_cast %547 : vector<8x32xf32> to vector<1x8x32xf32>
    "tpu.trace_start"() <{level = 10 : i32, message = "bqt,btc->bqc"}> : () -> ()
    %cst_205 = arith.constant dense<0.000000e+00> : vector<1x1x32xf32>
    %549 = tpu.matmul %1, %548, %cst_205 {dimension_numbers = #tpu.dot_dimension_numbers<[2], [1], [1], [2], [0, 0, 0, 1, 1, 2], [0], [0]>} : vector<1x1x8xf32>, vector<1x8x32xf32>, vector<1x1x32xf32> -> vector<1x1x32xf32>
    "tpu.trace_stop"() : () -> ()
    %cst_206 = arith.constant dense<0.000000e+00> : vector<1x1xf32>
    %550 = vector.multi_reduction <add>, %1, %cst_206 [2] : vector<1x1x8xf32> to vector<1x1xf32>
    %551 = vector.shape_cast %550 : vector<1x1xf32> to vector<1x1x1xf32>
    %cst_207 = arith.constant 9.99999971E-10 : f32
    %552 = vector.broadcast %cst_207 : f32 to vector<1x1x1xf32>
    %553 = arith.maximumf %551, %552 : vector<1x1x1xf32>
    %554 = tpu.reciprocal %553 {approx = true} : vector<1x1x1xf32> -> vector<1x1x1xf32>
    %555 = vector.broadcast %554 : vector<1x1x1xf32> to vector<1x1x32xf32>
    %556 = arith.mulf %549, %555 : vector<1x1x32xf32>
    %c0_208 = arith.constant 0 : index
    %c0_209 = arith.constant 0 : index
    %c0_210 = arith.constant 0 : index
    %557 = vector.load %arg8[%c0_208, %c0_209, %c0_210] : memref<1x1x32xf32, #tpu.memory_space<vmem>>, vector<1x1x32xf32>
    tpu.vector_store %arg8[%c0_208, %c0_209, %c0_210], %556 {strides = array<i32>} : memref<1x1x32xf32, #tpu.memory_space<vmem>>, vector<1x1x32xf32>,
    return
  }
  func.func @transform_0(%arg0: i32) -> (i32, i32, i32) {
    %c0_i32 = arith.constant 0 : i32
    %c0_i32_0 = arith.constant 0 : i32
    %c0_i32_1 = arith.constant 0 : i32
    return %arg0, %c0_i32, %c0_i32_0 : i32, i32, i32
  }
  func.func @transform_1(%arg0: i32) -> (i32, i32, i32) {
    %c0_i32 = arith.constant 0 : i32
    %c0_i32_0 = arith.constant 0 : i32
    %c0_i32_1 = arith.constant 0 : i32
    return %arg0, %c0_i32, %c0_i32_0 : i32, i32, i32
  }
  func.func @transform_2(%arg0: i32) -> (i32, i32) {
    %c0_i32 = arith.constant 0 : i32
    %c0_i32_0 = arith.constant 0 : i32
    %c0_i32_1 = arith.constant 0 : i32
    return %c0_i32, %c0_i32_0 : i32, i32
  }
  func.func @transform_3(%arg0: i32) -> (i32, i32, i32) {
    %c0_i32 = arith.constant 0 : i32
    %c0_i32_0 = arith.constant 0 : i32
    %c0_i32_1 = arith.constant 0 : i32
    %c0_i32_2 = arith.constant 0 : i32
    return %c0_i32, %c0_i32_0, %c0_i32_1 : i32, i32, i32
  }
  func.func @transform_4(%arg0: i32) -> (i32, i32, i32) {
    %c0_i32 = arith.constant 0 : i32
    %c0_i32_0 = arith.constant 0 : i32
    %c0_i32_1 = arith.constant 0 : i32
    %c0_i32_2 = arith.constant 0 : i32
    return %c0_i32, %c0_i32_0, %c0_i32_1 : i32, i32, i32
  }
  func.func @transform_5(%arg0: i32) -> (i32, i32, i32) {
    %c0_i32 = arith.constant 0 : i32
    %c0_i32_0 = arith.constant 0 : i32
    %c0_i32_1 = arith.constant 0 : i32
    %c0_i32_2 = arith.constant 0 : i32
    return %c0_i32, %c0_i32_0, %c0_i32_1 : i32, i32, i32
  }
  func.func @transform_6(%arg0: i32) -> (i32, i32, i32) {
    %c0_i32 = arith.constant 0 : i32
    %c0_i32_0 = arith.constant 0 : i32
    %c0_i32_1 = arith.constant 0 : i32
    %c0_i32_2 = arith.constant 0 : i32
    return %c0_i32, %c0_i32_0, %c0_i32_1 : i32, i32, i32
  }
  func.func @transform_7(%arg0: i32) -> (i32, i32, i32) {
    %c0_i32 = arith.constant 0 : i32
    %c0_i32_0 = arith.constant 0 : i32
    %c0_i32_1 = arith.constant 0 : i32
    return %arg0, %c0_i32, %c0_i32_0 : i32, i32, i32
  }
}

</mosaic_0001>

<bundles_post_ra>
// kernel: dna_encoder_forward.1
= control target key start
LH: loop header
LB: loop body
LE: loop exit
PB: predicated region body
PF: predicated region fallthrough
CT: control target
= control target key end

     0   :  { %12 = vsyncpa [#allocation3], 0  ;;  %s3437_s0 = inlined_call_operand.vmem [shape: s32[2,8,1], index: 0, kind: input, shape index: {}]   ;;  %s3438_s1 = inlined_call_operand.vmem [shape: f32[2,1,8], index: 1, kind: input, shape index: {}]   ;;  %s3439_s2 = inlined_call_operand.vmem [shape: f32[36,32], index: 2, kind: input, shape index: {}]   ;;  %s3440_s3 = inlined_call_operand.vmem [shape: f32[24,33,8], index: 3, kind: input, shape index: {}]   ;;  %s3441_s4 = inlined_call_operand.vmem [shape: f32[8,8,32], index: 4, kind: input, shape index: {}]   ;;  %s3442_s5 = inlined_call_operand.vmem [shape: f32[2,33,128], index: 5, kind: input, shape index: {}]   ;;  %s3443_s6 = inlined_call_operand.vmem [shape: f32[2,129,32], index: 6, kind: input, shape index: {}]   ;;  %s3444_s7 = inlined_call_operand.hbm [shape: f32[2,1,32], index: 7, kind: output, shape index: {}]  }
   0x1   :  { %14 = vsyncpa [#allocation3 + $0x1], 0  ;;  %s2640_s24 = smov 0   ;;  %s2642_s25 = smov 0  }
   0x2   :  { %s2644_s26 = smov 0   ;;  %s2646_s27 = smov 0  }
   0x3 LB: > { %s2661_s28 = sadd.s32 4294967295, %s2595_s27   ;;  %s2198_s29 = sadd.s32 4294967294, %s2595_s27   ;;  %s2595_s27 = sphi %s2646_s27, %s3450_s27   ;;  %s2591_s26 = sphi %s2644_s26, %s3449_s26   ;;  %s2587_s25 = sphi %s2642_s25, %s3448_s25   ;;  %s2583_s24 = sphi %s2640_s24, %s3447_s24  }
   0x4   : > { %s2665_s30 = sadd.s32 1, %s2595_s27   ;;  %s184_s8 = sadd.s32 1, %s2591_s26 }
   0x5   : > { %s181_s9 = ssub.s32 %s2595_s27, %s2665_s30  ;;  %p194_p0 = scmp.ne.s32.totalorder %s2591_s26, %s2587_s25 }
   0x6   : > { %p182_p1 = scmp.eq.s32.totalorder %s181_s9, 0  ;;  %p195_p2 = scmp.eq.s32.totalorder %s2661_s28, 1 }
   0x7   : > { %p200_p3 = scmp.ne.s32.totalorder %s2587_s25, %s2583_s24  ;;  %p201_p4 = scmp.eq.s32.totalorder %s2198_s29, 1 }
   0x8   : > { %s2676_s10 = scalar_select %p182_p1, %s2591_s26, %s184_s8  }
   0x9   : > { %p2678_p5 = por %p195_p2, %p194_p0  ;;  %p2682_p6 = por %p201_p4, %p200_p3 }
   0xa   : > { %p2201_p7 = scmp.ge.s32.totalorder %s2595_s27, 1  ;;  %p247_p8 = scmp.lt.s32.totalorder %s2595_s27, 3 }
   0xc   : > { %p248_p9 = pnand %p2201_p7, %p247_p8 }
   0xd   : > { %p280_p10 = scmp.lt.s32.totalorder (!%p248_p9), %s2661_s28, 1  ;;  %s278_s22 = sand.u32 (!%p248_p9), 1, %s2587_s25  }
   0xe   : > { %251 = sbr.rel (%p248_p9) target bundleno = 6602 (0x19ca), region = 48  ;;  %s2130_s8 = scalar_lea.hbm (!%p248_p9), %s3444_s7, %s2661_s28 }
   0xf   : > { %s279_s9 = scalar_lea.vmem (!%p248_p9), [#allocation2], %s278_s22  ;;  %s2134_s15 = sshll.u32 (!%p248_p9), %s2130_s8, 4  ;;  %s2135_s15 = int_to_ptr.hbm [resolvable:$true] %s2134_s15 }
  0x10   : > { %s2122_s16 = scalar_lea.sflag (!%p248_p9), [#allocation3], %s278_s22  ;;  %s2547_s18 = sshra.s32 (!%p248_p9), %s2135_s15, 4  ;;  %s2548_s18 = int_to_ptr.hbm [resolvable:$true] %s2547_s18 }
  0x11   : > { %s2549_s19 = scalar_lea.hbm (!%p248_p9), %s2548_s18, 1  ;;  %s2553_s20 = scalar_lea.hbm (!%p248_p9), %s3444_s7, 2 }
  0x12   : > { %p2550_p11 = scmp.ne.s32.totalorder (!%p248_p9), %s2548_s18, %s2549_s19  ;;  %p2554_p0 = scmp.lt.s32.totalorder (!%p248_p9), %s2548_s18, %s3444_s7 }
  0x13   : > { %v2597_v0 = vmov 0   ;;  %s2690_s13 = scalar_select %p280_p10, %s2661_s28, 1  ;;  %v287_v2 = vld [vmem:[%s3439_s2] sm:$0xff]  ;;  %v295_v3 = vlaneseq  ;;  %vm303_vm0 = vcmask 64512   ;;  %v2598_v6 = vmov 0.0   ;;  %v288_v8 = vld [vmem:[%s3439_s2 + $0x8] sm:$0xff] }
  0x14   : > { %2452 = vset.pattern.permute.xlu0 %v2597_v0  ;;  %322 = vmatpush.msra.mxu0 %v287_v2  ;;  %vm328_vm2 = vcmask 261120   ;;  %v2599_v12 = vmov 32.0   ;;  %v365_v24 = vld [vmem:[%s3440_s3 + $0x18] sm:$0xff]  ;;  %v364_v26 = vld [vmem:[%s3440_s3 + $0x10] sm:$0xff]  ;;  %v363_v28 = vld [vmem:[%s3440_s3 + $0x8] sm:$0xff]  ;;  %p2551_p12 = pnand %p2550_p11, %p2678_p5  ;;  %p2555_p1 = scmp.lt.s32.totalorder %s2553_s20, %s2549_s19 }
  0x15   : > { %s2202_s14 = sshll.u32 %s2690_s13, 3  ;;  %v296_v4 = vand.u32 127, %v295_v3  ;;  %2481 = vrcp.f32 %v2599_v12  ;;  %v2208_v25 = vld [vmem:[%s3440_s3 + $0xb8] sm:$0xff]  ;;  %395 = vmatpush.msra.mxu1 %v365_v24  ;;  %v2207_v27 = vld [vmem:[%s3440_s3 + $0xb0] sm:$0xff]  ;;  %v2206_v29 = vld [vmem:[%s3440_s3 + $0xa8] sm:$0xff] }
  0x16   : > { %s283_s17 = scalar_lea.vmem %s3437_s0, %s2202_s14  ;;  %416 = vmatpush.msra.mxu2 %v2208_v25  ;;  %v362_v30 = vld [vmem:[%s3440_s3] sm:$0xff]  ;;  %v2213_v32 = vld [vmem:[%s3440_s3 + $0x158] sm:$0xff]  ;;  %v2212_v34 = vld [vmem:[%s3440_s3 + $0x150] sm:$0xff]  ;;  %s2132_s14 = sshll.u32 %s279_s9, 4  ;;  %s2133_s14 = int_to_ptr.vmem [resolvable:$true] %s2132_s14 }
  0x17   : > { %v294_v1 = vld [vmem:[%s283_s17] sm:$0xff]  ;;  %396 = vmatpush.msra.mxu1 %v364_v26  ;;  %v2223_v35 = vld [vmem:[%s3440_s3 + $0x38] sm:$0xff]  ;;  %v2211_v36 = vld [vmem:[%s3440_s3 + $0x148] sm:$0xff]  ;;  %s2825_s17 = scalar_lea.vmem %s3438_s1, %s2690_s13  ;;  %p2552_p13 = pneg %p2551_p12 }
  0x18   : > { %298 = vperm.xlu0 %2452, %v294_v1   ;;  %417 = vmatpush.msra.mxu2 %v2207_v27  ;;  %v2205_v31 = vld [vmem:[%s3440_s3 + $0xa0] sm:$0xff]  ;;  %v2222_v37 = vld [vmem:[%s3440_s3 + $0x30] sm:$0xff]  ;;  %v2221_v41 = vld [vmem:[%s3440_s3 + $0x28] sm:$0xff]  ;;  %p2556_p2 = por %p2555_p1, %p2554_p0 }
  0x19   : > { %397 = vmatpush.msra.mxu1 %v363_v28  ;;  %v2224_v33 = vld [vmem:[%s3440_s3 + $0x40] sm:$0xff]  ;;  %v2764_v47 = vld [vmem:[%s3439_s2 + $0x18] sm:$0xff]  ;;  %v2227_v58 = vld [vmem:[%s3440_s3 + $0xd0] sm:$0xff] }
  0x1a   : > { %418 = vmatpush.msra.mxu2 %v2206_v29  ;;  %v2210_v40 = vld [vmem:[%s3440_s3 + $0x140] sm:$0xff]  ;;  %v358_v50 = vperm.slane %v2764_v47, 2  ;;  %v360_v52 = vperm.slane %v2764_v47, 3  ;;  %v2228_v57 = vld [vmem:[%s3440_s3 + $0xd8] sm:$0xff]  ;;  %v2226_v59 = vld [vmem:[%s3440_s3 + $0xc8] sm:$0xff]  ;;  %p2557_p3 = pnand %p2556_p2, %p2552_p13 }
  0x1b   : > { %v2482_v13 = vpop.eup %2481  ;;  %398 = vmatpush.msra.mxu1 %v362_v30  ;;  %v2229_v56 = vld [vmem:[%s3440_s3 + $0xe0] sm:$0xff] }
  0x1c   : > { %v333_v14 = vmul.f32 32.0, %v2482_v13  ;;  %vm337_vm3 = vweird.f32 %v2482_v13  ;;  %419 = vmatpush.msra.mxu2 %v2205_v31  ;;  %v2454_v61 = vld [vmem:[%s3440_s3 + $0xc0] ss:$0 sm:$0xff] }
  0x1d   : > { %437 = vmatpush.msrb.mxu1 %v2213_v32  ;;  %v2455_v62 = vld [vmem:[%s3440_s3 + $0x160] ss:$0 sm:$0xff] }
  0x1e   : > { %v334_v15 = vsub.f32 1.0, %v333_v14  ;;  %555 = vmatpush.msrb.mxu2 %v2224_v33  ;;  %v2453_v63 = vld [vmem:[%s3440_s3 + $0x20] ss:$0 sm:$0xff] }
  0x1f   : > { %438 = vmatpush.msrb.mxu1 %v2212_v34  ;;  %v2234_v2 = vld [vmem:[%s3440_s3 + $0x180] sm:$0xff] }
  0x20   : > { %v335_v16 = vmul.f32 %v2482_v13, %v334_v15  ;;  %556 = vmatpush.msrb.mxu2 %v2223_v35  ;;  %v291_v14 = vld [vmem:[%s2825_s17] sm:$0x1] }
  0x21   : > { %439 = vmatpush.msrb.mxu1 %v2211_v36  ;;  %v292_v15 = vsub.f32 1.0, %v291_v14 }
  0x22   : > { %v336_v17 = vadd.f32 %v2482_v13, %v335_v16  ;;  %557 = vmatpush.msrb.mxu2 %v2222_v37 }
  0x23   : > { %440 = vmatpush.msrb.mxu1 %v2210_v40  ;;  %v293_v16 = vmul.f32 -1e+09, %v292_v15  ;;  %v2242_v15 = vld [vmem:[%s3441_s4 + $0x8] sm:$0xff] }
  0x24   : > { %v2707_v18 = vsel %vm337_vm3, %v2482_v13, %v336_v17  ;;  %558 = vmatpush.msrb.mxu2 %v2221_v41  ;;  %700 = vmatpush.msra.mxu3 %v2242_v15 }
  0x25   : > { %v2828_v17 = vperm.slane %v293_v16, 0  ;;  %v2258_v16 = vld [vmem:[%s3440_s3 + $0x1a8] sm:$0xff] }
  0x26   : > { %801 = vmatpush.msrb.mxu3 %v2258_v16 }
  0x8a   : > { %v299_v5 = vpop.permute.xlu0 %298 }
  0x8b   : > { %vm300_vm1 = vcmp.eq.s32.totalorder %v299_v5, %v296_v4 }
  0x8c   : > { %v2203_v7 = vsel %vm300_vm1, 1.0, %v2598_v6  ;;  %v2233_v6 = vld [vmem:[%s3440_s3 + $0x178] sm:$0xff] }
  0x8d   : > { %2204 = vmatmul.msk.f32.vlgmr.msra.gmra.mxu0 %vm303_vm0, %v2203_v7  ;;  %v2232_v7 = vld [vmem:[%s3440_s3 + $0x170] sm:$0xff] }
 0x10a   : > { %v324_v9 = vpop.f32.mrf.mxu0 }
 0x10b   : > { %v2703_v10 = vadd.f32 %v324_v9, %v288_v8  ;;  %v2231_v9 = vld [vmem:[%s3440_s3 + $0x168] sm:$0xff] }
 0x10d   : > { %v329_v11 = vsel %vm328_vm2, %v2703_v10, 0.0 }
 0x10e   : > { %330 = vadd.xlane.f32.xlu0 %v329_v11  ;;  %v2457_v11 = vld [vmem:[%s3440_s3 + $0xe8] ss:$0 sm:$0xff] }
 0x181   : > { %v331_v19 = vpop.xlane.xlu0 %330 }
 0x182   : > { %v339_v20 = vmul.f32 %v2707_v18, %v331_v19 }
 0x184   : > { %v340_v21 = vsub.f32 %v2703_v10, %v339_v20 }
 0x186   : > { %v341_v22 = vmul.f32 %v340_v21, %v340_v21 }
 0x188   : > { %v342_v23 = vsel %vm328_vm2, %v341_v22, 0.0 }
 0x189   : > { %343 = vadd.xlane.f32.xlu1 %v342_v23  ;;  %v2458_v23 = vld [vmem:[%s3440_s3 + $0x188] ss:$0 sm:$0xff] }
 0x1fc   : > { %v344_v38 = vpop.xlane.xlu1 %343 }
 0x1fd   : > { %v345_v39 = vmul.f32 %v344_v38, %v2707_v18 }
 0x1ff   : > { %v346_v42 = vadd.f32 1e-05, %v345_v39 }
 0x201   : > { %2483 = vrsqrt.f32 %v346_v42  ;;  %vm353_vm5 = vweird.f32 %v346_v42 }
 0x207   : > { %v2484_v43 = vpop.eup %2483 }
 0x208   : > { %v348_v44 = vmul.f32 %v2484_v43, %v346_v42  ;;  %vm354_vm4 = vweird.f32 %v2484_v43 }
 0x209   : > { %vm355_vm6 = vmor %vm353_vm5, %vm354_vm4 }
 0x20a   : > { %v349_v45 = vmul.f32 %v2484_v43, %v348_v44  ;;  %v2247_v44 = vld [vmem:[%s3440_s3 + $0x60] sm:$0xff] }
 0x20c   : > { %v350_v46 = vmul.f32 0.5, %v349_v45  ;;  %v2456_v45 = vld [vmem:[%s3440_s3 + $0x48] ss:$0 sm:$0xff] }
 0x20e   : > { %v351_v48 = vsub.f32 1.5, %v350_v46  ;;  %v2246_v46 = vld [vmem:[%s3440_s3 + $0x58] sm:$0xff] }
 0x210   : > { %v352_v49 = vmul.f32 %v2484_v43, %v351_v48  ;;  %v2245_v48 = vld [vmem:[%s3440_s3 + $0x50] sm:$0xff] }
 0x212   : > { %v356_v51 = vsel %vm355_vm6, %v2484_v43, %v352_v49  ;;  %v2248_v43 = vld [vmem:[%s3440_s3 + $0x68] sm:$0xff] }
 0x213   : > { %v357_v53 = vmul.f32 %v356_v51, %v340_v21 }
 0x215   : > { %v359_v54 = vmul.f32 %v358_v50, %v357_v53  ;;  %v523_v50 = vld [vmem:[%s3441_s4] sm:$0xff] }
 0x217   : > { %v2768_v55 = vadd.f32 %v360_v52, %v359_v54 }
 0x219   : > { %2215 = vmatmul.msk.f32.vlgmr.msra.gmra.mxu1 %vm328_vm2, %v2768_v55  ;;  %2216 = vmatmul.msk.f32.vlgmr.msra.gmra.mxu2 %vm328_vm2, %v2768_v55 }
 0x21a   : > { %576 = vmatpush.msra.mxu2 %v2229_v56 }
 0x21c   : > { %577 = vmatpush.msra.mxu2 %v2228_v57 }
 0x21e   : > { %578 = vmatpush.msra.mxu2 %v2227_v58 }
 0x220   : > { %579 = vmatpush.msra.mxu2 %v2226_v59 }
 0x221   : > { %2217 = vmatmul.msk.f32.vlgmr.msrb.gmra.mxu1 %vm328_vm2, %v2768_v55  ;;  %2236 = vmatmul.msk.f32.vlgmr.msrb.gmra.mxu2 %vm328_vm2, %v2768_v55 }
 0x229   : > { %2237 = vmatmul.msk.f32.vlgmr.msra.gmra.mxu2 %vm328_vm2, %v2768_v55 }
 0x296   : > { %v400_v60 = vpop.f32.mrf.mxu1 }
 0x297   : > { %v401_v5 = vadd.f32 %v2453_v63, %v400_v60  ;;  %v2252_v63 = vld [vmem:[%s3440_s3 + $0x100] sm:$0xff] }
 0x29c   : > { %v421_v0 = vpop.f32.mrf.mxu2 }
 0x29d   : > { %v422_v1 = vadd.f32 %v2454_v61, %v421_v0  ;;  %v2251_v0 = vld [vmem:[%s3440_s3 + $0xf8] sm:$0xff] }
 0x29e   : > { %v442_v3 = vpop.f32.mrf.mxu1 }
 0x29f   : > { %v443_v4 = vadd.f32 %v2455_v62, %v442_v3  ;;  %2218 = vmatpush.xpose.msk.msrb.mxu0 %vm303_vm0, %v422_v1  ;;  %v2253_v62 = vld [vmem:[%s3440_s3 + $0x108] sm:$0xff]  ;;  %v2250_v1 = vld [vmem:[%s3440_s3 + $0xf0] sm:$0xff] }
 0x2a1   : > { %518 = vmatpush.msra.mxu1 %v443_v4 }
 0x2a2   : > { %2219 = vmatmul.msk.f32.vlgmr.msrb.gmra.mxu0 %vm303_vm0, %v401_v5 }
 0x2a3   : > { %597 = vmatpush.msra.mxu0 %v2234_v2 }
 0x2a4   : > { %v560_v8 = vpop.f32.mrf.mxu2 }
 0x2a5   : > { %598 = vmatpush.msra.mxu0 %v2233_v6  ;;  %v561_v49 = vadd.f32 %v2456_v45, %v560_v8 }
 0x2a7   : > { %599 = vmatpush.msra.mxu0 %v2232_v7 }
 0x2a9   : > { %600 = vmatpush.msra.mxu0 %v2231_v9 }
 0x2aa   : > { %2238 = vmatmul.msk.f32.vlgmr.msra.gmra.mxu0 %vm328_vm2, %v2768_v55 }
 0x2ab   : > { %723 = vmatpush.msrb.mxu0 %v523_v50 }
 0x2ac   : > { %v581_v12 = vpop.f32.mrf.mxu2 }
 0x2ad   : > { %v582_v13 = vadd.f32 %v2457_v11, %v581_v12 }
 0x2af   : > { %2239 = vmatpush.xpose.msk.msrb.mxu1 %vm303_vm0, %v582_v13 }
 0x31f   : > { %v468_v19 = vpop.f32.mrf.mxu0 }
 0x320   : > { %v471_v20 = vmul.f32 0.35355338, %v468_v19  ;;  %v2257_v19 = vld [vmem:[%s3440_s3 + $0x1a0] sm:$0xff] }
 0x321   : > { %802 = vmatpush.msrb.mxu3 %v2257_v19 }
 0x322   : > { %v475_v21 = vadd.f32 %v2828_v17, %v471_v20  ;;  %v2256_v20 = vld [vmem:[%s3440_s3 + $0x198] sm:$0xff] }
 0x323   : > { %803 = vmatpush.msrb.mxu3 %v2256_v20 }
 0x324   : > { %v476_v22 = vsel %vm303_vm0, %v475_v21, -inf }
 0x325   : > { %477 = vmax.xlane.f32.xlu1 %v476_v22  ;;  %v2271_v22 = vld [vmem:[%s3440_s3 + $0x90] sm:$0xff] }
 0x327   : > { %v602_v24 = vpop.f32.mrf.mxu0 }
 0x328   : > { %v603_v25 = vadd.f32 %v2458_v23, %v602_v24  ;;  %v2270_v24 = vld [vmem:[%s3440_s3 + $0x88] sm:$0xff] }
 0x32a   : > { %675 = vmatpush.msrb.mxu2 %v603_v25  ;;  %v2269_v25 = vld [vmem:[%s3440_s3 + $0x80] sm:$0xff] }
 0x32c   : > { %780 = vmatpush.msra.mxu2 %v2253_v62 }
 0x32e   : > { %781 = vmatpush.msra.mxu2 %v2252_v63 }
 0x330   : > { %782 = vmatpush.msra.mxu2 %v2251_v0 }
 0x332   : > { %783 = vmatpush.msra.mxu2 %v2250_v1 }
 0x398   : > { %v478_v26 = vpop.xlane.xlu1 %477 }
 0x399   : > { %v479_v27 = vsub.f32 %v475_v21, %v478_v26  ;;  %v2255_v21 = vld [vmem:[%s3440_s3 + $0x190] sm:$0xff] }
 0x39a   : > { %804 = vmatpush.msrb.mxu3 %v2255_v21  ;;  %v2460_v26 = vld [vmem:[%s3440_s3 + $0x110] ss:$0 sm:$0xff] }
 0x39b   : > { %v480_v28 = vmul.f32 1.442695, %v479_v27  ;;  %v2268_v27 = vld [vmem:[%s3440_s3 + $0x78] sm:$0xff] }
 0x39d   : > { %2485 = vpow2.f32 %v480_v28  ;;  %v2459_v28 = vld [vmem:[%s3440_s3 + $0x70] ss:$0 sm:$0xff] }
 0x3a3   : > { %v2486_v29 = vpop.eup %2485 }
 0x3a4   : > { %v482_v30 = vsel %vm303_vm0, %v2486_v29, 0.0 }
 0x3a5   : > { %483 = vadd.xlane.f32.xlu2 %v482_v30 }
 0x418   : > { %v484_v31 = vpop.xlane.xlu2 %483 }
 0x419   : > { %2487 = vrcp.f32 %v484_v31  ;;  %v496_v35 = vand.u32 2147483648, %v484_v31  ;;  %v494_v37 = vand.u32 2147483647, %v484_v31  ;;  %vm490_vm8 = vweird.f32 %v484_v31 }
 0x41b   : > { %v497_v39 = vor.u32 1.1754944e-38, %v496_v35  ;;  %vm495_vm10 = vcmp.eq.f32.partialorder %v494_v37, 8.507059e+37  ;;  %v2274_v35 = vld [vmem:[%s3440_s3 + $0x120] sm:$0xff]  ;;  %v2266_v37 = vld [vmem:[%s3441_s4 + $0x10] sm:$0xff] }
 0x41f   : > { %v2488_v32 = vpop.eup %2487 }
 0x420   : > { %v486_v33 = vmul.f32 %v2488_v32, %v484_v31  ;;  %vm491_vm7 = vweird.f32 %v2488_v32 }
 0x421   : > { %vm492_vm9 = vmor %vm490_vm8, %vm491_vm7 }
 0x422   : > { %v487_v34 = vsub.f32 1.0, %v486_v33 }
 0x424   : > { %v488_v36 = vmul.f32 %v2488_v32, %v487_v34  ;;  %v2275_v34 = vld [vmem:[%s3440_s3 + $0x128] sm:$0xff] }
 0x426   : > { %v489_v38 = vadd.f32 %v2488_v32, %v488_v36  ;;  %v2273_v36 = vld [vmem:[%s3440_s3 + $0x118] sm:$0xff] }
 0x428   : > { %v493_v40 = vsel %vm492_vm9, %v2488_v32, %v489_v38  ;;  %v2276_v32 = vld [vmem:[%s3440_s3 + $0x130] sm:$0xff] }
 0x429   : > { %v498_v41 = vsel %vm495_vm10, %v497_v39, %v493_v40 }
 0x42a   : > { %v499_v42 = vmul.f32 %v2486_v29, %v498_v41  ;;  %v2461_v41 = vld [vmem:[%s3440_s3 + $0x1b0] ss:$0 sm:$0xff] }
 0x42c   : > { %2220 = vmatmul.msk.f32.vlgmr.msra.gmra.mxu1 %vm303_vm0, %v499_v42 }
 0x42d   : > { %759 = vmatpush.msra.mxu1 %v2248_v43 }
 0x42f   : > { %760 = vmatpush.msra.mxu1 %v2247_v44 }
 0x431   : > { %761 = vmatpush.msra.mxu1 %v2246_v46 }
 0x433   : > { %762 = vmatpush.msra.mxu1 %v2245_v48 }
 0x434   : > { %2240 = vmatmul.msk.f32.vlgmr.msrb.gmra.mxu1 %vm303_vm0, %v561_v49  ;;  %v2462_v49 = vld [vmem:[%s3440_s3 + $0x138] ss:$0 sm:$0xff] }
 0x43c   : > { %2260 = vmatmul.msk.f32.vlgmr.msra.gmra.mxu1 %vm328_vm2, %v2768_v55 }
 0x4a9   : > { %v520_v51 = vpop.f32.mrf.mxu1 }
 0x4aa   : > { %2244 = vmatmul.msk.f32.vlgmr.msrb.gmra.mxu0 %vm303_vm0, %v520_v51 }
 0x4b1   : > { %v628_v52 = vpop.f32.mrf.mxu1 }
 0x4b2   : > { %v631_v53 = vmul.f32 0.35355338, %v628_v52 }
 0x4b4   : > { %v632_v54 = vadd.f32 %v631_v53, %v2828_v17 }
 0x4b6   : > { %v633_v56 = vsel %vm303_vm0, %v632_v54, -inf }
 0x4b7   : > { %634 = vmax.xlane.f32.xlu2 %v633_v56 }
 0x4b9   : > { %v764_v30 = vpop.f32.mrf.mxu1 }
 0x4ba   : > { %v765_v33 = vadd.f32 %v2459_v28, %v764_v30 }
 0x527   : > { %v725_v38 = vpop.f32.mrf.mxu0 }
 0x52a   : > { %v635_v57 = vpop.xlane.xlu2 %634 }
 0x52b   : > { %v636_v58 = vsub.f32 %v632_v54, %v635_v57 }
 0x52d   : > { %v637_v59 = vmul.f32 1.442695, %v636_v58  ;;  %v2281_v58 = vld [vmem:[%s3440_s3 + $0x1d0] sm:$0xff] }
 0x52f   : > { %2489 = vpow2.f32 %v637_v59  ;;  %v2280_v59 = vld [vmem:[%s3440_s3 + $0x1c8] sm:$0xff] }
 0x535   : > { %v2490_v60 = vpop.eup %2489 }
 0x536   : > { %v639_v61 = vsel %vm303_vm0, %v2490_v60, 0.0 }
 0x537   : > { %640 = vadd.xlane.f32.xlu1 %v639_v61  ;;  %v2278_v61 = vld [vmem:[%s3440_s3 + $0x1b8] sm:$0xff] }
 0x5aa   : > { %v641_v2 = vpop.xlane.xlu1 %640 }
 0x5ab   : > { %2491 = vrcp.f32 %v641_v2  ;;  %v653_v6 = vand.u32 2147483648, %v641_v2  ;;  %v651_v8 = vand.u32 2147483647, %v641_v2  ;;  %vm647_vm12 = vweird.f32 %v641_v2 }
 0x5ad   : > { %v654_v11 = vor.u32 1.1754944e-38, %v653_v6  ;;  %vm652_vm14 = vcmp.eq.f32.partialorder %v651_v8, 8.507059e+37 }
 0x5b1   : > { %v2492_v3 = vpop.eup %2491 }
 0x5b2   : > { %v643_v4 = vmul.f32 %v2492_v3, %v641_v2  ;;  %vm648_vm11 = vweird.f32 %v2492_v3 }
 0x5b3   : > { %vm649_vm13 = vmor %vm647_vm12, %vm648_vm11 }
 0x5b4   : > { %v644_v5 = vsub.f32 1.0, %v643_v4 }
 0x5b6   : > { %v645_v7 = vmul.f32 %v2492_v3, %v644_v5 }
 0x5b8   : > { %v646_v9 = vadd.f32 %v2492_v3, %v645_v7 }
 0x5ba   : > { %v650_v12 = vsel %vm649_vm13, %v2492_v3, %v646_v9 }
 0x5bb   : > { %v655_v13 = vsel %vm652_vm14, %v654_v11, %v650_v12  ;;  %v2463_v12 = vld [vmem:[%s3440_s3 + $0x98] ss:$0 sm:$0xff] }
 0x5bc   : > { %v656_v14 = vmul.f32 %v2490_v60, %v655_v13  ;;  %v2279_v60 = vld [vmem:[%s3440_s3 + $0x1c0] sm:$0xff] }
 0x5be   : > { %2241 = vmatmul.msk.f32.vlgmr.msrb.gmra.mxu2 %vm303_vm0, %v656_v14  ;;  %v2464_v14 = vld [vmem:[%s3440_s3 + $0x1d8] ss:$0 sm:$0xff] }
 0x5bf   : > { %904 = vmatpush.msrb.mxu2 %v2266_v37 }
 0x5c6   : > { %2261 = vmatmul.msk.f32.vlgmr.msra.gmra.mxu2 %vm328_vm2, %v2768_v55 }
 0x641   : > { %v677_v23 = vpop.f32.mrf.mxu2 }
 0x642   : > { %2243 = vmatmul.msk.f32.vlgmr.msra.gmra.mxu3 %vm303_vm0, %v677_v23 }
 0x643   : > { %941 = vmatpush.msra.mxu3 %v2271_v22 }
 0x645   : > { %942 = vmatpush.msra.mxu3 %v2270_v24 }
 0x647   : > { %943 = vmatpush.msra.mxu3 %v2269_v25 }
 0x649   : > { %v785_v29 = vpop.f32.mrf.mxu2  ;;  %944 = vmatpush.msra.mxu3 %v2268_v27 }
 0x64a   : > { %v786_v31 = vadd.f32 %v2460_v26, %v785_v29  ;;  %2262 = vmatmul.msk.f32.vlgmr.msrb.gmra.mxu3 %vm328_vm2, %v2768_v55 }
 0x64c   : > { %2263 = vmatpush.xpose.msk.msra.mxu0 %vm303_vm0, %v786_v31 }
 0x64f   : > { %2264 = vmatmul.msk.f32.vlgmr.msra.gmra.mxu0 %vm303_vm0, %v765_v33 }
 0x650   : > { %962 = vmatpush.msrb.mxu0 %v2276_v32 }
 0x652   : > { %963 = vmatpush.msrb.mxu0 %v2275_v34  ;;  %2283 = vmatmul.msk.f32.vlgmr.msra.gmra.mxu3 %vm328_vm2, %v2768_v55 }
 0x654   : > { %964 = vmatpush.msrb.mxu0 %v2274_v35 }
 0x656   : > { %965 = vmatpush.msrb.mxu0 %v2273_v36 }
 0x657   : > { %2284 = vmatmul.msk.f32.vlgmr.msrb.gmra.mxu0 %vm328_vm2, %v2768_v55 }
 0x6c5   : > { %v702_v39 = vpop.f32.mrf.mxu3 }
 0x6c6   : > { %v726_v40 = vadd.f32 %v725_v38, %v702_v39 }
 0x6cc   : > { %v832_v42 = vpop.f32.mrf.mxu0 }
 0x6cd   : > { %v835_v43 = vmul.f32 0.35355338, %v832_v42  ;;  %v806_v44 = vpop.f32.mrf.mxu3  ;;  %v2289_v42 = vld [vmem:[%s3441_s4 + $0x18] sm:$0xff] }
 0x6ce   : > { %v807_v45 = vadd.f32 %v2461_v41, %v806_v44  ;;  %1086 = vmatpush.msra.mxu0 %v2289_v42 }
 0x6cf   : > { %v836_v46 = vadd.f32 %v835_v43, %v2828_v17 }
 0x6d0   : > { %879 = vmatpush.msrb.mxu1 %v807_v45 }
 0x6d1   : > { %v837_v48 = vsel %vm303_vm0, %v836_v46, -inf }
 0x6d2   : > { %838 = vmax.xlane.f32.xlu2 %v837_v48  ;;  %983 = vmatpush.msra.mxu1 %v2281_v58  ;;  %v1096_v58 = vld [vmem:[%s3442_s5 + $0x8] sm:$0xff] }
 0x6d4   : > { %v967_v50 = vpop.f32.mrf.mxu0  ;;  %984 = vmatpush.msra.mxu1 %v2280_v59  ;;  %v1095_v59 = vld [vmem:[%s3442_s5] sm:$0xff] }
 0x6d5   : > { %v968_v51 = vadd.f32 %v2462_v49, %v967_v50  ;;  %v946_v13 = vpop.f32.mrf.mxu3 }
 0x6d6   : > { %985 = vmatpush.msra.mxu1 %v2279_v60  ;;  %v947_v15 = vadd.f32 %v2463_v12, %v946_v13  ;;  %v1115_v60 = vld [vmem:[%s3443_s6 + $0x78] sm:$0xff]  ;;  %v1141_v12 = vperm.slane %v2764_v47, 5 }
 0x6d7   : > { %2286 = vmatpush.xpose.msk.msra.mxu2 %vm303_vm0, %v968_v51 }
 0x6d8   : > { %986 = vmatpush.msra.mxu1 %v2278_v61  ;;  %v1114_v61 = vld [vmem:[%s3443_s6 + $0x70] sm:$0xff] }
 0x745   : > { %v839_v52 = vpop.xlane.xlu2 %838 }
 0x746   : > { %v840_v53 = vsub.f32 %v836_v46, %v839_v52  ;;  %v1093_v46 = vperm.slane %v2764_v47, 6 }
 0x748   : > { %v841_v54 = vmul.f32 1.442695, %v840_v53 }
 0x74a   : > { %2493 = vpow2.f32 %v841_v54 }
 0x750   : > { %v2494_v56 = vpop.eup %2493 }
 0x751   : > { %v843_v57 = vsel %vm303_vm0, %v2494_v56, 0.0 }
 0x752   : > { %844 = vadd.xlane.f32.xlu1 %v843_v57  ;;  %v1098_v57 = vld [vmem:[%s3442_s5 + $0x18] sm:$0xff] }
 0x7c5   : > { %v845_v62 = vpop.xlane.xlu1 %844 }
 0x7c6   : > { %2495 = vrcp.f32 %v845_v62  ;;  %v857_v2 = vand.u32 2147483648, %v845_v62  ;;  %v855_v4 = vand.u32 2147483647, %v845_v62  ;;  %vm851_vm1 = vweird.f32 %v845_v62 }
 0x7c8   : > { %v858_v6 = vor.u32 1.1754944e-38, %v857_v2  ;;  %vm856_vm4 = vcmp.eq.f32.partialorder %v855_v4, 8.507059e+37 }
 0x7cc   : > { %v2496_v63 = vpop.eup %2495 }
 0x7cd   : > { %v847_v0 = vmul.f32 %v2496_v63, %v845_v62  ;;  %vm852_vm15 = vweird.f32 %v2496_v63  ;;  %v1113_v62 = vld [vmem:[%s3443_s6 + $0x68] sm:$0xff] }
 0x7ce   : > { %vm853_vm3 = vmor %vm851_vm1, %vm852_vm15 }
 0x7cf   : > { %v848_v1 = vsub.f32 1.0, %v847_v0 }
 0x7d1   : > { %v849_v3 = vmul.f32 %v2496_v63, %v848_v1 }
 0x7d3   : > { %v850_v5 = vadd.f32 %v2496_v63, %v849_v3 }
 0x7d5   : > { %v854_v7 = vsel %vm853_vm3, %v2496_v63, %v850_v5 }
 0x7d6   : > { %v859_v8 = vsel %vm856_vm4, %v858_v6, %v854_v7 }
 0x7d7   : > { %v860_v9 = vmul.f32 %v2494_v56, %v859_v8  ;;  %v1139_v8 = vperm.slane %v2764_v47, 4 }
 0x7d9   : > { %2265 = vmatmul.msk.f32.vlgmr.msrb.gmra.mxu1 %vm303_vm0, %v860_v9 }
 0x7da   : > { %1159 = vmatpush.msrb.mxu1 %v1098_v57  ;;  %v2294_v57 = vld [vmem:[%s3440_s3 + $0x1f0] sm:$0xff] }
 0x7e1   : > { %2285 = vmatmul.msk.f32.vlgmr.msra.gmra.mxu1 %vm328_vm2, %v2768_v55 }
 0x856   : > { %v881_v11 = vpop.f32.mrf.mxu1 }
 0x857   : > { %2267 = vmatmul.msk.f32.vlgmr.msrb.gmra.mxu2 %vm303_vm0, %v881_v11 }
 0x858   : > { %1176 = vmatpush.msrb.mxu2 %v1115_v60  ;;  %v2293_v60 = vld [vmem:[%s3440_s3 + $0x1e8] sm:$0xff] }
 0x85a   : > { %1177 = vmatpush.msrb.mxu2 %v1114_v61  ;;  %v2298_v61 = vld [vmem:[%s3440_s3 + $0x288] sm:$0xff] }
 0x85c   : > { %1178 = vmatpush.msrb.mxu2 %v1113_v62  ;;  %v2303_v62 = vld [vmem:[%s3440_s3 + $0x328] sm:$0xff] }
 0x85e   : > { %v988_v16 = vpop.f32.mrf.mxu1 }
 0x85f   : > { %v989_v19 = vadd.f32 %v2464_v14, %v988_v16  ;;  %2287 = vmatmul.msk.f32.vlgmr.msra.gmra.mxu2 %vm303_vm0, %v947_v15  ;;  %v1112_v15 = vld [vmem:[%s3443_s6 + $0x60] sm:$0xff]  ;;  %v1111_v16 = vld [vmem:[%s3443_s6 + $0x58] sm:$0xff] }
 0x860   : > { %1179 = vmatpush.msrb.mxu2 %v1112_v15 }
 0x861   : > { %1061 = vmatpush.msrb.mxu3 %v989_v19  ;;  %v1110_v19 = vld [vmem:[%s3443_s6 + $0x50] sm:$0xff] }
 0x862   : > { %1180 = vmatpush.msrb.mxu2 %v1111_v16 }
 0x864   : > { %1181 = vmatpush.msrb.mxu2 %v1110_v19  ;;  %v3126_v19 = vld [vmem:[%s3439_s2 + $0x20] sm:$0xf] }
 0x8da   : > { %v906_v20 = vpop.f32.mrf.mxu2 }
 0x8db   : > { %v909_v55 = vadd.f32 %v906_v20, %v726_v40  ;;  %v1109_v20 = vld [vmem:[%s3443_s6 + $0x48] sm:$0xff] }
 0x8dc   : > { %1182 = vmatpush.msrb.mxu2 %v1109_v20 }
 0x8e2   : > { %v1014_v21 = vpop.f32.mrf.mxu2 }
 0x8e3   : > { %v1017_v22 = vmul.f32 0.35355338, %v1014_v21  ;;  %v1107_v21 = vld [vmem:[%s3443_s6 + $0x38] sm:$0xff] }
 0x8e5   : > { %v1018_v23 = vadd.f32 %v1017_v22, %v2828_v17  ;;  %v1106_v22 = vld [vmem:[%s3443_s6 + $0x30] sm:$0xff] }
 0x8e7   : > { %v1019_v24 = vsel %vm303_vm0, %v1018_v23, -inf }
 0x8e8   : > { %1020 = vmax.xlane.f32.xlu2 %v1019_v24  ;;  %v1104_v24 = vld [vmem:[%s3443_s6 + $0x20] sm:$0xff] }
 0x95b   : > { %v1021_v25 = vpop.xlane.xlu2 %1020 }
 0x95c   : > { %v1022_v26 = vsub.f32 %v1018_v23, %v1021_v25  ;;  %v1105_v23 = vld [vmem:[%s3443_s6 + $0x28] sm:$0xff]  ;;  %v1103_v25 = vld [vmem:[%s3443_s6 + $0x18] sm:$0xff] }
 0x95e   : > { %v1023_v27 = vmul.f32 1.442695, %v1022_v26  ;;  %v1102_v26 = vld [vmem:[%s3443_s6 + $0x10] sm:$0xff] }
 0x960   : > { %2497 = vpow2.f32 %v1023_v27  ;;  %v1101_v27 = vld [vmem:[%s3443_s6 + $0x8] sm:$0xff] }
 0x966   : > { %v2498_v28 = vpop.eup %2497 }
 0x967   : > { %v1025_v29 = vsel %vm303_vm0, %v2498_v28, 0.0 }
 0x968   : > { %1026 = vadd.xlane.f32.xlu1 %v1025_v29  ;;  %v2465_v29 = vld [vmem:[%s3442_s5 + $0x20] ss:$0 sm:$0xff] }
 0x9db   : > { %v1027_v30 = vpop.xlane.xlu1 %1026 }
 0x9dc   : > { %2499 = vrcp.f32 %v1027_v30  ;;  %v1039_v34 = vand.u32 2147483648, %v1027_v30  ;;  %v1037_v36 = vand.u32 2147483647, %v1027_v30  ;;  %vm1033_vm6 = vweird.f32 %v1027_v30 }
 0x9de   : > { %v1040_v38 = vor.u32 1.1754944e-38, %v1039_v34  ;;  %vm1038_vm8 = vcmp.eq.f32.partialorder %v1037_v36, 8.507059e+37 }
 0x9e2   : > { %v2500_v31 = vpop.eup %2499 }
 0x9e3   : > { %v1029_v32 = vmul.f32 %v2500_v31, %v1027_v30  ;;  %vm1034_vm5 = vweird.f32 %v2500_v31 }
 0x9e4   : > { %vm1035_vm7 = vmor %vm1033_vm6, %vm1034_vm5 }
 0x9e5   : > { %v1030_v33 = vsub.f32 1.0, %v1029_v32 }
 0x9e7   : > { %v1031_v35 = vmul.f32 %v2500_v31, %v1030_v33 }
 0x9e9   : > { %v1032_v37 = vadd.f32 %v2500_v31, %v1031_v35 }
 0x9eb   : > { %v1036_v39 = vsel %vm1035_vm7, %v2500_v31, %v1032_v37 }
 0x9ec   : > { %v1041_v40 = vsel %vm1038_vm8, %v1040_v38, %v1036_v39 }
 0x9ed   : > { %v1042_v41 = vmul.f32 %v2498_v28, %v1041_v40  ;;  %v1100_v28 = vld [vmem:[%s3443_s6] sm:$0xff] }
 0x9ef   : > { %2288 = vmatmul.msk.f32.vlgmr.msrb.gmra.mxu3 %vm303_vm0, %v1042_v41  ;;  %v2466_v41 = vld [vmem:[%s3443_s6 + $0x80] ss:$0 sm:$0xff] }
 0xa72   : > { %v1063_v43 = vpop.f32.mrf.mxu3 }
 0xa73   : > { %2290 = vmatmul.msk.f32.vlgmr.msra.gmra.mxu0 %vm303_vm0, %v1063_v43 }
 0xaf0   : > { %v1088_v44 = vpop.f32.mrf.mxu0 }
 0xaf1   : > { %v1091_v45 = vadd.f32 %v1088_v44, %v909_v55  ;;  %v1108_v55 = vld [vmem:[%s3443_s6 + $0x40] sm:$0xff] }
 0xaf2   : > { %1183 = vmatpush.msrb.mxu2 %v1108_v55  ;;  %v1221_v55 = vperm.slane %v2764_v47, 7  ;;  %v2467_v47 = vld [vmem:[%s3440_s3 + $0x2a0] ss:$0 sm:$0xff] }
 0xaf3   : > { %v1092_v48 = vadd.f32 %v1091_v45, %v2703_v10  ;;  %v1097_v10 = vld [vmem:[%s3442_s5 + $0x10] sm:$0xff] }
 0xaf4   : > { %1160 = vmatpush.msrb.mxu1 %v1097_v10  ;;  %1184 = vmatpush.msrb.mxu2 %v1107_v21  ;;  %v2299_v10 = vld [vmem:[%s3440_s3 + $0x290] sm:$0xff] }
 0xaf5   : > { %v2977_v49 = vadd.f32 %v1093_v46, %v1092_v48 }
 0xaf6   : > { %1161 = vmatpush.msrb.mxu1 %v1096_v58  ;;  %1185 = vmatpush.msrb.mxu2 %v1106_v22  ;;  %v2304_v58 = vld [vmem:[%s3440_s3 + $0x330] sm:$0xff]  ;;  %v1223_v22 = vperm.slane %v3126_v19, 0 }
 0xaf7   : > { %v1117_v50 = vsel %vm328_vm2, %v2977_v49, 0.0 }
 0xaf8   : > { %1118 = vadd.xlane.f32.xlu2 %v1117_v50  ;;  %1162 = vmatpush.msrb.mxu1 %v1095_v59  ;;  %v2340_v59 = vld [vmem:[%s3440_s3 + $0x240] sm:$0xff] }
 0xaf9   : > { %1186 = vmatpush.msrb.mxu2 %v1105_v23 }
 0xafb   : > { %1187 = vmatpush.msrb.mxu2 %v1104_v24 }
 0xafd   : > { %1188 = vmatpush.msrb.mxu2 %v1103_v25 }
 0xaff   : > { %1189 = vmatpush.msrb.mxu2 %v1102_v26  ;;  %v2468_v26 = vld [vmem:[%s3440_s3 + $0x340] ss:$0 sm:$0xff] }
 0xb01   : > { %1190 = vmatpush.msrb.mxu2 %v1101_v27 }
 0xb03   : > { %1191 = vmatpush.msrb.mxu2 %v1100_v28 }
 0xb6b   : > { %v1119_v51 = vpop.xlane.xlu2 %1118 }
 0xb6c   : > { %v1120_v52 = vmul.f32 %v1119_v51, %v2707_v18 }
 0xb6e   : > { %v1121_v53 = vsub.f32 %v2977_v49, %v1120_v52 }
 0xb70   : > { %v1122_v54 = vmul.f32 %v1121_v53, %v1121_v53 }
 0xb72   : > { %v1123_v56 = vsel %vm328_vm2, %v1122_v54, 0.0  ;;  %v2305_v54 = vld [vmem:[%s3440_s3 + $0x338] sm:$0xff] }
 0xb73   : > { %1124 = vadd.xlane.f32.xlu1 %v1123_v56  ;;  %v2341_v56 = vld [vmem:[%s3440_s3 + $0x248] sm:$0xff]  ;;  %1301 = vmatpush.msra.mxu1 %v2305_v54 }
 0xb74   : > { %1621 = vmatpush.msra.mxu2 %v2341_v56 }
 0xb75   : > { %1302 = vmatpush.msra.mxu1 %v2304_v58 }
 0xb76   : > { %1622 = vmatpush.msra.mxu2 %v2340_v59  ;;  %v2327_v59 = vld [vmem:[%s3440_s3 + $0x360] sm:$0xff] }
 0xb77   : > { %1303 = vmatpush.msra.mxu1 %v2303_v62  ;;  %v2324_v62 = vld [vmem:[%s3440_s3 + $0x348] sm:$0xff] }
 0xbe6   : > { %v1125_v63 = vpop.xlane.xlu1 %1124 }
 0xbe7   : > { %v1126_v0 = vmul.f32 %v1125_v63, %v2707_v18  ;;  %v2339_v63 = vld [vmem:[%s3440_s3 + $0x238] sm:$0xff] }
 0xbe8   : > { %1623 = vmatpush.msra.mxu2 %v2339_v63 }
 0xbe9   : > { %v1127_v1 = vadd.f32 1e-05, %v1126_v0  ;;  %v2292_v0 = vld [vmem:[%s3440_s3 + $0x1e0] sm:$0xff] }
 0xbeb   : > { %2501 = vrsqrt.f32 %v1127_v1  ;;  %vm1134_vm10 = vweird.f32 %v1127_v1 }
 0xbf1   : > { %v2502_v2 = vpop.eup %2501 }
 0xbf2   : > { %v1129_v3 = vmul.f32 %v2502_v2, %v1127_v1  ;;  %vm1135_vm9 = vweird.f32 %v2502_v2  ;;  %v2297_v1 = vld [vmem:[%s3440_s3 + $0x280] sm:$0xff] }
 0xbf3   : > { %vm1136_vm11 = vmor %vm1134_vm10, %vm1135_vm9 }
 0xbf4   : > { %v1130_v4 = vmul.f32 %v2502_v2, %v1129_v3  ;;  %v2338_v3 = vld [vmem:[%s3440_s3 + $0x230] sm:$0xff] }
 0xbf5   : > { %1624 = vmatpush.msra.mxu2 %v2338_v3 }
 0xbf6   : > { %v1131_v5 = vmul.f32 0.5, %v1130_v4  ;;  %v2317_v4 = vld [vmem:[%s3440_s3 + $0x220] sm:$0xff] }
 0xbf8   : > { %v1132_v6 = vsub.f32 1.5, %v1131_v5  ;;  %v2316_v5 = vld [vmem:[%s3440_s3 + $0x218] sm:$0xff] }
 0xbfa   : > { %v1133_v7 = vmul.f32 %v2502_v2, %v1132_v6 }
 0xbfc   : > { %v1137_v9 = vsel %vm1136_vm11, %v2502_v2, %v1133_v7  ;;  %v2302_v2 = vld [vmem:[%s3440_s3 + $0x320] sm:$0xff]  ;;  %v2315_v7 = vld [vmem:[%s3440_s3 + $0x210] sm:$0xff] }
 0xbfd   : > { %v1138_v11 = vmul.f32 %v1137_v9, %v1121_v53  ;;  %v2295_v53 = vld [vmem:[%s3440_s3 + $0x1f8] sm:$0xff]  ;;  %1304 = vmatpush.msra.mxu1 %v2302_v2  ;;  %v2314_v9 = vld [vmem:[%s3440_s3 + $0x208] sm:$0xff] }
 0xbfe   : > { %1259 = vmatpush.msra.mxu3 %v2295_v53 }
 0xbff   : > { %v1140_v13 = vmul.f32 %v1139_v8, %v1138_v11 }
 0xc00   : > { %1260 = vmatpush.msra.mxu3 %v2294_v57 }
 0xc01   : > { %v1142_v14 = vadd.f32 %v1141_v12, %v1140_v13 }
 0xc02   : > { %1261 = vmatpush.msra.mxu3 %v2293_v60  ;;  %v2326_v60 = vld [vmem:[%s3440_s3 + $0x358] sm:$0xff] }
 0xc03   : > { %2291 = vmatmul.msk.f32.vlgmr.msrb.gmra.mxu1 %vm328_vm2, %v1142_v14 }
 0xc04   : > { %1262 = vmatpush.msra.mxu3 %v2292_v0  ;;  %1417 = vmatpush.msrb.mxu1 %v2317_v4 }
 0xc06   : > { %1418 = vmatpush.msrb.mxu1 %v2316_v5 }
 0xc08   : > { %1419 = vmatpush.msrb.mxu1 %v2315_v7 }
 0xc0a   : > { %1420 = vmatpush.msrb.mxu1 %v2314_v9 }
 0xc80   : > { %v1164_v30 = vpop.f32.mrf.mxu1 }
 0xc81   : > { %v1165_v31 = vadd.f32 %v2465_v29, %v1164_v30  ;;  %v2322_v30 = vld [vmem:[%s3440_s3 + $0x2c0] sm:$0xff] }
 0xc83   : > { %v1167_v32 = vmul.f32 %v1165_v31, %v1165_v31 }
 0xc85   : > { %v1168_v33 = vmul.f32 %v1167_v32, %v1165_v31  ;;  %v2469_v32 = vld [vmem:[%s3440_s3 + $0x200] ss:$0 sm:$0xff] }
 0xc87   : > { %v1169_v34 = vmul.f32 0.044715, %v1168_v33  ;;  %v2321_v33 = vld [vmem:[%s3440_s3 + $0x2b8] sm:$0xff] }
 0xc89   : > { %v1170_v35 = vadd.f32 %v1169_v34, %v1165_v31  ;;  %v2320_v34 = vld [vmem:[%s3440_s3 + $0x2b0] sm:$0xff] }
 0xc8b   : > { %v1171_v36 = vmul.f32 0.7978846, %v1170_v35 }
 0xc8d   : > { %2503 = vtanh.f32 %v1171_v36 }
 0xc93   : > { %v2504_v37 = vpop.eup %2503 }
 0xc94   : > { %v1173_v38 = vadd.f32 1.0, %v2504_v37  ;;  %v2319_v37 = vld [vmem:[%s3440_s3 + $0x2a8] sm:$0xff] }
 0xc96   : > { %v1174_v39 = vmul.f32 0.5, %v1173_v38 }
 0xc98   : > { %v1175_v40 = vmul.f32 %v1174_v39, %v1165_v31 }
 0xc9a   : > { %1192 = vmatmul.f32.vlgmr.msrb.gmra.mxu2 %v1175_v40 }
 0xd1d   : > { %v1193_v42 = vpop.f32.mrf.mxu2 }
 0xd1e   : > { %v1196_v43 = vadd.f32 %v1193_v42, %v2977_v49  ;;  %v2300_v49 = vld [vmem:[%s3440_s3 + $0x298] sm:$0xff]  ;;  %v2472_v42 = vld [vmem:[%s3440_s3 + $0x2c8] ss:$0 sm:$0xff] }
 0xd1f   : > { %1280 = vmatpush.msrb.mxu0 %v2300_v49 }
 0xd20   : > { %v3055_v44 = vadd.f32 %v2466_v41, %v1196_v43  ;;  %v2471_v43 = vld [vmem:[%s3440_s3 + $0x228] ss:$0 sm:$0xff] }
 0xd21   : > { %1281 = vmatpush.msrb.mxu0 %v2299_v10 }
 0xd22   : > { %v1199_v45 = vsel %vm328_vm2, %v3055_v44, 0.0 }
 0xd23   : > { %1200 = vadd.xlane.f32.xlu2 %v1199_v45  ;;  %1282 = vmatpush.msrb.mxu0 %v2298_v61  ;;  %v2325_v61 = vld [vmem:[%s3440_s3 + $0x350] sm:$0xff] }
 0xd25   : > { %1283 = vmatpush.msrb.mxu0 %v2297_v1 }
 0xd96   : > { %v1201_v46 = vpop.xlane.xlu2 %1200 }
 0xd97   : > { %v1202_v48 = vmul.f32 %v1201_v46, %v2707_v18 }
 0xd99   : > { %v1203_v50 = vsub.f32 %v3055_v44, %v1202_v48 }
 0xd9b   : > { %v1204_v51 = vmul.f32 %v1203_v50, %v1203_v50 }
 0xd9d   : > { %v1205_v52 = vsel %vm328_vm2, %v1204_v51, 0.0 }
 0xd9e   : > { %1206 = vadd.xlane.f32.xlu1 %v1205_v52 }
 0xe11   : > { %v1207_v6 = vpop.xlane.xlu1 %1206 }
 0xe12   : > { %v1208_v8 = vmul.f32 %v1207_v6, %v2707_v18 }
 0xe14   : > { %v1209_v11 = vadd.f32 1e-05, %v1208_v8 }
 0xe16   : > { %2505 = vrsqrt.f32 %v1209_v11  ;;  %vm1216_vm13 = vweird.f32 %v1209_v11 }
 0xe1c   : > { %v2506_v12 = vpop.eup %2505 }
 0xe1d   : > { %v1211_v13 = vmul.f32 %v2506_v12, %v1209_v11  ;;  %vm1217_vm12 = vweird.f32 %v2506_v12 }
 0xe1e   : > { %vm1218_vm14 = vmor %vm1216_vm13, %vm1217_vm12 }
 0xe1f   : > { %v1212_v14 = vmul.f32 %v2506_v12, %v1211_v13 }
 0xe21   : > { %v1213_v15 = vmul.f32 0.5, %v1212_v14 }
 0xe23   : > { %v1214_v16 = vsub.f32 1.5, %v1213_v15 }
 0xe25   : > { %v1215_v20 = vmul.f32 %v2506_v12, %v1214_v16 }
 0xe27   : > { %v1219_v21 = vsel %vm1218_vm14, %v2506_v12, %v1215_v20  ;;  %v2313_v20 = vld [vmem:[%s3441_s4 + $0x20] sm:$0xff] }
 0xe28   : > { %v1220_v23 = vmul.f32 %v1219_v21, %v1203_v50 }
 0xe2a   : > { %v1222_v24 = vmul.f32 %v1221_v55, %v1220_v23 }
 0xe2c   : > { %v3130_v25 = vadd.f32 %v1223_v22, %v1222_v24 }
 0xe2e   : > { %2307 = vmatmul.msk.f32.vlgmr.msra.gmra.mxu3 %vm328_vm2, %v3130_v25  ;;  %2308 = vmatmul.msk.f32.vlgmr.msrb.gmra.mxu0 %vm328_vm2, %v3130_v25 }
 0xe2f   : > { %2309 = vmatmul.msk.f32.vlgmr.msra.gmra.mxu1 %vm328_vm2, %v3130_v25  ;;  %2353 = vmatmul.msk.f32.vlgmr.msra.gmra.mxu2 %vm328_vm2, %v3130_v25 }
 0xe37   : > { %2329 = vmatmul.msk.f32.vlgmr.msrb.gmra.mxu1 %vm328_vm2, %v3130_v25 }
 0xeab   : > { %v1285_v27 = vpop.f32.mrf.mxu0 }
 0xeac   : > { %v1286_v28 = vadd.f32 %v2467_v47, %v1285_v27  ;;  %v1306_v29 = vpop.f32.mrf.mxu1 }
 0xead   : > { %v1307_v31 = vadd.f32 %v2468_v26, %v1306_v29  ;;  %v2473_v26 = vld [vmem:[%s3440_s3 + $0x368] ss:$0 sm:$0xff] }
 0xeae   : > { %2310 = vmatpush.xpose.msk.msrb.mxu3 %vm303_vm0, %v1286_v28 }
 0xeaf   : > { %1379 = vmatpush.msra.mxu0 %v1307_v31 }
 0xeb1   : > { %v1264_v35 = vpop.f32.mrf.mxu3  ;;  %1459 = vmatpush.msrb.mxu0 %v2327_v59  ;;  %v2368_v59 = vld [vmem:[%s3440_s3 + $0x308] sm:$0xff] }
 0xeb2   : > { %1438 = vmatpush.msra.mxu3 %v2322_v30  ;;  %v1265_v36 = vadd.f32 %v2469_v32, %v1264_v35 }
 0xeb3   : > { %1460 = vmatpush.msrb.mxu0 %v2326_v60  ;;  %v2367_v60 = vld [vmem:[%s3440_s3 + $0x300] sm:$0xff] }
 0xeb4   : > { %1439 = vmatpush.msra.mxu3 %v2321_v33  ;;  %v1422_v46 = vpop.f32.mrf.mxu1  ;;  %v2346_v33 = vld [vmem:[%s3440_s3 + $0x2e8] sm:$0xff] }
 0xeb5   : > { %2311 = vmatmul.msk.f32.vlgmr.msrb.gmra.mxu3 %vm303_vm0, %v1265_v36  ;;  %v1423_v50 = vadd.f32 %v2471_v43, %v1422_v46  ;;  %1461 = vmatpush.msrb.mxu0 %v2325_v61  ;;  %v2349_v43 = vld [vmem:[%s3440_s3 + $0x378] sm:$0xff]  ;;  %v2364_v46 = vld [vmem:[%s3440_s3 + $0x270] sm:$0xff] }
 0xeb6   : > { %1440 = vmatpush.msra.mxu3 %v2320_v34  ;;  %v2366_v61 = vld [vmem:[%s3440_s3 + $0x2f8] sm:$0xff] }
 0xeb7   : > { %1462 = vmatpush.msrb.mxu0 %v2324_v62  ;;  %v2359_v62 = vld [vmem:[%s3441_s4 + $0x30] sm:$0xff] }
 0xeb8   : > { %1441 = vmatpush.msra.mxu3 %v2319_v37  ;;  %v2345_v37 = vld [vmem:[%s3440_s3 + $0x2e0] sm:$0xff] }
 0xebd   : > { %2330 = vmatmul.msk.f32.vlgmr.msra.gmra.mxu3 %vm328_vm2, %v3130_v25 }
 0xf38   : > { %v1332_v38 = vpop.f32.mrf.mxu3 }
 0xf39   : > { %v1335_v39 = vmul.f32 0.35355338, %v1332_v38  ;;  %v2344_v38 = vld [vmem:[%s3440_s3 + $0x2d8] sm:$0xff] }
 0xf3b   : > { %v1336_v40 = vadd.f32 %v1335_v39, %v2828_v17  ;;  %v2343_v39 = vld [vmem:[%s3440_s3 + $0x2d0] sm:$0xff] }
 0xf3d   : > { %v1337_v41 = vsel %vm303_vm0, %v1336_v40, -inf }
 0xf3e   : > { %1338 = vmax.xlane.f32.xlu2 %v1337_v41  ;;  %v2351_v41 = vld [vmem:[%s3440_s3 + $0x388] sm:$0xff] }
 0xf40   : > { %v1443_v45 = vpop.f32.mrf.mxu3 }
 0xf41   : > { %v1444_v48 = vadd.f32 %v2472_v42, %v1443_v45  ;;  %v2350_v42 = vld [vmem:[%s3440_s3 + $0x380] sm:$0xff]  ;;  %v2348_v45 = vld [vmem:[%s3440_s3 + $0x370] sm:$0xff] }
 0xf43   : > { %2332 = vmatpush.xpose.msk.msra.mxu1 %vm303_vm0, %v1444_v48 }
 0xf46   : > { %2333 = vmatmul.msk.f32.vlgmr.msra.gmra.mxu1 %vm303_vm0, %v1423_v50  ;;  %v2363_v50 = vld [vmem:[%s3440_s3 + $0x268] sm:$0xff] }
 0xf47   : > { %1585 = vmatpush.msrb.mxu1 %v2313_v20 }
 0xfb1   : > { %v1339_v51 = vpop.xlane.xlu2 %1338 }
 0xfb2   : > { %v1340_v52 = vsub.f32 %v1336_v40, %v1339_v51  ;;  %v2335_v40 = vld [vmem:[%s3441_s4 + $0x28] sm:$0xff]  ;;  %v2362_v51 = vld [vmem:[%s3440_s3 + $0x260] sm:$0xff] }
 0xfb4   : > { %v1341_v53 = vmul.f32 1.442695, %v1340_v52  ;;  %v2474_v52 = vld [vmem:[%s3440_s3 + $0x2f0] ss:$0 sm:$0xff] }
 0xfb6   : > { %2507 = vpow2.f32 %v1341_v53  ;;  %v2361_v53 = vld [vmem:[%s3440_s3 + $0x258] sm:$0xff] }
 0xfbc   : > { %v2508_v49 = vpop.eup %2507 }
 0xfbd   : > { %v1343_v54 = vsel %vm303_vm0, %v2508_v49, 0.0 }
 0xfbe   : > { %1344 = vadd.xlane.f32.xlu0 %v1343_v54 }
 0xfc3   : > { %v1490_v56 = vpop.f32.mrf.mxu1 }
 0xfc4   : > { %v1493_v57 = vmul.f32 0.35355338, %v1490_v56  ;;  %v1626_v56 = vpop.f32.mrf.mxu2 }
 0xfc6   : > { %v1494_v10 = vadd.f32 %v1493_v57, %v2828_v17 }
 0xfc8   : > { %v1495_v58 = vsel %vm303_vm0, %v1494_v10, -inf }
 0xfc9   : > { %1496 = vmax.xlane.f32.xlu1 %v1495_v58 }
0x1031   : > { %v1345_v63 = vpop.xlane.xlu0 %1344 }
0x1032   : > { %2509 = vrcp.f32 %v1345_v63  ;;  %v1357_v3 = vand.u32 2147483648, %v1345_v63  ;;  %v1355_v6 = vand.u32 2147483647, %v1345_v63  ;;  %vm1351_vm1 = vweird.f32 %v1345_v63 }
0x1034   : > { %v1358_v11 = vor.u32 1.1754944e-38, %v1357_v3  ;;  %vm1356_vm4 = vcmp.eq.f32.partialorder %v1355_v6, 8.507059e+37 }
0x1038   : > { %v2510_v0 = vpop.eup %2509 }
0x1039   : > { %v1347_v1 = vmul.f32 %v2510_v0, %v1345_v63  ;;  %vm1352_vm15 = vweird.f32 %v2510_v0 }
0x103a   : > { %vm1353_vm3 = vmor %vm1351_vm1, %vm1352_vm15 }
0x103b   : > { %v1348_v2 = vsub.f32 1.0, %v1347_v1 }
0x103c   : > { %v1497_v4 = vpop.xlane.xlu1 %1496 }
0x103d   : > { %v1349_v5 = vmul.f32 %v2510_v0, %v1348_v2  ;;  %v1498_v7 = vsub.f32 %v1494_v10, %v1497_v4  ;;  %v2369_v10 = vld [vmem:[%s3440_s3 + $0x310] sm:$0xff] }
0x103e   : > { %v2475_v2 = vld [vmem:[%s3440_s3 + $0x390] ss:$0 sm:$0xff] }
0x103f   : > { %v1350_v8 = vadd.f32 %v2510_v0, %v1349_v5  ;;  %v1499_v9 = vmul.f32 1.442695, %v1498_v7 }
0x1041   : > { %v1354_v12 = vsel %vm1353_vm3, %v2510_v0, %v1350_v8  ;;  %2511 = vpow2.f32 %v1499_v9  ;;  %v2477_v9 = vld [vmem:[%s3440_s3 + $0x318] ss:$0 sm:$0xff] }
0x1042   : > { %v1359_v13 = vsel %vm1356_vm4, %v1358_v11, %v1354_v12 }
0x1043   : > { %v1360_v14 = vmul.f32 %v2508_v49, %v1359_v13  ;;  %v2470_v49 = vld [vmem:[%s3440_s3 + $0x250] ss:$0 sm:$0xff] }
0x1044   : > { %v1627_v58 = vadd.f32 %v2470_v49, %v1626_v56 }
0x1045   : > { %2312 = vmatmul.msk.f32.vlgmr.msra.gmra.mxu0 %vm303_vm0, %v1360_v14 }
0x1046   : > { %1562 = vmatpush.msra.mxu0 %v2335_v40 }
0x1047   : > { %v2512_v15 = vpop.eup %2511 }
0x1048   : > { %v1501_v16 = vsel %vm303_vm0, %v2512_v15, 0.0 }
0x1049   : > { %1502 = vadd.xlane.f32.xlu2 %v1501_v16 }
0x104d   : > { %2331 = vmatmul.msk.f32.vlgmr.msrb.gmra.mxu0 %vm328_vm2, %v3130_v25 }
0x104e   : > { %1663 = vmatpush.msrb.mxu0 %v2351_v41 }
0x1050   : > { %1664 = vmatpush.msrb.mxu0 %v2350_v42 }
0x1052   : > { %1665 = vmatpush.msrb.mxu0 %v2349_v43 }
0x1054   : > { %1666 = vmatpush.msrb.mxu0 %v2348_v45 }
0x10bc   : > { %v1503_v55 = vpop.xlane.xlu2 %1502 }
0x10bd   : > { %2513 = vrcp.f32 %v1503_v55  ;;  %v1515_v47 = vand.u32 2147483648, %v1503_v55  ;;  %v1513_v28 = vand.u32 2147483647, %v1503_v55  ;;  %vm1509_vm6 = vweird.f32 %v1503_v55 }
0x10bf   : > { %v1516_v31 = vor.u32 1.1754944e-38, %v1515_v47  ;;  %vm1514_vm8 = vcmp.eq.f32.partialorder %v1513_v28, 8.507059e+37 }
0x10c2   : > { %v1381_v21 = vpop.f32.mrf.mxu0 }
0x10c3   : > { %v2514_v22 = vpop.eup %2513  ;;  %2337 = vmatmul.msk.f32.vlgmr.msrb.gmra.mxu1 %vm303_vm0, %v1381_v21  ;;  %v2373_v21 = vld [vmem:[%s3440_s3 + $0x3a8] sm:$0xff] }
0x10c4   : > { %v1505_v23 = vmul.f32 %v2514_v22, %v1503_v55  ;;  %vm1510_vm5 = vweird.f32 %v2514_v22  ;;  %v2374_v55 = vld [vmem:[%s3440_s3 + $0x3b0] sm:$0xff] }
0x10c5   : > { %vm1511_vm7 = vmor %vm1509_vm6, %vm1510_vm5  ;;  %vm2112_vm6 = vcmask 57344  }
0x10c6   : > { %v1506_v24 = vsub.f32 1.0, %v1505_v23  ;;  %v2371_v23 = vld [vmem:[%s3440_s3 + $0x398] sm:$0xff] }
0x10c8   : > { %v1507_v27 = vmul.f32 %v2514_v22, %v1506_v24 }
0x10ca   : > { %v1508_v29 = vadd.f32 %v2514_v22, %v1507_v27  ;;  %v1464_v30 = vpop.f32.mrf.mxu0 }
0x10cb   : > { %v1465_v32 = vadd.f32 %v2473_v26, %v1464_v30 }
0x10cc   : > { %v1512_v34 = vsel %vm1511_vm7, %v2514_v22, %v1508_v29  ;;  %v2372_v22 = vld [vmem:[%s3440_s3 + $0x3a0] sm:$0xff] }
0x10cd   : > { %v1517_v35 = vsel %vm1514_vm8, %v1516_v31, %v1512_v34  ;;  %1537 = vmatpush.msrb.mxu3 %v1465_v32 }
0x10ce   : > { %v1518_v36 = vmul.f32 %v2512_v15, %v1517_v35 }
0x10cf   : > { %1642 = vmatpush.msra.mxu3 %v2346_v33 }
0x10d0   : > { %2334 = vmatmul.msk.f32.vlgmr.msrb.gmra.mxu3 %vm303_vm0, %v1518_v36 }
0x10d1   : > { %1643 = vmatpush.msra.mxu3 %v2345_v37  ;;  %v2476_v37 = vld [vmem:[%s3440_s3 + $0x278] ss:$0 sm:$0xff] }
0x10d3   : > { %1644 = vmatpush.msra.mxu3 %v2344_v38 }
0x10d5   : > { %1645 = vmatpush.msra.mxu3 %v2343_v39  ;;  %v2478_v39 = vld [vmem:[%s3440_s3 + $0x3b8] ss:$0 sm:$0xff] }
0x10d7   : > { %1766 = vmatpush.msrb.mxu3 %v2359_v62 }
0x10d8   : > { %2354 = vmatmul.msk.f32.vlgmr.msra.gmra.mxu3 %vm328_vm2, %v3130_v25 }
0x1140   : > { %v1587_v63 = vpop.f32.mrf.mxu1 }
0x1153   : > { %v1539_v48 = vpop.f32.mrf.mxu3 }
0x1154   : > { %2336 = vmatmul.msk.f32.vlgmr.msra.gmra.mxu0 %vm303_vm0, %v1539_v48 }
0x1155   : > { %1803 = vmatpush.msra.mxu0 %v2364_v46 }
0x1157   : > { %1804 = vmatpush.msra.mxu0 %v2363_v50 }
0x1159   : > { %1805 = vmatpush.msra.mxu0 %v2362_v51 }
0x115b   : > { %v1647_v54 = vpop.f32.mrf.mxu3  ;;  %1806 = vmatpush.msra.mxu0 %v2361_v53 }
0x115c   : > { %v1648_v57 = vadd.f32 %v2474_v52, %v1647_v54  ;;  %2355 = vmatmul.msk.f32.vlgmr.msrb.gmra.mxu0 %vm328_vm2, %v3130_v25 }
0x115e   : > { %2356 = vmatpush.xpose.msk.msra.mxu1 %vm303_vm0, %v1648_v57 }
0x1161   : > { %2357 = vmatmul.msk.f32.vlgmr.msra.gmra.mxu1 %vm303_vm0, %v1627_v58 }
0x1162   : > { %1824 = vmatpush.msrb.mxu1 %v2369_v10 }
0x1164   : > { %1825 = vmatpush.msrb.mxu1 %v2368_v59  ;;  %2376 = vmatmul.msk.f32.vlgmr.msra.gmra.mxu0 %vm328_vm2, %v3130_v25 }
0x1166   : > { %1826 = vmatpush.msrb.mxu1 %v2367_v60 }
0x1168   : > { %1827 = vmatpush.msrb.mxu1 %v2366_v61 }
0x1169   : > { %2377 = vmatmul.msk.f32.vlgmr.msrb.gmra.mxu1 %vm328_vm2, %v3130_v25 }
0x11d1   : > { %v1564_v0 = vpop.f32.mrf.mxu0 }
0x11d2   : > { %v1588_v1 = vadd.f32 %v1587_v63, %v1564_v0 }
0x11d9   : > { %v1668_v3 = vpop.f32.mrf.mxu0 }
0x11da   : > { %v1669_v4 = vadd.f32 %v2475_v2, %v1668_v3  ;;  %v2382_v2 = vld [vmem:[%s3441_s4 + $0x38] sm:$0xff] }
0x11db   : > { %1948 = vmatpush.msra.mxu1 %v2382_v2 }
0x11dc   : > { %1741 = vmatpush.msrb.mxu2 %v1669_v4 }
0x11de   : > { %v1694_v5 = vpop.f32.mrf.mxu1  ;;  %1845 = vmatpush.msra.mxu2 %v2374_v55  ;;  %v2384_v55 = vld [vmem:[%s3442_s5 + $0x28] sm:$0xff] }
0x11df   : > { %v1697_v6 = vmul.f32 0.35355338, %v1694_v5 }
0x11e0   : > { %1846 = vmatpush.msra.mxu2 %v2373_v21  ;;  %v2404_v21 = vld [vmem:[%s3443_s6 + $0x100] sm:$0xff] }
0x11e1   : > { %v1698_v7 = vadd.f32 %v1697_v6, %v2828_v17  ;;  %v1808_v38 = vpop.f32.mrf.mxu0  ;;  %v1955_v6 = vperm.slane %v3126_v19, 3 }
0x11e2   : > { %1847 = vmatpush.msra.mxu2 %v2372_v22  ;;  %v1809_v40 = vadd.f32 %v2476_v37, %v1808_v38  ;;  %v2403_v22 = vld [vmem:[%s3443_s6 + $0xf8] sm:$0xff] }
0x11e3   : > { %v1699_v8 = vsel %vm303_vm0, %v1698_v7, -inf }
0x11e4   : > { %1700 = vmax.xlane.f32.xlu0 %v1699_v8  ;;  %1848 = vmatpush.msra.mxu2 %v2371_v23  ;;  %v2402_v23 = vld [vmem:[%s3443_s6 + $0xf0] sm:$0xff] }
0x11e6   : > { %v1829_v11 = vpop.f32.mrf.mxu1 }
0x11e7   : > { %v1830_v12 = vadd.f32 %v2477_v9, %v1829_v11 }
0x11e9   : > { %2379 = vmatpush.xpose.msk.msra.mxu3 %vm303_vm0, %v1830_v12 }
0x1257   : > { %v1701_v13 = vpop.xlane.xlu0 %1700 }
0x1258   : > { %v1702_v14 = vsub.f32 %v1698_v7, %v1701_v13 }
0x125a   : > { %v1703_v15 = vmul.f32 1.442695, %v1702_v14 }
0x125c   : > { %2515 = vpow2.f32 %v1703_v15 }
0x1262   : > { %v2516_v16 = vpop.eup %2515 }
0x1263   : > { %v1705_v20 = vsel %vm303_vm0, %v2516_v16, 0.0 }
0x1264   : > { %1706 = vadd.xlane.f32.xlu1 %v1705_v20  ;;  %v2385_v20 = vld [vmem:[%s3442_s5 + $0x30] sm:$0xff] }
0x12d7   : > { %v1707_v24 = vpop.xlane.xlu1 %1706 }
0x12d8   : > { %2517 = vrcp.f32 %v1707_v24  ;;  %v1719_v28 = vand.u32 2147483648, %v1707_v24  ;;  %v1717_v30 = vand.u32 2147483647, %v1707_v24  ;;  %vm1713_vm10 = vweird.f32 %v1707_v24 }
0x12da   : > { %v1720_v32 = vor.u32 1.1754944e-38, %v1719_v28  ;;  %vm1718_vm12 = vcmp.eq.f32.partialorder %v1717_v30, 8.507059e+37 }
0x12de   : > { %v2518_v47 = vpop.eup %2517 }
0x12df   : > { %v1709_v26 = vmul.f32 %v2518_v47, %v1707_v24  ;;  %vm1714_vm9 = vweird.f32 %v2518_v47 }
0x12e0   : > { %vm1715_vm11 = vmor %vm1713_vm10, %vm1714_vm9  ;;  %vm2119_vm9 = vcmask 253952  }
0x12e1   : > { %v1710_v27 = vsub.f32 1.0, %v1709_v26 }
0x12e3   : > { %v1711_v29 = vmul.f32 %v2518_v47, %v1710_v27 }
0x12e5   : > { %v1712_v31 = vadd.f32 %v2518_v47, %v1711_v29 }
0x12e7   : > { %v1716_v33 = vsel %vm1715_vm11, %v2518_v47, %v1712_v31 }
0x12e8   : > { %v1721_v34 = vsel %vm1718_vm12, %v1720_v32, %v1716_v33  ;;  %v2003_v33 = vperm.slane %v3126_v19, 1 }
0x12e9   : > { %v1722_v35 = vmul.f32 %v2516_v16, %v1721_v34  ;;  %v2387_v16 = vld [vmem:[%s3442_s5 + $0x40] sm:$0xff] }
0x12eb   : > { %2358 = vmatmul.msk.f32.vlgmr.msrb.gmra.mxu2 %vm303_vm0, %v1722_v35 }
0x12ec   : > { %2023 = vmatpush.msrb.mxu2 %v2387_v16 }
0x12f3   : > { %2378 = vmatmul.msk.f32.vlgmr.msra.gmra.mxu2 %vm328_vm2, %v3130_v25 }
0x136e   : > { %v1743_v36 = vpop.f32.mrf.mxu2 }
0x136f   : > { %2360 = vmatmul.msk.f32.vlgmr.msrb.gmra.mxu3 %vm303_vm0, %v1743_v36  ;;  %v2005_v36 = vperm.slane %v3126_v19, 2  ;;  %v2398_v19 = vld [vmem:[%s3443_s6 + $0xd0] sm:$0xff] }
0x1370   : > { %2040 = vmatpush.msrb.mxu3 %v2404_v21 }
0x1372   : > { %2041 = vmatpush.msrb.mxu3 %v2403_v22  ;;  %v2532_v22 = vld [vmem:[%s3439_s2 + $0x18] sm:$0xff] }
0x1374   : > { %2042 = vmatpush.msrb.mxu3 %v2402_v23  ;;  %v2085_v23 = vperm.slane %v2532_v22, 0 }
0x1376   : > { %v1850_v41 = vpop.f32.mrf.mxu2 }
0x1377   : > { %v1851_v42 = vadd.f32 %v2478_v39, %v1850_v41  ;;  %2380 = vmatmul.msk.f32.vlgmr.msra.gmra.mxu3 %vm303_vm0, %v1809_v40  ;;  %v2401_v39 = vld [vmem:[%s3443_s6 + $0xe8] sm:$0xff]  ;;  %v2400_v40 = vld [vmem:[%s3443_s6 + $0xe0] sm:$0xff]  ;;  %v2399_v41 = vld [vmem:[%s3443_s6 + $0xd8] sm:$0xff] }
0x1378   : > { %2043 = vmatpush.msrb.mxu3 %v2401_v39 }
0x1379   : > { %1923 = vmatpush.msrb.mxu0 %v1851_v42  ;;  %v2397_v42 = vld [vmem:[%s3443_s6 + $0xc8] sm:$0xff] }
0x137a   : > { %2044 = vmatpush.msrb.mxu3 %v2400_v40 }
0x137c   : > { %2045 = vmatpush.msrb.mxu3 %v2399_v41 }
0x137e   : > { %2046 = vmatpush.msrb.mxu3 %v2398_v19 }
0x1380   : > { %2047 = vmatpush.msrb.mxu3 %v2397_v42 }
0x13f2   : > { %v1768_v43 = vpop.f32.mrf.mxu3 }
0x13f3   : > { %v1771_v25 = vadd.f32 %v1768_v43, %v1588_v1  ;;  %v2396_v43 = vld [vmem:[%s3443_s6 + $0xc0] sm:$0xff] }
0x13f4   : > { %2048 = vmatpush.msrb.mxu3 %v2396_v43 }
0x13fa   : > { %v1876_v45 = vpop.f32.mrf.mxu3 }
0x13fb   : > { %v1879_v46 = vmul.f32 0.35355338, %v1876_v45  ;;  %v2394_v45 = vld [vmem:[%s3443_s6 + $0xb0] sm:$0xff] }
0x13fd   : > { %v1880_v48 = vadd.f32 %v1879_v46, %v2828_v17  ;;  %v2393_v46 = vld [vmem:[%s3443_s6 + $0xa8] sm:$0xff] }
0x13ff   : > { %v1881_v50 = vsel %vm303_vm0, %v1880_v48, -inf }
0x1400   : > { %1882 = vmax.xlane.f32.xlu2 %v1881_v50  ;;  %v2391_v50 = vld [vmem:[%s3443_s6 + $0x98] sm:$0xff] }
0x1473   : > { %v1883_v51 = vpop.xlane.xlu2 %1882 }
0x1474   : > { %v1884_v52 = vsub.f32 %v1880_v48, %v1883_v51  ;;  %v2392_v48 = vld [vmem:[%s3443_s6 + $0xa0] sm:$0xff]  ;;  %v2390_v51 = vld [vmem:[%s3443_s6 + $0x90] sm:$0xff] }
0x1476   : > { %v1885_v53 = vmul.f32 1.442695, %v1884_v52  ;;  %v2389_v52 = vld [vmem:[%s3443_s6 + $0x88] sm:$0xff] }
0x1478   : > { %2519 = vpow2.f32 %v1885_v53  ;;  %v2479_v53 = vld [vmem:[%s3442_s5 + $0x48] ss:$0 sm:$0xff] }
0x147e   : > { %v2520_v49 = vpop.eup %2519 }
0x147f   : > { %v1887_v54 = vsel %vm303_vm0, %v2520_v49, 0.0 }
0x1480   : > { %1888 = vadd.xlane.f32.xlu0 %v1887_v54 }
0x14f3   : > { %v1889_v56 = vpop.xlane.xlu0 %1888 }
0x14f4   : > { %2521 = vrcp.f32 %v1889_v56  ;;  %v1901_v59 = vand.u32 2147483648, %v1889_v56  ;;  %v1899_v17 = vand.u32 2147483647, %v1889_v56  ;;  %vm1895_vm14 = vweird.f32 %v1889_v56 }
0x14f6   : > { %v1902_v62 = vor.u32 1.1754944e-38, %v1901_v59  ;;  %vm1900_vm1 = vcmp.eq.f32.partialorder %v1899_v17, 8.507059e+37 }
0x14fa   : > { %v2522_v57 = vpop.eup %2521 }
0x14fb   : > { %v1891_v10 = vmul.f32 %v2522_v57, %v1889_v56  ;;  %vm1896_vm13 = vweird.f32 %v2522_v57 }
0x14fc   : > { %vm1897_vm15 = vmor %vm1895_vm14, %vm1896_vm13 }
0x14fd   : > { %v1892_v58 = vsub.f32 1.0, %v1891_v10 }
0x14ff   : > { %v1893_v60 = vmul.f32 %v2522_v57, %v1892_v58 }
0x1501   : > { %v1894_v61 = vadd.f32 %v2522_v57, %v1893_v60 }
0x1503   : > { %v1898_v63 = vsel %vm1897_vm15, %v2522_v57, %v1894_v61 }
0x1504   : > { %v1903_v0 = vsel %vm1900_vm1, %v1902_v62, %v1898_v63  ;;  %v2480_v63 = vld [vmem:[%s3443_s6 + $0x108] ss:$0 sm:$0xff] }
0x1505   : > { %v1904_v1 = vmul.f32 %v2520_v49, %v1903_v0 }
0x1507   : > { %2381 = vmatmul.msk.f32.vlgmr.msrb.gmra.mxu0 %vm303_vm0, %v1904_v1 }
0x1584   : > { %v1925_v3 = vpop.f32.mrf.mxu0 }
0x1585   : > { %2383 = vmatmul.msk.f32.vlgmr.msra.gmra.mxu1 %vm303_vm0, %v1925_v3 }
0x1602   : > { %v1950_v4 = vpop.f32.mrf.mxu1 }
0x1603   : > { %v1953_v5 = vadd.f32 %v1950_v4, %v1771_v25  ;;  %v2395_v25 = vld [vmem:[%s3443_s6 + $0xb8] sm:$0xff] }
0x1604   : > { %2049 = vmatpush.msrb.mxu3 %v2395_v25 }
0x1605   : > { %v1954_v7 = vadd.f32 %v1953_v5, %v3055_v44  ;;  %v2386_v44 = vld [vmem:[%s3442_s5 + $0x38] sm:$0xff] }
0x1606   : > { %2024 = vmatpush.msrb.mxu2 %v2386_v44  ;;  %2050 = vmatpush.msrb.mxu3 %v2394_v45 }
0x1607   : > { %v3318_v8 = vadd.f32 %v1955_v6, %v1954_v7 }
0x1608   : > { %2025 = vmatpush.msrb.mxu2 %v2385_v20  ;;  %2051 = vmatpush.msrb.mxu3 %v2393_v46 }
0x1609   : > { %v1981_v9 = vsel %vm328_vm2, %v3318_v8, 0.0 }
0x160a   : > { %1982 = vadd.xlane.f32.xlu1 %v1981_v9  ;;  %2026 = vmatpush.msrb.mxu2 %v2384_v55 }
0x160b   : > { %2052 = vmatpush.msrb.mxu3 %v2392_v48 }
0x160d   : > { %2053 = vmatpush.msrb.mxu3 %v2391_v50 }
0x160f   : > { %2054 = vmatpush.msrb.mxu3 %v2390_v51 }
0x1611   : > { %2055 = vmatpush.msrb.mxu3 %v2389_v52 }
0x167d   : > { %v1983_v11 = vpop.xlane.xlu1 %1982 }
0x167e   : > { %v1984_v12 = vmul.f32 %v1983_v11, %v2707_v18  ;;  %v2531_v11 = vld [vmem:[%s2825_s17] sm:$0x1] }
0x1680   : > { %v1985_v13 = vsub.f32 %v3318_v8, %v1984_v12  ;;  %v2113_v12 = vsel %vm2112_vm6, %v2531_v11, 0.0 }
0x1682   : > { %v1986_v14 = vmul.f32 %v1985_v13, %v1985_v13 }
0x1684   : > { %v1987_v15 = vsel %vm328_vm2, %v1986_v14, 0.0 }
0x1685   : > { %1988 = vadd.xlane.f32.xlu2 %v1987_v15 }
0x168d   : > { %2114 = vadd.xlane.f32.xlu2 %v2113_v12 }
0x16f8   : > { %v1989_v24 = vpop.xlane.xlu2 %1988 }
0x16f9   : > { %v1990_v47 = vmul.f32 %v1989_v24, %v2707_v18 }
0x16fb   : > { %v1991_v26 = vadd.f32 1e-05, %v1990_v47  ;;  %v2087_v47 = vperm.slane %v2532_v22, 1 }
0x16fd   : > { %2523 = vrsqrt.f32 %v1991_v26  ;;  %vm1998_vm4 = vweird.f32 %v1991_v26 }
0x1703   : > { %v2524_v27 = vpop.eup %2523 }
0x1704   : > { %v1993_v28 = vmul.f32 %v2524_v27, %v1991_v26  ;;  %vm1999_vm3 = vweird.f32 %v2524_v27 }
0x1705   : > { %vm2000_vm5 = vmor %vm1998_vm4, %vm1999_vm3 }
0x1706   : > { %v1994_v29 = vmul.f32 %v2524_v27, %v1993_v28  ;;  %v2115_v28 = vpop.xlane.xlu2 %2114 }
0x1708   : > { %v1995_v30 = vmul.f32 0.5, %v1994_v29  ;;  %v2116_v29 = vmax.f32 %v2115_v28, 1e-09 }
0x170a   : > { %v1996_v31 = vsub.f32 1.5, %v1995_v30 }
0x170c   : > { %v1997_v32 = vmul.f32 %v2524_v27, %v1996_v31 }
0x170e   : > { %v2001_v34 = vsel %vm2000_vm5, %v2524_v27, %v1997_v32 }
0x170f   : > { %v2002_v35 = vmul.f32 %v2001_v34, %v1985_v13 }
0x1711   : > { %v2004_v37 = vmul.f32 %v2003_v33, %v2002_v35 }
0x1713   : > { %v2006_v38 = vadd.f32 %v2005_v36, %v2004_v37 }
0x1715   : > { %2406 = vmatmul.msk.f32.vlgmr.msrb.gmra.mxu2 %vm328_vm2, %v2006_v38 }
0x1798   : > { %v2028_v49 = vpop.f32.mrf.mxu2 }
0x1799   : > { %v2029_v54 = vadd.f32 %v2479_v53, %v2028_v49 }
0x179b   : > { %v2031_v56 = vmul.f32 %v2029_v54, %v2029_v54 }
0x179d   : > { %v2032_v57 = vmul.f32 %v2031_v56, %v2029_v54 }
0x179f   : > { %v2033_v10 = vmul.f32 0.044715, %v2032_v57 }
0x17a1   : > { %v2034_v58 = vadd.f32 %v2033_v10, %v2029_v54 }
0x17a3   : > { %v2035_v59 = vmul.f32 0.7978846, %v2034_v58 }
0x17a5   : > { %2525 = vtanh.f32 %v2035_v59 }
0x17ab   : > { %v2526_v60 = vpop.eup %2525 }
0x17ac   : > { %v2037_v17 = vadd.f32 1.0, %v2526_v60 }
0x17ae   : > { %v2038_v61 = vmul.f32 0.5, %v2037_v17 }
0x17b0   : > { %v2039_v62 = vmul.f32 %v2038_v61, %v2029_v54 }
0x17b2   : > { %2056 = vmatmul.f32.vlgmr.msrb.gmra.mxu3 %v2039_v62 }
0x1835   : > { %v2057_v0 = vpop.f32.mrf.mxu3 }
0x1836   : > { %v2060_v1 = vadd.f32 %v2057_v0, %v3318_v8 }
0x1838   : > { %v2062_v2 = vadd.f32 %v2480_v63, %v2060_v1 }
0x183a   : > { %v2063_v3 = vsel %vm328_vm2, %v2062_v2, 0.0 }
0x183b   : > { %2064 = vadd.xlane.f32.xlu0 %v2063_v3 }
0x18ae   : > { %v2065_v4 = vpop.xlane.xlu0 %2064 }
0x18af   : > { %v2066_v5 = vmul.f32 %v2065_v4, %v2707_v18 }
0x18b1   : > { %v2067_v6 = vsub.f32 %v2062_v2, %v2066_v5 }
0x18b3   : > { %v2068_v7 = vmul.f32 %v2067_v6, %v2067_v6 }
0x18b5   : > { %v2069_v9 = vsel %vm328_vm2, %v2068_v7, 0.0 }
0x18b6   : > { %2070 = vadd.xlane.f32.xlu1 %v2069_v9 }
0x1929   : > { %v2071_v13 = vpop.xlane.xlu1 %2070 }
0x192a   : > { %v2072_v14 = vmul.f32 %v2071_v13, %v2707_v18 }
0x192c   : > { %v2073_v8 = vadd.f32 1e-05, %v2072_v14 }
0x192e   : > { %2527 = vrsqrt.f32 %v2073_v8  ;;  %vm2080_vm2 = vweird.f32 %v2073_v8 }
0x192f   : > { %2529 = vrcp.f32 %v2116_v29 }
0x1934   : > { %v2528_v15 = vpop.eup %2527 }
0x1935   : > { %v2075_v16 = vmul.f32 %v2528_v15, %v2073_v8  ;;  %vm2081_vm7 = vweird.f32 %v2528_v15  ;;  %v2530_v30 = vpop.eup %2529 }
0x1936   : > { %vm2082_vm8 = vmor %vm2080_vm2, %vm2081_vm7 }
0x1937   : > { %v2076_v44 = vmul.f32 %v2528_v15, %v2075_v16 }
0x1939   : > { %v2077_v20 = vmul.f32 0.5, %v2076_v44 }
0x193b   : > { %v2078_v55 = vsub.f32 1.5, %v2077_v20 }
0x193d   : > { %v2079_v21 = vmul.f32 %v2528_v15, %v2078_v55 }
0x193f   : > { %v2083_v24 = vsel %vm2082_vm8, %v2528_v15, %v2079_v21 }
0x1940   : > { %v2084_v18 = vmul.f32 %v2083_v24, %v2067_v6 }
0x1942   : > { %v2086_v26 = vmul.f32 %v2085_v23, %v2084_v18 }
0x1944   : > { %v2088_v27 = vadd.f32 %v2087_v47, %v2086_v26 }
0x1946   : > { %2107 = vmatpush.msra.mxu0 %v2088_v27 }
0x1947   : > { %2407 = vmatmul.msk.f32.vlgmr.msra.gmra.mxu0 %vm303_vm0, %v2531_v11 }
0x19c4   : > { %v2109_v31 = vpop.f32.mrf.mxu0 }
0x19c5   : > { %v2118_v32 = vmul.f32 %v2530_v30, %v2109_v31 }
0x19c7   : > { %2120 = vst.msk [vmem:[%s279_s9] sm:$0x1] %vm2119_vm9, %v2118_v32 }
0x19c8   : > { %2560 = shalt.err (!%p2557_p3)
}
0x19c9   : > { %2410 = dma.vmem_to_hbm [thread:$0]  (%p2678_p5), %s2133_s14, 16, %s2135_s15, %s2122_s16  }
0x19ca PF: > { %p2416_p4 = scmp.ge.s32.totalorder %s2595_s27, 2  ;;  %s2146_s22 = sand.u32 1, %s2583_s24  }
0x19cb   : > { %s2147_s23 = scalar_lea.sflag [#allocation3], %s2146_s22 }
0x19cc   : > { %p2413_p7 = pnand %p2416_p4, %p2682_p6 }
0x19ce   : > { %p2414_p8 = pneg %p2413_p7 }
0x19d0   : > { %2578 = dma.done.wait (%p2414_p8), %s2147_s23, 16  }
0x19d1   : > { %2580 = vsyncadd (%p2414_p8), %s2147_s23, 4294967280  ;;  %p17_p9 = scmp.ge.s32.totalorder %s2665_s30, 4   ;;  %s3447_s24 = smov %s2587_s25 }
0x19d2   : > { %s3448_s25 = smov %s2591_s26  ;;  %s3449_s26 = smov %s2676_s10 }
0x19d3   : > { %s3450_s27 = smov %s2665_s30  ;;  %19 = sbr.rel (!%p17_p9) target bundleno = 3 (0x3), region = 118 }
0x19d8   :  { %2152 = vsyncpa [#allocation3], 1 }
0x19d9   :  { %2154 = vsyncpa [#allocation3 + $0x1], 1 }

</bundles_post_ra>
